<compile_context>
chip_gen: v7x
topology: tpu7x:2x2x1
jax: 0.10.0
libtpu: 0.0.40
codegen_flags: <defaults>
</compile_context>

<pallas_src>
import math
from functools import partial

import jax
import jax.numpy as jnp
from jax.experimental import pallas as pl
from jax.experimental.pallas import tpu as pltpu

_LN_EPS = 1e-5  # torch.nn.LayerNorm default


# ---------------------------------------------------------------------------
# Shared math helpers (pure jnp: used inside the Pallas kernel and in the
# plain-JAX reference).
# ---------------------------------------------------------------------------
def _layernorm(x, gamma, beta):
    mu = jnp.mean(x, axis=-1, keepdims=True)
    xc = x - mu
    var = jnp.mean(xc * xc, axis=-1, keepdims=True)
    inv = jax.lax.rsqrt(var + _LN_EPS)
    return xc * inv * gamma + beta


def _gelu(x):
    # TODO(synk): torch.nn.GELU defaults to exact erf; the tanh approximation
    # (EUP-friendly, ~1e-3 difference) is used here and in the reference.
    c = math.sqrt(2.0 / math.pi)
    return 0.5 * x * (1.0 + jnp.tanh(c * (x + 0.044715 * x * x * x)))


# ---------------------------------------------------------------------------
# Fused encoder-layer kernel (optionally also does pos-emb add / final norms)
# ---------------------------------------------------------------------------
def _fused_layer_kernel(*refs, num_heads, add_pos, final_ln):
    refs = list(refs)
    attn_scratch = refs.pop()          # VMEM scratch (B, S, D) f32
    o_ref = refs.pop()                 # output ref (B, S, D)
    idx = 0
    x_ref = refs[idx]; idx += 1
    pos_ref = None
    if add_pos:
        pos_ref = refs[idx]; idx += 1
    (ln1_g, ln1_b, wq, bq, wk, bk, wv, bv, wo, bo,
     ln2_g, ln2_b, w1, b1, w2, b2) = refs[idx:idx + 16]
    idx += 16
    if final_ln:
        encg, encb, outg, outb = refs[idx:idx + 4]

    B, S, D = x_ref.shape
    H = num_heads
    hd = D // H
    scale = 1.0 / math.sqrt(hd)

    x = x_ref[...]                                   # (B, S, D) f32 residual
    if add_pos:
        x = x + pos_ref[...]                         # broadcast (S, D)

    # Flatten batch*seq so every projection feeds the MXU with M = B*S.
    x2 = x.reshape(B * S, D)

    # ---- multi-head self-attention block (pre-norm) ----
    h = _layernorm(x2, ln1_g[...], ln1_b[...])       # f32 on the VPU
    hb = h.astype(jnp.bfloat16)
    q = jnp.dot(hb, wq[...], preferred_element_type=jnp.float32) + bq[...]
    k = jnp.dot(hb, wk[...], preferred_element_type=jnp.float32) + bk[...]
    v = jnp.dot(hb, wv[...], preferred_element_type=jnp.float32) + bv[...]

    q3 = q.reshape(B, S, D).astype(jnp.bfloat16)
    k3 = k.reshape(B, S, D).astype(jnp.bfloat16)
    v3 = v.reshape(B, S, D).astype(jnp.bfloat16)

    for hh in range(H):                              # static unroll, small H
        lo = hh * hd
        qh = q3[:, :, lo:lo + hd]
        kh = k3[:, :, lo:lo + hd]
        vh = v3[:, :, lo:lo + hd]
        s = jnp.einsum('bqd,bkd->bqk', qh, kh,
                       preferred_element_type=jnp.float32) * scale
        s = s - jnp.max(s, axis=-1, keepdims=True)
        p = jnp.exp(s)
        p = p * pl.reciprocal(jnp.sum(p, axis=-1, keepdims=True), approx=True)
        oh = jnp.einsum('bqk,bkd->bqd', p.astype(jnp.bfloat16), vh,
                        preferred_element_type=jnp.float32)
        attn_scratch[:, :, lo:lo + hd] = oh          # concat heads in VMEM

    o_all = attn_scratch[...].reshape(B * S, D).astype(jnp.bfloat16)
    attn = jnp.dot(o_all, wo[...],
                   preferred_element_type=jnp.float32) + bo[...]
    x2 = x2 + attn                                   # residual (dropout=id)

    # ---- feed-forward block (pre-norm) ----
    h2 = _layernorm(x2, ln2_g[...], ln2_b[...])
    f = jnp.dot(h2.astype(jnp.bfloat16), w1[...],
                preferred_element_type=jnp.float32) + b1[...]
    f = _gelu(f)                                     # f32 elementwise
    f = jnp.dot(f.astype(jnp.bfloat16), w2[...],
                preferred_element_type=jnp.float32) + b2[...]
    y = x2 + f

    if final_ln:
        y = _layernorm(y, encg[...], encb[...])      # encoder-final LN
        y = _layernorm(y, outg[...], outb[...])      # model output LN

    o_ref[...] = y.reshape(B, S, D).astype(o_ref.dtype)


# ---------------------------------------------------------------------------
# pallas_call wrapper
# ---------------------------------------------------------------------------
def _full_spec(shape):
    # Full-extent block, single-step grid.
    return pl.BlockSpec(shape, lambda i: (0,) * len(shape))


_LAYER_PARAM_ORDER = ("ln1_g", "ln1_b", "wq", "bq", "wk", "bk", "wv", "bv",
                      "wo", "bo", "ln2_g", "ln2_b", "w1", "b1", "w2", "b2")


def fused_encoder_layer(x, layer_p, *, num_heads, pos_emb=None,
                        final_norms=None):
    """One pre-LN encoder layer on the whole (B, S, D) slab.

    pos_emb (S, D): fused positional-embedding add (first layer only).
    final_norms (g_enc, b_enc, g_out, b_out): fused final LayerNorms (last layer).
    """
    B, S, D = x.shape
    add_pos = pos_emb is not None
    final_ln = final_norms is not None

    kernel = partial(_fused_layer_kernel, num_heads=num_heads,
                     add_pos=add_pos, final_ln=final_ln)

    args = [x]
    specs = [_full_spec((B, S, D))]
    if add_pos:
        args.append(pos_emb)
        specs.append(_full_spec(pos_emb.shape))
    for name in _LAYER_PARAM_ORDER:
        w = layer_p[name]
        args.append(w)
        specs.append(_full_spec(w.shape))
    if final_ln:
        for w in final_norms:
            args.append(w)
            specs.append(_full_spec(w.shape))

    return pl.pallas_call(
        kernel,
        out_shape=jax.ShapeDtypeStruct((B, S, D), x.dtype),
        grid=(1,),
        in_specs=specs,
        out_specs=_full_spec((B, S, D)),
        scratch_shapes=[pltpu.VMEM((B, S, D), jnp.float32)],  # head-concat slab
        input_output_aliases={0: 0},            # residual stream updated in place
        compiler_params=pltpu.CompilerParams(
            dimension_semantics=("arbitrary",),
            vmem_limit_bytes=48 * 1024 * 1024),  # headroom on v5e/v6e/v7x
    )(*args)


def classic_model_forward(ids, params, num_heads):
    """ids: (B, S) int32 token indices -> (B, S, D) float32."""
    # TODO(synk): the token-embedding lookup is a data-dependent gather; a
    # production kernel would drive it with scalar-prefetched ids (SMEM) and
    # per-row DMA fused into the first layer. Here it stays a jnp.take and
    # everything downstream runs in fused Pallas layer kernels.
    tok = jnp.take(params["token_emb"], ids, axis=0).astype(jnp.float32)
    S = ids.shape[1]
    pos = params["pos_emb"][:S]
    n_layers = len(params["layers"])
    final_norms = (params["enc_norm_g"], params["enc_norm_b"],
                   params["out_norm_g"], params["out_norm_b"])
    x = tok
    for li, p in enumerate(params["layers"]):
        x = fused_encoder_layer(
            x, p, num_heads=num_heads,
            pos_emb=pos if li == 0 else None,
            final_norms=final_norms if li == n_layers - 1 else None)
    return x


# ---------------------------------------------------------------------------
# Parameter construction + plain-JAX fp32 reference
# ---------------------------------------------------------------------------
def init_params(key, num_tokens, dim, num_layers, ffn_dim, max_pos=1024):
    def dense(k, m, n, scale=0.02):
        return scale * jax.random.normal(k, (m, n), dtype=jnp.float32)

    keys = jax.random.split(key, 4 + num_layers)
    params = {
        "token_emb": dense(keys[0], num_tokens, dim, 1.0 / math.sqrt(dim)),
        "pos_emb":   dense(keys[1], max_pos, dim, 1.0 / math.sqrt(dim)),
        "enc_norm_g": 1.0 + 0.1 * dense(keys[2], 1, dim, 1.0),
        "enc_norm_b": 0.1 * dense(keys[3], 1, dim, 1.0),
        "out_norm_g": jnp.ones((1, dim), jnp.float32),
        "out_norm_b": jnp.zeros((1, dim), jnp.float32),
        "layers": [],
    }
    for li in range(num_layers):
        lk = jax.random.split(keys[4 + li], 10)
        params["layers"].append({
            "ln1_g": 1.0 + 0.1 * dense(lk[0], 1, dim, 1.0),
            "ln1_b": 0.1 * dense(lk[1], 1, dim, 1.0),
            "ln2_g": 1.0 + 0.1 * dense(lk[2], 1, dim, 1.0),
            "ln2_b": 0.1 * dense(lk[3], 1, dim, 1.0),
            "wq": dense(lk[4], dim, dim), "bq": jnp.zeros((1, dim), jnp.float32),
            "wk": dense(lk[5], dim, dim), "bk": jnp.zeros((1, dim), jnp.float32),
            "wv": dense(lk[6], dim, dim), "bv": jnp.zeros((1, dim), jnp.float32),
            "wo": dense(lk[7], dim, dim), "bo": jnp.zeros((1, dim), jnp.float32),
            "w1": dense(lk[8], dim, ffn_dim), "b1": jnp.zeros((1, ffn_dim), jnp.float32),
            "w2": dense(lk[9], ffn_dim, dim), "b2": jnp.zeros((1, dim), jnp.float32),
        })
    return params


_BF16_WEIGHTS = ("wq", "wk", "wv", "wo", "w1", "w2")


def to_device_params(params):
    """Pre-cast all matmul weights to bf16 once (halves DMA bytes / VMEM)."""
    dev = {k: v for k, v in params.items() if k != "layers"}
    dev["layers"] = []
    for p in params["layers"]:
        q = dict(p)
        for name in _BF16_WEIGHTS:
            q[name] = p[name].astype(jnp.bfloat16)
        dev["layers"].append(q)
    return dev


def reference_forward(ids, params, num_heads):
    tok = jnp.take(params["token_emb"], ids, axis=0)          # (B, S, D)
    B, S, D = tok.shape
    hd = D // num_heads
    x = tok + params["pos_emb"][:S][None]
    for p in params["layers"]:
        h = _layernorm(x, p["ln1_g"], p["ln1_b"])
        q = h @ p["wq"] + p["bq"]
        k = h @ p["wk"] + p["bk"]
        v = h @ p["wv"] + p["bv"]
        qh = q.reshape(B, S, num_heads, hd).transpose(0, 2, 1, 3)
        kh = k.reshape(B, S, num_heads, hd).transpose(0, 2, 1, 3)
        vh = v.reshape(B, S, num_heads, hd).transpose(0, 2, 1, 3)
        s = jnp.einsum("bhqd,bhkd->bhqk", qh, kh) / math.sqrt(hd)
        a = jax.nn.softmax(s, axis=-1)
        o = jnp.einsum("bhqk,bhkd->bhqd", a, vh)
        o = o.transpose(0, 2, 1, 3).reshape(B, S, D)
        x = x + (o @ p["wo"] + p["bo"])
        h2 = _layernorm(x, p["ln2_g"], p["ln2_b"])
        f = _gelu(h2 @ p["w1"] + p["b1"]) @ p["w2"] + p["b2"]
        x = x + f
    x = _layernorm(x, params["enc_norm_g"], params["enc_norm_b"])
    x = _layernorm(x, params["out_norm_g"], params["out_norm_b"])
    return x


# ---------------------------------------------------------------------------
if __name__ == "__main__":
    # Small shapes consistent with the module.
    num_tokens, dim, num_heads, num_layers, ffn_dim = 16, 32, 4, 2, 64
    batch, seq = 2, 8

    key = jax.random.PRNGKey(0)
    k_param, k_ids = jax.random.split(key)
    params = init_params(k_param, num_tokens, dim, num_layers, ffn_dim)
    ids = jax.random.randint(k_ids, (batch, seq), 0, num_tokens, dtype=jnp.int32)

    dev_params = to_device_params(params)     # bf16 matmul weights, cast once

    fwd = jax.jit(classic_model_forward, static_argnums=2)
    out = jax.block_until_ready(fwd(ids, dev_params, num_heads))

    ref = reference_forward(ids, params, num_heads)     # pure fp32 reference
    assert out.shape == (batch, seq, dim)
    err = float(jnp.max(jnp.abs(out - ref)))
    # bf16 MXU datapath vs fp32 reference: allow bf16-level tolerance.
    assert jnp.allclose(out, ref, atol=5e-2, rtol=5e-2), f"max abs err {err}"

    print("KERNEL_OK")
</pallas_src>

<mosaic_0001>
module attributes {stable_mosaic.version = 11 : i64} {
  func.func @_fused_layer_kernel(%arg0: i32, %arg1: memref<2x8x32xf32, #tpu.memory_space<vmem>>, %arg2: memref<1x32xf32, #tpu.memory_space<vmem>>, %arg3: memref<1x32xf32, #tpu.memory_space<vmem>>, %arg4: memref<32x32xbf16, #tpu.memory_space<vmem>>, %arg5: memref<1x32xf32, #tpu.memory_space<vmem>>, %arg6: memref<32x32xbf16, #tpu.memory_space<vmem>>, %arg7: memref<1x32xf32, #tpu.memory_space<vmem>>, %arg8: memref<32x32xbf16, #tpu.memory_space<vmem>>, %arg9: memref<1x32xf32, #tpu.memory_space<vmem>>, %arg10: memref<32x32xbf16, #tpu.memory_space<vmem>>, %arg11: memref<1x32xf32, #tpu.memory_space<vmem>>, %arg12: memref<1x32xf32, #tpu.memory_space<vmem>>, %arg13: memref<1x32xf32, #tpu.memory_space<vmem>>, %arg14: memref<32x64xbf16, #tpu.memory_space<vmem>>, %arg15: memref<1x64xf32, #tpu.memory_space<vmem>>, %arg16: memref<64x32xbf16, #tpu.memory_space<vmem>>, %arg17: memref<1x32xf32, #tpu.memory_space<vmem>>, %arg18: memref<1x32xf32, #tpu.memory_space<vmem>>, %arg19: memref<1x32xf32, #tpu.memory_space<vmem>>, %arg20: memref<1x32xf32, #tpu.memory_space<vmem>>, %arg21: memref<1x32xf32, #tpu.memory_space<vmem>>, %arg22: memref<2x8x32xf32, #tpu.memory_space<vmem>>, %arg23: memref<2x8x32xf32, #tpu.memory_space<vmem>>) attributes {dimension_semantics = [#tpu.dimension_semantics<arbitrary>], iteration_bounds = array<i64: 1>, scalar_prefetch = 0 : i64, scratch_operands = 1 : i64, tpu.core_type = #tpu.core_type<tc>, window_params = [{pipeline_mode = #tpu.pipeline_mode<synchronous>, transform_indices = @transform_0, window_bounds = array<i64: 2, 8, 32>}, {pipeline_mode = #tpu.pipeline_mode<synchronous>, transform_indices = @transform_1, window_bounds = array<i64: 1, 32>}, {pipeline_mode = #tpu.pipeline_mode<synchronous>, transform_indices = @transform_2, window_bounds = array<i64: 1, 32>}, {pipeline_mode = #tpu.pipeline_mode<synchronous>, transform_indices = @transform_3, window_bounds = array<i64: 32, 32>}, {pipeline_mode = #tpu.pipeline_mode<synchronous>, transform_indices = @transform_4, window_bounds = array<i64: 1, 32>}, {pipeline_mode = #tpu.pipeline_mode<synchronous>, transform_indices = @transform_5, window_bounds = array<i64: 32, 32>}, {pipeline_mode = #tpu.pipeline_mode<synchronous>, transform_indices = @transform_6, window_bounds = array<i64: 1, 32>}, {pipeline_mode = #tpu.pipeline_mode<synchronous>, transform_indices = @transform_7, window_bounds = array<i64: 32, 32>}, {pipeline_mode = #tpu.pipeline_mode<synchronous>, transform_indices = @transform_8, window_bounds = array<i64: 1, 32>}, {pipeline_mode = #tpu.pipeline_mode<synchronous>, transform_indices = @transform_9, window_bounds = array<i64: 32, 32>}, {pipeline_mode = #tpu.pipeline_mode<synchronous>, transform_indices = @transform_10, window_bounds = array<i64: 1, 32>}, {pipeline_mode = #tpu.pipeline_mode<synchronous>, transform_indices = @transform_11, window_bounds = array<i64: 1, 32>}, {pipeline_mode = #tpu.pipeline_mode<synchronous>, transform_indices = @transform_12, window_bounds = array<i64: 1, 32>}, {pipeline_mode = #tpu.pipeline_mode<synchronous>, transform_indices = @transform_13, window_bounds = array<i64: 32, 64>}, {pipeline_mode = #tpu.pipeline_mode<synchronous>, transform_indices = @transform_14, window_bounds = array<i64: 1, 64>}, {pipeline_mode = #tpu.pipeline_mode<synchronous>, transform_indices = @transform_15, window_bounds = array<i64: 64, 32>}, {pipeline_mode = #tpu.pipeline_mode<synchronous>, transform_indices = @transform_16, window_bounds = array<i64: 1, 32>}, {pipeline_mode = #tpu.pipeline_mode<synchronous>, transform_indices = @transform_17, window_bounds = array<i64: 1, 32>}, {pipeline_mode = #tpu.pipeline_mode<synchronous>, transform_indices = @transform_18, window_bounds = array<i64: 1, 32>}, {pipeline_mode = #tpu.pipeline_mode<synchronous>, transform_indices = @transform_19, window_bounds = array<i64: 1, 32>}, {pipeline_mode = #tpu.pipeline_mode<synchronous>, transform_indices = @transform_20, window_bounds = array<i64: 1, 32>}, {pipeline_mode = #tpu.pipeline_mode<synchronous>, transform_indices = @transform_21, window_bounds = array<i64: 2, 8, 32>}]} {
    %c0 = arith.constant 0 : index
    %c0_0 = arith.constant 0 : index
    %c0_1 = arith.constant 0 : index
    %0 = vector.load %arg1[%c0, %c0_0, %c0_1] : memref<2x8x32xf32, #tpu.memory_space<vmem>>, vector<2x8x32xf32>
    %1 = vector.shape_cast %0 : vector<2x8x32xf32> to vector<16x32xf32>
    %c0_2 = arith.constant 0 : index
    %c0_3 = arith.constant 0 : index
    %2 = vector.load %arg2[%c0_2, %c0_3] : memref<1x32xf32, #tpu.memory_space<vmem>>, vector<1x32xf32>
    %c0_4 = arith.constant 0 : index
    %c0_5 = arith.constant 0 : index
    %3 = vector.load %arg3[%c0_4, %c0_5] : memref<1x32xf32, #tpu.memory_space<vmem>>, vector<1x32xf32>
    %cst = arith.constant dense<0.000000e+00> : vector<16xf32>
    %4 = vector.multi_reduction <add>, %1, %cst [1] : vector<16x32xf32> to vector<16xf32>
    %5 = vector.shape_cast %4 : vector<16xf32> to vector<16x1xf32>
    %cst_6 = arith.constant 3.200000e+01 : f32
    %6 = vector.broadcast %cst_6 : f32 to vector<16x1xf32>
    %7 = arith.divf %5, %6 : vector<16x1xf32>
    %8 = vector.broadcast %7 : vector<16x1xf32> to vector<16x32xf32>
    %9 = arith.subf %1, %8 : vector<16x32xf32>
    %10 = arith.mulf %9, %9 : vector<16x32xf32>
    %cst_7 = arith.constant dense<0.000000e+00> : vector<16xf32>
    %11 = vector.multi_reduction <add>, %10, %cst_7 [1] : vector<16x32xf32> to vector<16xf32>
    %12 = vector.shape_cast %11 : vector<16xf32> to vector<16x1xf32>
    %cst_8 = arith.constant 3.200000e+01 : f32
    %13 = vector.broadcast %cst_8 : f32 to vector<16x1xf32>
    %14 = arith.divf %12, %13 : vector<16x1xf32>
    %cst_9 = arith.constant 9.99999974E-6 : f32
    %15 = vector.broadcast %cst_9 : f32 to vector<16x1xf32>
    %16 = arith.addf %14, %15 : vector<16x1xf32>
    %17 = math.rsqrt %16 : vector<16x1xf32>
    %18 = vector.broadcast %17 : vector<16x1xf32> to vector<16x32xf32>
    %19 = arith.mulf %9, %18 : vector<16x32xf32>
    %20 = vector.broadcast %2 : vector<1x32xf32> to vector<16x32xf32>
    %21 = arith.mulf %19, %20 : vector<16x32xf32>
    %22 = vector.broadcast %3 : vector<1x32xf32> to vector<16x32xf32>
    %23 = arith.addf %21, %22 : vector<16x32xf32>
    %24 = arith.truncf %23 : vector<16x32xf32> to vector<16x32xbf16>
    %c0_10 = arith.constant 0 : index
    %c0_11 = arith.constant 0 : index
    %25 = vector.load %arg4[%c0_10, %c0_11] : memref<32x32xbf16, #tpu.memory_space<vmem>>, vector<32x32xbf16>
    %cst_12 = arith.constant dense<0.000000e+00> : vector<16x32xf32>
    %26 = tpu.matmul %24, %25, %cst_12 {dimension_numbers = #tpu.dot_dimension_numbers<[1], [0], [0], [1], [0, 0, 1, 1], [], []>} : vector<16x32xbf16>, vector<32x32xbf16>, vector<16x32xf32> -> vector<16x32xf32>
    %c0_13 = arith.constant 0 : index
    %c0_14 = arith.constant 0 : index
    %27 = vector.load %arg5[%c0_13, %c0_14] : memref<1x32xf32, #tpu.memory_space<vmem>>, vector<1x32xf32>
    %28 = vector.broadcast %27 : vector<1x32xf32> to vector<16x32xf32>
    %29 = arith.addf %26, %28 : vector<16x32xf32>
    %c0_15 = arith.constant 0 : index
    %c0_16 = arith.constant 0 : index
    %30 = vector.load %arg6[%c0_15, %c0_16] : memref<32x32xbf16, #tpu.memory_space<vmem>>, vector<32x32xbf16>
    %cst_17 = arith.constant dense<0.000000e+00> : vector<16x32xf32>
    %31 = tpu.matmul %24, %30, %cst_17 {dimension_numbers = #tpu.dot_dimension_numbers<[1], [0], [0], [1], [0, 0, 1, 1], [], []>} : vector<16x32xbf16>, vector<32x32xbf16>, vector<16x32xf32> -> vector<16x32xf32>
    %c0_18 = arith.constant 0 : index
    %c0_19 = arith.constant 0 : index
    %32 = vector.load %arg7[%c0_18, %c0_19] : memref<1x32xf32, #tpu.memory_space<vmem>>, vector<1x32xf32>
    %33 = vector.broadcast %32 : vector<1x32xf32> to vector<16x32xf32>
    %34 = arith.addf %31, %33 : vector<16x32xf32>
    %c0_20 = arith.constant 0 : index
    %c0_21 = arith.constant 0 : index
    %35 = vector.load %arg8[%c0_20, %c0_21] : memref<32x32xbf16, #tpu.memory_space<vmem>>, vector<32x32xbf16>
    %cst_22 = arith.constant dense<0.000000e+00> : vector<16x32xf32>
    %36 = tpu.matmul %24, %35, %cst_22 {dimension_numbers = #tpu.dot_dimension_numbers<[1], [0], [0], [1], [0, 0, 1, 1], [], []>} : vector<16x32xbf16>, vector<32x32xbf16>, vector<16x32xf32> -> vector<16x32xf32>
    %c0_23 = arith.constant 0 : index
    %c0_24 = arith.constant 0 : index
    %37 = vector.load %arg9[%c0_23, %c0_24] : memref<1x32xf32, #tpu.memory_space<vmem>>, vector<1x32xf32>
    %38 = vector.broadcast %37 : vector<1x32xf32> to vector<16x32xf32>
    %39 = arith.addf %36, %38 : vector<16x32xf32>
    %40 = vector.shape_cast %29 : vector<16x32xf32> to vector<2x8x32xf32>
    %41 = arith.truncf %40 : vector<2x8x32xf32> to vector<2x8x32xbf16>
    %42 = vector.shape_cast %34 : vector<16x32xf32> to vector<2x8x32xf32>
    %43 = arith.truncf %42 : vector<2x8x32xf32> to vector<2x8x32xbf16>
    %44 = vector.shape_cast %39 : vector<16x32xf32> to vector<2x8x32xf32>
    %45 = arith.truncf %44 : vector<2x8x32xf32> to vector<2x8x32xbf16>
    %46 = vector.extract_strided_slice %41 {offsets = [0, 0, 0], sizes = [2, 8, 8], strides = [1, 1, 1]} : vector<2x8x32xbf16> to vector<2x8x8xbf16>
    %47 = vector.extract_strided_slice %43 {offsets = [0, 0, 0], sizes = [2, 8, 8], strides = [1, 1, 1]} : vector<2x8x32xbf16> to vector<2x8x8xbf16>
    %48 = vector.extract_strided_slice %45 {offsets = [0, 0, 0], sizes = [2, 8, 8], strides = [1, 1, 1]} : vector<2x8x32xbf16> to vector<2x8x8xbf16>
    "tpu.trace_start"() <{level = 10 : i32, message = "bqd,bkd->bqk"}> : () -> ()
    %cst_25 = arith.constant dense<0.000000e+00> : vector<2x8x8xf32>
    %49 = tpu.matmul %46, %47, %cst_25 {dimension_numbers = #tpu.dot_dimension_numbers<[2], [2], [1], [1], [0, 0, 0, 1, 1, 1], [0], [0]>} : vector<2x8x8xbf16>, vector<2x8x8xbf16>, vector<2x8x8xf32> -> vector<2x8x8xf32>
    "tpu.trace_stop"() : () -> ()
    %cst_26 = arith.constant 0.353553385 : f32
    %50 = vector.broadcast %cst_26 : f32 to vector<2x8x8xf32>
    %51 = arith.mulf %49, %50 : vector<2x8x8xf32>
    %cst_27 = arith.constant dense<0xFF800000> : vector<2x8xf32>
    %52 = vector.multi_reduction <maximumf>, %51, %cst_27 [2] : vector<2x8x8xf32> to vector<2x8xf32>
    %53 = vector.shape_cast %52 : vector<2x8xf32> to vector<2x8x1xf32>
    %54 = vector.broadcast %53 : vector<2x8x1xf32> to vector<2x8x8xf32>
    %55 = arith.subf %51, %54 : vector<2x8x8xf32>
    %56 = math.exp %55 : vector<2x8x8xf32>
    %cst_28 = arith.constant dense<0.000000e+00> : vector<2x8xf32>
    %57 = vector.multi_reduction <add>, %56, %cst_28 [2] : vector<2x8x8xf32> to vector<2x8xf32>
    %58 = vector.shape_cast %57 : vector<2x8xf32> to vector<2x8x1xf32>
    %59 = tpu.reciprocal %58 {approx = true} : vector<2x8x1xf32> -> vector<2x8x1xf32>
    %60 = vector.broadcast %59 : vector<2x8x1xf32> to vector<2x8x8xf32>
    %61 = arith.mulf %56, %60 : vector<2x8x8xf32>
    %62 = arith.truncf %61 : vector<2x8x8xf32> to vector<2x8x8xbf16>
    "tpu.trace_start"() <{level = 10 : i32, message = "bqk,bkd->bqd"}> : () -> ()
    %cst_29 = arith.constant dense<0.000000e+00> : vector<2x8x8xf32>
    %63 = tpu.matmul %62, %48, %cst_29 {dimension_numbers = #tpu.dot_dimension_numbers<[2], [1], [1], [2], [0, 0, 0, 1, 1, 2], [0], [0]>} : vector<2x8x8xbf16>, vector<2x8x8xbf16>, vector<2x8x8xf32> -> vector<2x8x8xf32>
    "tpu.trace_stop"() : () -> ()
    %c0_30 = arith.constant 0 : index
    %c0_31 = arith.constant 0 : index
    %c0_32 = arith.constant 0 : index
    %64 = vector.load %arg23[%c0_30, %c0_31, %c0_32] : memref<2x8x32xf32, #tpu.memory_space<vmem>>, vector<2x8x8xf32>
    tpu.vector_store %arg23[%c0_30, %c0_31, %c0_32], %63 {strides = array<i32>} : memref<2x8x32xf32, #tpu.memory_space<vmem>>, vector<2x8x8xf32>,
    %65 = vector.extract_strided_slice %41 {offsets = [0, 0, 8], sizes = [2, 8, 8], strides = [1, 1, 1]} : vector<2x8x32xbf16> to vector<2x8x8xbf16>
    %66 = vector.extract_strided_slice %43 {offsets = [0, 0, 8], sizes = [2, 8, 8], strides = [1, 1, 1]} : vector<2x8x32xbf16> to vector<2x8x8xbf16>
    %67 = vector.extract_strided_slice %45 {offsets = [0, 0, 8], sizes = [2, 8, 8], strides = [1, 1, 1]} : vector<2x8x32xbf16> to vector<2x8x8xbf16>
    "tpu.trace_start"() <{level = 10 : i32, message = "bqd,bkd->bqk"}> : () -> ()
    %cst_33 = arith.constant dense<0.000000e+00> : vector<2x8x8xf32>
    %68 = tpu.matmul %65, %66, %cst_33 {dimension_numbers = #tpu.dot_dimension_numbers<[2], [2], [1], [1], [0, 0, 0, 1, 1, 1], [0], [0]>} : vector<2x8x8xbf16>, vector<2x8x8xbf16>, vector<2x8x8xf32> -> vector<2x8x8xf32>
    "tpu.trace_stop"() : () -> ()
    %cst_34 = arith.constant 0.353553385 : f32
    %69 = vector.broadcast %cst_34 : f32 to vector<2x8x8xf32>
    %70 = arith.mulf %68, %69 : vector<2x8x8xf32>
    %cst_35 = arith.constant dense<0xFF800000> : vector<2x8xf32>
    %71 = vector.multi_reduction <maximumf>, %70, %cst_35 [2] : vector<2x8x8xf32> to vector<2x8xf32>
    %72 = vector.shape_cast %71 : vector<2x8xf32> to vector<2x8x1xf32>
    %73 = vector.broadcast %72 : vector<2x8x1xf32> to vector<2x8x8xf32>
    %74 = arith.subf %70, %73 : vector<2x8x8xf32>
    %75 = math.exp %74 : vector<2x8x8xf32>
    %cst_36 = arith.constant dense<0.000000e+00> : vector<2x8xf32>
    %76 = vector.multi_reduction <add>, %75, %cst_36 [2] : vector<2x8x8xf32> to vector<2x8xf32>
    %77 = vector.shape_cast %76 : vector<2x8xf32> to vector<2x8x1xf32>
    %78 = tpu.reciprocal %77 {approx = true} : vector<2x8x1xf32> -> vector<2x8x1xf32>
    %79 = vector.broadcast %78 : vector<2x8x1xf32> to vector<2x8x8xf32>
    %80 = arith.mulf %75, %79 : vector<2x8x8xf32>
    %81 = arith.truncf %80 : vector<2x8x8xf32> to vector<2x8x8xbf16>
    "tpu.trace_start"() <{level = 10 : i32, message = "bqk,bkd->bqd"}> : () -> ()
    %cst_37 = arith.constant dense<0.000000e+00> : vector<2x8x8xf32>
    %82 = tpu.matmul %81, %67, %cst_37 {dimension_numbers = #tpu.dot_dimension_numbers<[2], [1], [1], [2], [0, 0, 0, 1, 1, 2], [0], [0]>} : vector<2x8x8xbf16>, vector<2x8x8xbf16>, vector<2x8x8xf32> -> vector<2x8x8xf32>
    "tpu.trace_stop"() : () -> ()
    %c0_38 = arith.constant 0 : index
    %c0_39 = arith.constant 0 : index
    %c8 = arith.constant 8 : index
    %83 = vector.load %arg23[%c0_38, %c0_39, %c8] : memref<2x8x32xf32, #tpu.memory_space<vmem>>, vector<2x8x8xf32>
    tpu.vector_store %arg23[%c0_38, %c0_39, %c8], %82 {strides = array<i32>} : memref<2x8x32xf32, #tpu.memory_space<vmem>>, vector<2x8x8xf32>,
    %84 = vector.extract_strided_slice %41 {offsets = [0, 0, 16], sizes = [2, 8, 8], strides = [1, 1, 1]} : vector<2x8x32xbf16> to vector<2x8x8xbf16>
    %85 = vector.extract_strided_slice %43 {offsets = [0, 0, 16], sizes = [2, 8, 8], strides = [1, 1, 1]} : vector<2x8x32xbf16> to vector<2x8x8xbf16>
    %86 = vector.extract_strided_slice %45 {offsets = [0, 0, 16], sizes = [2, 8, 8], strides = [1, 1, 1]} : vector<2x8x32xbf16> to vector<2x8x8xbf16>
    "tpu.trace_start"() <{level = 10 : i32, message = "bqd,bkd->bqk"}> : () -> ()
    %cst_40 = arith.constant dense<0.000000e+00> : vector<2x8x8xf32>
    %87 = tpu.matmul %84, %85, %cst_40 {dimension_numbers = #tpu.dot_dimension_numbers<[2], [2], [1], [1], [0, 0, 0, 1, 1, 1], [0], [0]>} : vector<2x8x8xbf16>, vector<2x8x8xbf16>, vector<2x8x8xf32> -> vector<2x8x8xf32>
    "tpu.trace_stop"() : () -> ()
    %cst_41 = arith.constant 0.353553385 : f32
    %88 = vector.broadcast %cst_41 : f32 to vector<2x8x8xf32>
    %89 = arith.mulf %87, %88 : vector<2x8x8xf32>
    %cst_42 = arith.constant dense<0xFF800000> : vector<2x8xf32>
    %90 = vector.multi_reduction <maximumf>, %89, %cst_42 [2] : vector<2x8x8xf32> to vector<2x8xf32>
    %91 = vector.shape_cast %90 : vector<2x8xf32> to vector<2x8x1xf32>
    %92 = vector.broadcast %91 : vector<2x8x1xf32> to vector<2x8x8xf32>
    %93 = arith.subf %89, %92 : vector<2x8x8xf32>
    %94 = math.exp %93 : vector<2x8x8xf32>
    %cst_43 = arith.constant dense<0.000000e+00> : vector<2x8xf32>
    %95 = vector.multi_reduction <add>, %94, %cst_43 [2] : vector<2x8x8xf32> to vector<2x8xf32>
    %96 = vector.shape_cast %95 : vector<2x8xf32> to vector<2x8x1xf32>
    %97 = tpu.reciprocal %96 {approx = true} : vector<2x8x1xf32> -> vector<2x8x1xf32>
    %98 = vector.broadcast %97 : vector<2x8x1xf32> to vector<2x8x8xf32>
    %99 = arith.mulf %94, %98 : vector<2x8x8xf32>
    %100 = arith.truncf %99 : vector<2x8x8xf32> to vector<2x8x8xbf16>
    "tpu.trace_start"() <{level = 10 : i32, message = "bqk,bkd->bqd"}> : () -> ()
    %cst_44 = arith.constant dense<0.000000e+00> : vector<2x8x8xf32>
    %101 = tpu.matmul %100, %86, %cst_44 {dimension_numbers = #tpu.dot_dimension_numbers<[2], [1], [1], [2], [0, 0, 0, 1, 1, 2], [0], [0]>} : vector<2x8x8xbf16>, vector<2x8x8xbf16>, vector<2x8x8xf32> -> vector<2x8x8xf32>
    "tpu.trace_stop"() : () -> ()
    %c0_45 = arith.constant 0 : index
    %c0_46 = arith.constant 0 : index
    %c16 = arith.constant 16 : index
    %102 = vector.load %arg23[%c0_45, %c0_46, %c16] : memref<2x8x32xf32, #tpu.memory_space<vmem>>, vector<2x8x8xf32>
    tpu.vector_store %arg23[%c0_45, %c0_46, %c16], %101 {strides = array<i32>} : memref<2x8x32xf32, #tpu.memory_space<vmem>>, vector<2x8x8xf32>,
    %103 = vector.extract_strided_slice %41 {offsets = [0, 0, 24], sizes = [2, 8, 8], strides = [1, 1, 1]} : vector<2x8x32xbf16> to vector<2x8x8xbf16>
    %104 = vector.extract_strided_slice %43 {offsets = [0, 0, 24], sizes = [2, 8, 8], strides = [1, 1, 1]} : vector<2x8x32xbf16> to vector<2x8x8xbf16>
    %105 = vector.extract_strided_slice %45 {offsets = [0, 0, 24], sizes = [2, 8, 8], strides = [1, 1, 1]} : vector<2x8x32xbf16> to vector<2x8x8xbf16>
    "tpu.trace_start"() <{level = 10 : i32, message = "bqd,bkd->bqk"}> : () -> ()
    %cst_47 = arith.constant dense<0.000000e+00> : vector<2x8x8xf32>
    %106 = tpu.matmul %103, %104, %cst_47 {dimension_numbers = #tpu.dot_dimension_numbers<[2], [2], [1], [1], [0, 0, 0, 1, 1, 1], [0], [0]>} : vector<2x8x8xbf16>, vector<2x8x8xbf16>, vector<2x8x8xf32> -> vector<2x8x8xf32>
    "tpu.trace_stop"() : () -> ()
    %cst_48 = arith.constant 0.353553385 : f32
    %107 = vector.broadcast %cst_48 : f32 to vector<2x8x8xf32>
    %108 = arith.mulf %106, %107 : vector<2x8x8xf32>
    %cst_49 = arith.constant dense<0xFF800000> : vector<2x8xf32>
    %109 = vector.multi_reduction <maximumf>, %108, %cst_49 [2] : vector<2x8x8xf32> to vector<2x8xf32>
    %110 = vector.shape_cast %109 : vector<2x8xf32> to vector<2x8x1xf32>
    %111 = vector.broadcast %110 : vector<2x8x1xf32> to vector<2x8x8xf32>
    %112 = arith.subf %108, %111 : vector<2x8x8xf32>
    %113 = math.exp %112 : vector<2x8x8xf32>
    %cst_50 = arith.constant dense<0.000000e+00> : vector<2x8xf32>
    %114 = vector.multi_reduction <add>, %113, %cst_50 [2] : vector<2x8x8xf32> to vector<2x8xf32>
    %115 = vector.shape_cast %114 : vector<2x8xf32> to vector<2x8x1xf32>
    %116 = tpu.reciprocal %115 {approx = true} : vector<2x8x1xf32> -> vector<2x8x1xf32>
    %117 = vector.broadcast %116 : vector<2x8x1xf32> to vector<2x8x8xf32>
    %118 = arith.mulf %113, %117 : vector<2x8x8xf32>
    %119 = arith.truncf %118 : vector<2x8x8xf32> to vector<2x8x8xbf16>
    "tpu.trace_start"() <{level = 10 : i32, message = "bqk,bkd->bqd"}> : () -> ()
    %cst_51 = arith.constant dense<0.000000e+00> : vector<2x8x8xf32>
    %120 = tpu.matmul %119, %105, %cst_51 {dimension_numbers = #tpu.dot_dimension_numbers<[2], [1], [1], [2], [0, 0, 0, 1, 1, 2], [0], [0]>} : vector<2x8x8xbf16>, vector<2x8x8xbf16>, vector<2x8x8xf32> -> vector<2x8x8xf32>
    "tpu.trace_stop"() : () -> ()
    %c0_52 = arith.constant 0 : index
    %c0_53 = arith.constant 0 : index
    %c24 = arith.constant 24 : index
    %121 = vector.load %arg23[%c0_52, %c0_53, %c24] : memref<2x8x32xf32, #tpu.memory_space<vmem>>, vector<2x8x8xf32>
    tpu.vector_store %arg23[%c0_52, %c0_53, %c24], %120 {strides = array<i32>} : memref<2x8x32xf32, #tpu.memory_space<vmem>>, vector<2x8x8xf32>,
    %c0_54 = arith.constant 0 : index
    %c0_55 = arith.constant 0 : index
    %c0_56 = arith.constant 0 : index
    %122 = vector.load %arg23[%c0_54, %c0_55, %c0_56] : memref<2x8x32xf32, #tpu.memory_space<vmem>>, vector<2x8x32xf32>
    %123 = vector.shape_cast %122 : vector<2x8x32xf32> to vector<16x32xf32>
    %124 = arith.truncf %123 : vector<16x32xf32> to vector<16x32xbf16>
    %c0_57 = arith.constant 0 : index
    %c0_58 = arith.constant 0 : index
    %125 = vector.load %arg10[%c0_57, %c0_58] : memref<32x32xbf16, #tpu.memory_space<vmem>>, vector<32x32xbf16>
    %cst_59 = arith.constant dense<0.000000e+00> : vector<16x32xf32>
    %126 = tpu.matmul %124, %125, %cst_59 {dimension_numbers = #tpu.dot_dimension_numbers<[1], [0], [0], [1], [0, 0, 1, 1], [], []>} : vector<16x32xbf16>, vector<32x32xbf16>, vector<16x32xf32> -> vector<16x32xf32>
    %c0_60 = arith.constant 0 : index
    %c0_61 = arith.constant 0 : index
    %127 = vector.load %arg11[%c0_60, %c0_61] : memref<1x32xf32, #tpu.memory_space<vmem>>, vector<1x32xf32>
    %128 = vector.broadcast %127 : vector<1x32xf32> to vector<16x32xf32>
    %129 = arith.addf %126, %128 : vector<16x32xf32>
    %130 = arith.addf %1, %129 : vector<16x32xf32>
    %c0_62 = arith.constant 0 : index
    %c0_63 = arith.constant 0 : index
    %131 = vector.load %arg12[%c0_62, %c0_63] : memref<1x32xf32, #tpu.memory_space<vmem>>, vector<1x32xf32>
    %c0_64 = arith.constant 0 : index
    %c0_65 = arith.constant 0 : index
    %132 = vector.load %arg13[%c0_64, %c0_65] : memref<1x32xf32, #tpu.memory_space<vmem>>, vector<1x32xf32>
    %cst_66 = arith.constant dense<0.000000e+00> : vector<16xf32>
    %133 = vector.multi_reduction <add>, %130, %cst_66 [1] : vector<16x32xf32> to vector<16xf32>
    %134 = vector.shape_cast %133 : vector<16xf32> to vector<16x1xf32>
    %cst_67 = arith.constant 3.200000e+01 : f32
    %135 = vector.broadcast %cst_67 : f32 to vector<16x1xf32>
    %136 = arith.divf %134, %135 : vector<16x1xf32>
    %137 = vector.broadcast %136 : vector<16x1xf32> to vector<16x32xf32>
    %138 = arith.subf %130, %137 : vector<16x32xf32>
    %139 = arith.mulf %138, %138 : vector<16x32xf32>
    %cst_68 = arith.constant dense<0.000000e+00> : vector<16xf32>
    %140 = vector.multi_reduction <add>, %139, %cst_68 [1] : vector<16x32xf32> to vector<16xf32>
    %141 = vector.shape_cast %140 : vector<16xf32> to vector<16x1xf32>
    %cst_69 = arith.constant 3.200000e+01 : f32
    %142 = vector.broadcast %cst_69 : f32 to vector<16x1xf32>
    %143 = arith.divf %141, %142 : vector<16x1xf32>
    %cst_70 = arith.constant 9.99999974E-6 : f32
    %144 = vector.broadcast %cst_70 : f32 to vector<16x1xf32>
    %145 = arith.addf %143, %144 : vector<16x1xf32>
    %146 = math.rsqrt %145 : vector<16x1xf32>
    %147 = vector.broadcast %146 : vector<16x1xf32> to vector<16x32xf32>
    %148 = arith.mulf %138, %147 : vector<16x32xf32>
    %149 = vector.broadcast %131 : vector<1x32xf32> to vector<16x32xf32>
    %150 = arith.mulf %148, %149 : vector<16x32xf32>
    %151 = vector.broadcast %132 : vector<1x32xf32> to vector<16x32xf32>
    %152 = arith.addf %150, %151 : vector<16x32xf32>
    %153 = arith.truncf %152 : vector<16x32xf32> to vector<16x32xbf16>
    %c0_71 = arith.constant 0 : index
    %c0_72 = arith.constant 0 : index
    %154 = vector.load %arg14[%c0_71, %c0_72] : memref<32x64xbf16, #tpu.memory_space<vmem>>, vector<32x64xbf16>
    %cst_73 = arith.constant dense<0.000000e+00> : vector<16x64xf32>
    %155 = tpu.matmul %153, %154, %cst_73 {dimension_numbers = #tpu.dot_dimension_numbers<[1], [0], [0], [1], [0, 0, 1, 1], [], []>} : vector<16x32xbf16>, vector<32x64xbf16>, vector<16x64xf32> -> vector<16x64xf32>
    %c0_74 = arith.constant 0 : index
    %c0_75 = arith.constant 0 : index
    %156 = vector.load %arg15[%c0_74, %c0_75] : memref<1x64xf32, #tpu.memory_space<vmem>>, vector<1x64xf32>
    %157 = vector.broadcast %156 : vector<1x64xf32> to vector<16x64xf32>
    %158 = arith.addf %155, %157 : vector<16x64xf32>
    %cst_76 = arith.constant 5.000000e-01 : f32
    %159 = vector.broadcast %cst_76 : f32 to vector<16x64xf32>
    %160 = arith.mulf %159, %158 : vector<16x64xf32>
    %cst_77 = arith.constant 4.471500e-02 : f32
    %161 = vector.broadcast %cst_77 : f32 to vector<16x64xf32>
    %162 = arith.mulf %161, %158 : vector<16x64xf32>
    %163 = arith.mulf %162, %158 : vector<16x64xf32>
    %164 = arith.mulf %163, %158 : vector<16x64xf32>
    %165 = arith.addf %158, %164 : vector<16x64xf32>
    %cst_78 = arith.constant 0.797884583 : f32
    %166 = vector.broadcast %cst_78 : f32 to vector<16x64xf32>
    %167 = arith.mulf %166, %165 : vector<16x64xf32>
    %168 = math.tanh %167 : vector<16x64xf32>
    %cst_79 = arith.constant 1.000000e+00 : f32
    %169 = vector.broadcast %cst_79 : f32 to vector<16x64xf32>
    %170 = arith.addf %169, %168 : vector<16x64xf32>
    %171 = arith.mulf %160, %170 : vector<16x64xf32>
    %172 = arith.truncf %171 : vector<16x64xf32> to vector<16x64xbf16>
    %c0_80 = arith.constant 0 : index
    %c0_81 = arith.constant 0 : index
    %173 = vector.load %arg16[%c0_80, %c0_81] : memref<64x32xbf16, #tpu.memory_space<vmem>>, vector<64x32xbf16>
    %cst_82 = arith.constant dense<0.000000e+00> : vector<16x32xf32>
    %174 = tpu.matmul %172, %173, %cst_82 {dimension_numbers = #tpu.dot_dimension_numbers<[1], [0], [0], [1], [0, 0, 1, 1], [], []>} : vector<16x64xbf16>, vector<64x32xbf16>, vector<16x32xf32> -> vector<16x32xf32>
    %c0_83 = arith.constant 0 : index
    %c0_84 = arith.constant 0 : index
    %175 = vector.load %arg17[%c0_83, %c0_84] : memref<1x32xf32, #tpu.memory_space<vmem>>, vector<1x32xf32>
    %176 = vector.broadcast %175 : vector<1x32xf32> to vector<16x32xf32>
    %177 = arith.addf %174, %176 : vector<16x32xf32>
    %178 = arith.addf %130, %177 : vector<16x32xf32>
    %c0_85 = arith.constant 0 : index
    %c0_86 = arith.constant 0 : index
    %179 = vector.load %arg18[%c0_85, %c0_86] : memref<1x32xf32, #tpu.memory_space<vmem>>, vector<1x32xf32>
    %c0_87 = arith.constant 0 : index
    %c0_88 = arith.constant 0 : index
    %180 = vector.load %arg19[%c0_87, %c0_88] : memref<1x32xf32, #tpu.memory_space<vmem>>, vector<1x32xf32>
    %cst_89 = arith.constant dense<0.000000e+00> : vector<16xf32>
    %181 = vector.multi_reduction <add>, %178, %cst_89 [1] : vector<16x32xf32> to vector<16xf32>
    %182 = vector.shape_cast %181 : vector<16xf32> to vector<16x1xf32>
    %cst_90 = arith.constant 3.200000e+01 : f32
    %183 = vector.broadcast %cst_90 : f32 to vector<16x1xf32>
    %184 = arith.divf %182, %183 : vector<16x1xf32>
    %185 = vector.broadcast %184 : vector<16x1xf32> to vector<16x32xf32>
    %186 = arith.subf %178, %185 : vector<16x32xf32>
    %187 = arith.mulf %186, %186 : vector<16x32xf32>
    %cst_91 = arith.constant dense<0.000000e+00> : vector<16xf32>
    %188 = vector.multi_reduction <add>, %187, %cst_91 [1] : vector<16x32xf32> to vector<16xf32>
    %189 = vector.shape_cast %188 : vector<16xf32> to vector<16x1xf32>
    %cst_92 = arith.constant 3.200000e+01 : f32
    %190 = vector.broadcast %cst_92 : f32 to vector<16x1xf32>
    %191 = arith.divf %189, %190 : vector<16x1xf32>
    %cst_93 = arith.constant 9.99999974E-6 : f32
    %192 = vector.broadcast %cst_93 : f32 to vector<16x1xf32>
    %193 = arith.addf %191, %192 : vector<16x1xf32>
    %194 = math.rsqrt %193 : vector<16x1xf32>
    %195 = vector.broadcast %194 : vector<16x1xf32> to vector<16x32xf32>
    %196 = arith.mulf %186, %195 : vector<16x32xf32>
    %197 = vector.broadcast %179 : vector<1x32xf32> to vector<16x32xf32>
    %198 = arith.mulf %196, %197 : vector<16x32xf32>
    %199 = vector.broadcast %180 : vector<1x32xf32> to vector<16x32xf32>
    %200 = arith.addf %198, %199 : vector<16x32xf32>
    %c0_94 = arith.constant 0 : index
    %c0_95 = arith.constant 0 : index
    %201 = vector.load %arg20[%c0_94, %c0_95] : memref<1x32xf32, #tpu.memory_space<vmem>>, vector<1x32xf32>
    %c0_96 = arith.constant 0 : index
    %c0_97 = arith.constant 0 : index
    %202 = vector.load %arg21[%c0_96, %c0_97] : memref<1x32xf32, #tpu.memory_space<vmem>>, vector<1x32xf32>
    %cst_98 = arith.constant dense<0.000000e+00> : vector<16xf32>
    %203 = vector.multi_reduction <add>, %200, %cst_98 [1] : vector<16x32xf32> to vector<16xf32>
    %204 = vector.shape_cast %203 : vector<16xf32> to vector<16x1xf32>
    %cst_99 = arith.constant 3.200000e+01 : f32
    %205 = vector.broadcast %cst_99 : f32 to vector<16x1xf32>
    %206 = arith.divf %204, %205 : vector<16x1xf32>
    %207 = vector.broadcast %206 : vector<16x1xf32> to vector<16x32xf32>
    %208 = arith.subf %200, %207 : vector<16x32xf32>
    %209 = arith.mulf %208, %208 : vector<16x32xf32>
    %cst_100 = arith.constant dense<0.000000e+00> : vector<16xf32>
    %210 = vector.multi_reduction <add>, %209, %cst_100 [1] : vector<16x32xf32> to vector<16xf32>
    %211 = vector.shape_cast %210 : vector<16xf32> to vector<16x1xf32>
    %cst_101 = arith.constant 3.200000e+01 : f32
    %212 = vector.broadcast %cst_101 : f32 to vector<16x1xf32>
    %213 = arith.divf %211, %212 : vector<16x1xf32>
    %cst_102 = arith.constant 9.99999974E-6 : f32
    %214 = vector.broadcast %cst_102 : f32 to vector<16x1xf32>
    %215 = arith.addf %213, %214 : vector<16x1xf32>
    %216 = math.rsqrt %215 : vector<16x1xf32>
    %217 = vector.broadcast %216 : vector<16x1xf32> to vector<16x32xf32>
    %218 = arith.mulf %208, %217 : vector<16x32xf32>
    %219 = vector.broadcast %201 : vector<1x32xf32> to vector<16x32xf32>
    %220 = arith.mulf %218, %219 : vector<16x32xf32>
    %221 = vector.broadcast %202 : vector<1x32xf32> to vector<16x32xf32>
    %222 = arith.addf %220, %221 : vector<16x32xf32>
    %223 = vector.shape_cast %222 : vector<16x32xf32> to vector<2x8x32xf32>
    %c0_103 = arith.constant 0 : index
    %c0_104 = arith.constant 0 : index
    %c0_105 = arith.constant 0 : index
    %224 = vector.load %arg22[%c0_103, %c0_104, %c0_105] : memref<2x8x32xf32, #tpu.memory_space<vmem>>, vector<2x8x32xf32>
    tpu.vector_store %arg22[%c0_103, %c0_104, %c0_105], %223 {strides = array<i32>} : memref<2x8x32xf32, #tpu.memory_space<vmem>>, vector<2x8x32xf32>,
    return
  }
  func.func @transform_0(%arg0: i32) -> (i32, i32, i32) {
    %c0_i32 = arith.constant 0 : i32
    %c0_i32_0 = arith.constant 0 : i32
    %c0_i32_1 = arith.constant 0 : i32
    %c0_i32_2 = arith.constant 0 : i32
    return %c0_i32, %c0_i32_0, %c0_i32_1 : i32, i32, i32
  }
  func.func @transform_1(%arg0: i32) -> (i32, i32) {
    %c0_i32 = arith.constant 0 : i32
    %c0_i32_0 = arith.constant 0 : i32
    %c0_i32_1 = arith.constant 0 : i32
    return %c0_i32, %c0_i32_0 : i32, i32
  }
  func.func @transform_2(%arg0: i32) -> (i32, i32) {
    %c0_i32 = arith.constant 0 : i32
    %c0_i32_0 = arith.constant 0 : i32
    %c0_i32_1 = arith.constant 0 : i32
    return %c0_i32, %c0_i32_0 : i32, i32
  }
  func.func @transform_3(%arg0: i32) -> (i32, i32) {
    %c0_i32 = arith.constant 0 : i32
    %c0_i32_0 = arith.constant 0 : i32
    %c0_i32_1 = arith.constant 0 : i32
    return %c0_i32, %c0_i32_0 : i32, i32
  }
  func.func @transform_4(%arg0: i32) -> (i32, i32) {
    %c0_i32 = arith.constant 0 : i32
    %c0_i32_0 = arith.constant 0 : i32
    %c0_i32_1 = arith.constant 0 : i32
    return %c0_i32, %c0_i32_0 : i32, i32
  }
  func.func @transform_5(%arg0: i32) -> (i32, i32) {
    %c0_i32 = arith.constant 0 : i32
    %c0_i32_0 = arith.constant 0 : i32
    %c0_i32_1 = arith.constant 0 : i32
    return %c0_i32, %c0_i32_0 : i32, i32
  }
  func.func @transform_6(%arg0: i32) -> (i32, i32) {
    %c0_i32 = arith.constant 0 : i32
    %c0_i32_0 = arith.constant 0 : i32
    %c0_i32_1 = arith.constant 0 : i32
    return %c0_i32, %c0_i32_0 : i32, i32
  }
  func.func @transform_7(%arg0: i32) -> (i32, i32) {
    %c0_i32 = arith.constant 0 : i32
    %c0_i32_0 = arith.constant 0 : i32
    %c0_i32_1 = arith.constant 0 : i32
    return %c0_i32, %c0_i32_0 : i32, i32
  }
  func.func @transform_8(%arg0: i32) -> (i32, i32) {
    %c0_i32 = arith.constant 0 : i32
    %c0_i32_0 = arith.constant 0 : i32
    %c0_i32_1 = arith.constant 0 : i32
    return %c0_i32, %c0_i32_0 : i32, i32
  }
  func.func @transform_9(%arg0: i32) -> (i32, i32) {
    %c0_i32 = arith.constant 0 : i32
    %c0_i32_0 = arith.constant 0 : i32
    %c0_i32_1 = arith.constant 0 : i32
    return %c0_i32, %c0_i32_0 : i32, i32
  }
  func.func @transform_10(%arg0: i32) -> (i32, i32) {
    %c0_i32 = arith.constant 0 : i32
    %c0_i32_0 = arith.constant 0 : i32
    %c0_i32_1 = arith.constant 0 : i32
    return %c0_i32, %c0_i32_0 : i32, i32
  }
  func.func @transform_11(%arg0: i32) -> (i32, i32) {
    %c0_i32 = arith.constant 0 : i32
    %c0_i32_0 = arith.constant 0 : i32
    %c0_i32_1 = arith.constant 0 : i32
    return %c0_i32, %c0_i32_0 : i32, i32
  }
  func.func @transform_12(%arg0: i32) -> (i32, i32) {
    %c0_i32 = arith.constant 0 : i32
    %c0_i32_0 = arith.constant 0 : i32
    %c0_i32_1 = arith.constant 0 : i32
    return %c0_i32, %c0_i32_0 : i32, i32
  }
  func.func @transform_13(%arg0: i32) -> (i32, i32) {
    %c0_i32 = arith.constant 0 : i32
    %c0_i32_0 = arith.constant 0 : i32
    %c0_i32_1 = arith.constant 0 : i32
    return %c0_i32, %c0_i32_0 : i32, i32
  }
  func.func @transform_14(%arg0: i32) -> (i32, i32) {
    %c0_i32 = arith.constant 0 : i32
    %c0_i32_0 = arith.constant 0 : i32
    %c0_i32_1 = arith.constant 0 : i32
    return %c0_i32, %c0_i32_0 : i32, i32
  }
  func.func @transform_15(%arg0: i32) -> (i32, i32) {
    %c0_i32 = arith.constant 0 : i32
    %c0_i32_0 = arith.constant 0 : i32
    %c0_i32_1 = arith.constant 0 : i32
    return %c0_i32, %c0_i32_0 : i32, i32
  }
  func.func @transform_16(%arg0: i32) -> (i32, i32) {
    %c0_i32 = arith.constant 0 : i32
    %c0_i32_0 = arith.constant 0 : i32
    %c0_i32_1 = arith.constant 0 : i32
    return %c0_i32, %c0_i32_0 : i32, i32
  }
  func.func @transform_17(%arg0: i32) -> (i32, i32) {
    %c0_i32 = arith.constant 0 : i32
    %c0_i32_0 = arith.constant 0 : i32
    %c0_i32_1 = arith.constant 0 : i32
    return %c0_i32, %c0_i32_0 : i32, i32
  }
  func.func @transform_18(%arg0: i32) -> (i32, i32) {
    %c0_i32 = arith.constant 0 : i32
    %c0_i32_0 = arith.constant 0 : i32
    %c0_i32_1 = arith.constant 0 : i32
    return %c0_i32, %c0_i32_0 : i32, i32
  }
  func.func @transform_19(%arg0: i32) -> (i32, i32) {
    %c0_i32 = arith.constant 0 : i32
    %c0_i32_0 = arith.constant 0 : i32
    %c0_i32_1 = arith.constant 0 : i32
    return %c0_i32, %c0_i32_0 : i32, i32
  }
  func.func @transform_20(%arg0: i32) -> (i32, i32) {
    %c0_i32 = arith.constant 0 : i32
    %c0_i32_0 = arith.constant 0 : i32
    %c0_i32_1 = arith.constant 0 : i32
    return %c0_i32, %c0_i32_0 : i32, i32
  }
  func.func @transform_21(%arg0: i32) -> (i32, i32, i32) {
    %c0_i32 = arith.constant 0 : i32
    %c0_i32_0 = arith.constant 0 : i32
    %c0_i32_1 = arith.constant 0 : i32
    %c0_i32_2 = arith.constant 0 : i32
    return %c0_i32, %c0_i32_0, %c0_i32_1 : i32, i32, i32
  }
}

module attributes {stable_mosaic.version = 11 : i64} {
  func.func @_fused_layer_kernel(%arg0: i32, %arg1: memref<2x8x32xf32, #tpu.memory_space<vmem>>, %arg2: memref<8x32xf32, #tpu.memory_space<vmem>>, %arg3: memref<1x32xf32, #tpu.memory_space<vmem>>, %arg4: memref<1x32xf32, #tpu.memory_space<vmem>>, %arg5: memref<32x32xbf16, #tpu.memory_space<vmem>>, %arg6: memref<1x32xf32, #tpu.memory_space<vmem>>, %arg7: memref<32x32xbf16, #tpu.memory_space<vmem>>, %arg8: memref<1x32xf32, #tpu.memory_space<vmem>>, %arg9: memref<32x32xbf16, #tpu.memory_space<vmem>>, %arg10: memref<1x32xf32, #tpu.memory_space<vmem>>, %arg11: memref<32x32xbf16, #tpu.memory_space<vmem>>, %arg12: memref<1x32xf32, #tpu.memory_space<vmem>>, %arg13: memref<1x32xf32, #tpu.memory_space<vmem>>, %arg14: memref<1x32xf32, #tpu.memory_space<vmem>>, %arg15: memref<32x64xbf16, #tpu.memory_space<vmem>>, %arg16: memref<1x64xf32, #tpu.memory_space<vmem>>, %arg17: memref<64x32xbf16, #tpu.memory_space<vmem>>, %arg18: memref<1x32xf32, #tpu.memory_space<vmem>>, %arg19: memref<2x8x32xf32, #tpu.memory_space<vmem>>, %arg20: memref<2x8x32xf32, #tpu.memory_space<vmem>>) attributes {dimension_semantics = [#tpu.dimension_semantics<arbitrary>], iteration_bounds = array<i64: 1>, scalar_prefetch = 0 : i64, scratch_operands = 1 : i64, tpu.core_type = #tpu.core_type<tc>, window_params = [{pipeline_mode = #tpu.pipeline_mode<synchronous>, transform_indices = @transform_0, window_bounds = array<i64: 2, 8, 32>}, {pipeline_mode = #tpu.pipeline_mode<synchronous>, transform_indices = @transform_1, window_bounds = array<i64: 8, 32>}, {pipeline_mode = #tpu.pipeline_mode<synchronous>, transform_indices = @transform_2, window_bounds = array<i64: 1, 32>}, {pipeline_mode = #tpu.pipeline_mode<synchronous>, transform_indices = @transform_3, window_bounds = array<i64: 1, 32>}, {pipeline_mode = #tpu.pipeline_mode<synchronous>, transform_indices = @transform_4, window_bounds = array<i64: 32, 32>}, {pipeline_mode = #tpu.pipeline_mode<synchronous>, transform_indices = @transform_5, window_bounds = array<i64: 1, 32>}, {pipeline_mode = #tpu.pipeline_mode<synchronous>, transform_indices = @transform_6, window_bounds = array<i64: 32, 32>}, {pipeline_mode = #tpu.pipeline_mode<synchronous>, transform_indices = @transform_7, window_bounds = array<i64: 1, 32>}, {pipeline_mode = #tpu.pipeline_mode<synchronous>, transform_indices = @transform_8, window_bounds = array<i64: 32, 32>}, {pipeline_mode = #tpu.pipeline_mode<synchronous>, transform_indices = @transform_9, window_bounds = array<i64: 1, 32>}, {pipeline_mode = #tpu.pipeline_mode<synchronous>, transform_indices = @transform_10, window_bounds = array<i64: 32, 32>}, {pipeline_mode = #tpu.pipeline_mode<synchronous>, transform_indices = @transform_11, window_bounds = array<i64: 1, 32>}, {pipeline_mode = #tpu.pipeline_mode<synchronous>, transform_indices = @transform_12, window_bounds = array<i64: 1, 32>}, {pipeline_mode = #tpu.pipeline_mode<synchronous>, transform_indices = @transform_13, window_bounds = array<i64: 1, 32>}, {pipeline_mode = #tpu.pipeline_mode<synchronous>, transform_indices = @transform_14, window_bounds = array<i64: 32, 64>}, {pipeline_mode = #tpu.pipeline_mode<synchronous>, transform_indices = @transform_15, window_bounds = array<i64: 1, 64>}, {pipeline_mode = #tpu.pipeline_mode<synchronous>, transform_indices = @transform_16, window_bounds = array<i64: 64, 32>}, {pipeline_mode = #tpu.pipeline_mode<synchronous>, transform_indices = @transform_17, window_bounds = array<i64: 1, 32>}, {pipeline_mode = #tpu.pipeline_mode<synchronous>, transform_indices = @transform_18, window_bounds = array<i64: 2, 8, 32>}]} {
    %c0 = arith.constant 0 : index
    %c0_0 = arith.constant 0 : index
    %c0_1 = arith.constant 0 : index
    %0 = vector.load %arg1[%c0, %c0_0, %c0_1] : memref<2x8x32xf32, #tpu.memory_space<vmem>>, vector<2x8x32xf32>
    %c0_2 = arith.constant 0 : index
    %c0_3 = arith.constant 0 : index
    %1 = vector.load %arg2[%c0_2, %c0_3] : memref<8x32xf32, #tpu.memory_space<vmem>>, vector<8x32xf32>
    %2 = vector.shape_cast %1 : vector<8x32xf32> to vector<1x8x32xf32>
    %3 = vector.broadcast %2 : vector<1x8x32xf32> to vector<2x8x32xf32>
    %4 = arith.addf %0, %3 : vector<2x8x32xf32>
    %5 = vector.shape_cast %4 : vector<2x8x32xf32> to vector<16x32xf32>
    %c0_4 = arith.constant 0 : index
    %c0_5 = arith.constant 0 : index
    %6 = vector.load %arg3[%c0_4, %c0_5] : memref<1x32xf32, #tpu.memory_space<vmem>>, vector<1x32xf32>
    %c0_6 = arith.constant 0 : index
    %c0_7 = arith.constant 0 : index
    %7 = vector.load %arg4[%c0_6, %c0_7] : memref<1x32xf32, #tpu.memory_space<vmem>>, vector<1x32xf32>
    %cst = arith.constant dense<0.000000e+00> : vector<16xf32>
    %8 = vector.multi_reduction <add>, %5, %cst [1] : vector<16x32xf32> to vector<16xf32>
    %9 = vector.shape_cast %8 : vector<16xf32> to vector<16x1xf32>
    %cst_8 = arith.constant 3.200000e+01 : f32
    %10 = vector.broadcast %cst_8 : f32 to vector<16x1xf32>
    %11 = arith.divf %9, %10 : vector<16x1xf32>
    %12 = vector.broadcast %11 : vector<16x1xf32> to vector<16x32xf32>
    %13 = arith.subf %5, %12 : vector<16x32xf32>
    %14 = arith.mulf %13, %13 : vector<16x32xf32>
    %cst_9 = arith.constant dense<0.000000e+00> : vector<16xf32>
    %15 = vector.multi_reduction <add>, %14, %cst_9 [1] : vector<16x32xf32> to vector<16xf32>
    %16 = vector.shape_cast %15 : vector<16xf32> to vector<16x1xf32>
    %cst_10 = arith.constant 3.200000e+01 : f32
    %17 = vector.broadcast %cst_10 : f32 to vector<16x1xf32>
    %18 = arith.divf %16, %17 : vector<16x1xf32>
    %cst_11 = arith.constant 9.99999974E-6 : f32
    %19 = vector.broadcast %cst_11 : f32 to vector<16x1xf32>
    %20 = arith.addf %18, %19 : vector<16x1xf32>
    %21 = math.rsqrt %20 : vector<16x1xf32>
    %22 = vector.broadcast %21 : vector<16x1xf32> to vector<16x32xf32>
    %23 = arith.mulf %13, %22 : vector<16x32xf32>
    %24 = vector.broadcast %6 : vector<1x32xf32> to vector<16x32xf32>
    %25 = arith.mulf %23, %24 : vector<16x32xf32>
    %26 = vector.broadcast %7 : vector<1x32xf32> to vector<16x32xf32>
    %27 = arith.addf %25, %26 : vector<16x32xf32>
    %28 = arith.truncf %27 : vector<16x32xf32> to vector<16x32xbf16>
    %c0_12 = arith.constant 0 : index
    %c0_13 = arith.constant 0 : index
    %29 = vector.load %arg5[%c0_12, %c0_13] : memref<32x32xbf16, #tpu.memory_space<vmem>>, vector<32x32xbf16>
    %cst_14 = arith.constant dense<0.000000e+00> : vector<16x32xf32>
    %30 = tpu.matmul %28, %29, %cst_14 {dimension_numbers = #tpu.dot_dimension_numbers<[1], [0], [0], [1], [0, 0, 1, 1], [], []>} : vector<16x32xbf16>, vector<32x32xbf16>, vector<16x32xf32> -> vector<16x32xf32>
    %c0_15 = arith.constant 0 : index
    %c0_16 = arith.constant 0 : index
    %31 = vector.load %arg6[%c0_15, %c0_16] : memref<1x32xf32, #tpu.memory_space<vmem>>, vector<1x32xf32>
    %32 = vector.broadcast %31 : vector<1x32xf32> to vector<16x32xf32>
    %33 = arith.addf %30, %32 : vector<16x32xf32>
    %c0_17 = arith.constant 0 : index
    %c0_18 = arith.constant 0 : index
    %34 = vector.load %arg7[%c0_17, %c0_18] : memref<32x32xbf16, #tpu.memory_space<vmem>>, vector<32x32xbf16>
    %cst_19 = arith.constant dense<0.000000e+00> : vector<16x32xf32>
    %35 = tpu.matmul %28, %34, %cst_19 {dimension_numbers = #tpu.dot_dimension_numbers<[1], [0], [0], [1], [0, 0, 1, 1], [], []>} : vector<16x32xbf16>, vector<32x32xbf16>, vector<16x32xf32> -> vector<16x32xf32>
    %c0_20 = arith.constant 0 : index
    %c0_21 = arith.constant 0 : index
    %36 = vector.load %arg8[%c0_20, %c0_21] : memref<1x32xf32, #tpu.memory_space<vmem>>, vector<1x32xf32>
    %37 = vector.broadcast %36 : vector<1x32xf32> to vector<16x32xf32>
    %38 = arith.addf %35, %37 : vector<16x32xf32>
    %c0_22 = arith.constant 0 : index
    %c0_23 = arith.constant 0 : index
    %39 = vector.load %arg9[%c0_22, %c0_23] : memref<32x32xbf16, #tpu.memory_space<vmem>>, vector<32x32xbf16>
    %cst_24 = arith.constant dense<0.000000e+00> : vector<16x32xf32>
    %40 = tpu.matmul %28, %39, %cst_24 {dimension_numbers = #tpu.dot_dimension_numbers<[1], [0], [0], [1], [0, 0, 1, 1], [], []>} : vector<16x32xbf16>, vector<32x32xbf16>, vector<16x32xf32> -> vector<16x32xf32>
    %c0_25 = arith.constant 0 : index
    %c0_26 = arith.constant 0 : index
    %41 = vector.load %arg10[%c0_25, %c0_26] : memref<1x32xf32, #tpu.memory_space<vmem>>, vector<1x32xf32>
    %42 = vector.broadcast %41 : vector<1x32xf32> to vector<16x32xf32>
    %43 = arith.addf %40, %42 : vector<16x32xf32>
    %44 = vector.shape_cast %33 : vector<16x32xf32> to vector<2x8x32xf32>
    %45 = arith.truncf %44 : vector<2x8x32xf32> to vector<2x8x32xbf16>
    %46 = vector.shape_cast %38 : vector<16x32xf32> to vector<2x8x32xf32>
    %47 = arith.truncf %46 : vector<2x8x32xf32> to vector<2x8x32xbf16>
    %48 = vector.shape_cast %43 : vector<16x32xf32> to vector<2x8x32xf32>
    %49 = arith.truncf %48 : vector<2x8x32xf32> to vector<2x8x32xbf16>
    %50 = vector.extract_strided_slice %45 {offsets = [0, 0, 0], sizes = [2, 8, 8], strides = [1, 1, 1]} : vector<2x8x32xbf16> to vector<2x8x8xbf16>
    %51 = vector.extract_strided_slice %47 {offsets = [0, 0, 0], sizes = [2, 8, 8], strides = [1, 1, 1]} : vector<2x8x32xbf16> to vector<2x8x8xbf16>
    %52 = vector.extract_strided_slice %49 {offsets = [0, 0, 0], sizes = [2, 8, 8], strides = [1, 1, 1]} : vector<2x8x32xbf16> to vector<2x8x8xbf16>
    "tpu.trace_start"() <{level = 10 : i32, message = "bqd,bkd->bqk"}> : () -> ()
    %cst_27 = arith.constant dense<0.000000e+00> : vector<2x8x8xf32>
    %53 = tpu.matmul %50, %51, %cst_27 {dimension_numbers = #tpu.dot_dimension_numbers<[2], [2], [1], [1], [0, 0, 0, 1, 1, 1], [0], [0]>} : vector<2x8x8xbf16>, vector<2x8x8xbf16>, vector<2x8x8xf32> -> vector<2x8x8xf32>
    "tpu.trace_stop"() : () -> ()
    %cst_28 = arith.constant 0.353553385 : f32
    %54 = vector.broadcast %cst_28 : f32 to vector<2x8x8xf32>
    %55 = arith.mulf %53, %54 : vector<2x8x8xf32>
    %cst_29 = arith.constant dense<0xFF800000> : vector<2x8xf32>
    %56 = vector.multi_reduction <maximumf>, %55, %cst_29 [2] : vector<2x8x8xf32> to vector<2x8xf32>
    %57 = vector.shape_cast %56 : vector<2x8xf32> to vector<2x8x1xf32>
    %58 = vector.broadcast %57 : vector<2x8x1xf32> to vector<2x8x8xf32>
    %59 = arith.subf %55, %58 : vector<2x8x8xf32>
    %60 = math.exp %59 : vector<2x8x8xf32>
    %cst_30 = arith.constant dense<0.000000e+00> : vector<2x8xf32>
    %61 = vector.multi_reduction <add>, %60, %cst_30 [2] : vector<2x8x8xf32> to vector<2x8xf32>
    %62 = vector.shape_cast %61 : vector<2x8xf32> to vector<2x8x1xf32>
    %63 = tpu.reciprocal %62 {approx = true} : vector<2x8x1xf32> -> vector<2x8x1xf32>
    %64 = vector.broadcast %63 : vector<2x8x1xf32> to vector<2x8x8xf32>
    %65 = arith.mulf %60, %64 : vector<2x8x8xf32>
    %66 = arith.truncf %65 : vector<2x8x8xf32> to vector<2x8x8xbf16>
    "tpu.trace_start"() <{level = 10 : i32, message = "bqk,bkd->bqd"}> : () -> ()
    %cst_31 = arith.constant dense<0.000000e+00> : vector<2x8x8xf32>
    %67 = tpu.matmul %66, %52, %cst_31 {dimension_numbers = #tpu.dot_dimension_numbers<[2], [1], [1], [2], [0, 0, 0, 1, 1, 2], [0], [0]>} : vector<2x8x8xbf16>, vector<2x8x8xbf16>, vector<2x8x8xf32> -> vector<2x8x8xf32>
    "tpu.trace_stop"() : () -> ()
    %c0_32 = arith.constant 0 : index
    %c0_33 = arith.constant 0 : index
    %c0_34 = arith.constant 0 : index
    %68 = vector.load %arg20[%c0_32, %c0_33, %c0_34] : memref<2x8x32xf32, #tpu.memory_space<vmem>>, vector<2x8x8xf32>
    tpu.vector_store %arg20[%c0_32, %c0_33, %c0_34], %67 {strides = array<i32>} : memref<2x8x32xf32, #tpu.memory_space<vmem>>, vector<2x8x8xf32>,
    %69 = vector.extract_strided_slice %45 {offsets = [0, 0, 8], sizes = [2, 8, 8], strides = [1, 1, 1]} : vector<2x8x32xbf16> to vector<2x8x8xbf16>
    %70 = vector.extract_strided_slice %47 {offsets = [0, 0, 8], sizes = [2, 8, 8], strides = [1, 1, 1]} : vector<2x8x32xbf16> to vector<2x8x8xbf16>
    %71 = vector.extract_strided_slice %49 {offsets = [0, 0, 8], sizes = [2, 8, 8], strides = [1, 1, 1]} : vector<2x8x32xbf16> to vector<2x8x8xbf16>
    "tpu.trace_start"() <{level = 10 : i32, message = "bqd,bkd->bqk"}> : () -> ()
    %cst_35 = arith.constant dense<0.000000e+00> : vector<2x8x8xf32>
    %72 = tpu.matmul %69, %70, %cst_35 {dimension_numbers = #tpu.dot_dimension_numbers<[2], [2], [1], [1], [0, 0, 0, 1, 1, 1], [0], [0]>} : vector<2x8x8xbf16>, vector<2x8x8xbf16>, vector<2x8x8xf32> -> vector<2x8x8xf32>
    "tpu.trace_stop"() : () -> ()
    %cst_36 = arith.constant 0.353553385 : f32
    %73 = vector.broadcast %cst_36 : f32 to vector<2x8x8xf32>
    %74 = arith.mulf %72, %73 : vector<2x8x8xf32>
    %cst_37 = arith.constant dense<0xFF800000> : vector<2x8xf32>
    %75 = vector.multi_reduction <maximumf>, %74, %cst_37 [2] : vector<2x8x8xf32> to vector<2x8xf32>
    %76 = vector.shape_cast %75 : vector<2x8xf32> to vector<2x8x1xf32>
    %77 = vector.broadcast %76 : vector<2x8x1xf32> to vector<2x8x8xf32>
    %78 = arith.subf %74, %77 : vector<2x8x8xf32>
    %79 = math.exp %78 : vector<2x8x8xf32>
    %cst_38 = arith.constant dense<0.000000e+00> : vector<2x8xf32>
    %80 = vector.multi_reduction <add>, %79, %cst_38 [2] : vector<2x8x8xf32> to vector<2x8xf32>
    %81 = vector.shape_cast %80 : vector<2x8xf32> to vector<2x8x1xf32>
    %82 = tpu.reciprocal %81 {approx = true} : vector<2x8x1xf32> -> vector<2x8x1xf32>
    %83 = vector.broadcast %82 : vector<2x8x1xf32> to vector<2x8x8xf32>
    %84 = arith.mulf %79, %83 : vector<2x8x8xf32>
    %85 = arith.truncf %84 : vector<2x8x8xf32> to vector<2x8x8xbf16>
    "tpu.trace_start"() <{level = 10 : i32, message = "bqk,bkd->bqd"}> : () -> ()
    %cst_39 = arith.constant dense<0.000000e+00> : vector<2x8x8xf32>
    %86 = tpu.matmul %85, %71, %cst_39 {dimension_numbers = #tpu.dot_dimension_numbers<[2], [1], [1], [2], [0, 0, 0, 1, 1, 2], [0], [0]>} : vector<2x8x8xbf16>, vector<2x8x8xbf16>, vector<2x8x8xf32> -> vector<2x8x8xf32>
    "tpu.trace_stop"() : () -> ()
    %c0_40 = arith.constant 0 : index
    %c0_41 = arith.constant 0 : index
    %c8 = arith.constant 8 : index
    %87 = vector.load %arg20[%c0_40, %c0_41, %c8] : memref<2x8x32xf32, #tpu.memory_space<vmem>>, vector<2x8x8xf32>
    tpu.vector_store %arg20[%c0_40, %c0_41, %c8], %86 {strides = array<i32>} : memref<2x8x32xf32, #tpu.memory_space<vmem>>, vector<2x8x8xf32>,
    %88 = vector.extract_strided_slice %45 {offsets = [0, 0, 16], sizes = [2, 8, 8], strides = [1, 1, 1]} : vector<2x8x32xbf16> to vector<2x8x8xbf16>
    %89 = vector.extract_strided_slice %47 {offsets = [0, 0, 16], sizes = [2, 8, 8], strides = [1, 1, 1]} : vector<2x8x32xbf16> to vector<2x8x8xbf16>
    %90 = vector.extract_strided_slice %49 {offsets = [0, 0, 16], sizes = [2, 8, 8], strides = [1, 1, 1]} : vector<2x8x32xbf16> to vector<2x8x8xbf16>
    "tpu.trace_start"() <{level = 10 : i32, message = "bqd,bkd->bqk"}> : () -> ()
    %cst_42 = arith.constant dense<0.000000e+00> : vector<2x8x8xf32>
    %91 = tpu.matmul %88, %89, %cst_42 {dimension_numbers = #tpu.dot_dimension_numbers<[2], [2], [1], [1], [0, 0, 0, 1, 1, 1], [0], [0]>} : vector<2x8x8xbf16>, vector<2x8x8xbf16>, vector<2x8x8xf32> -> vector<2x8x8xf32>
    "tpu.trace_stop"() : () -> ()
    %cst_43 = arith.constant 0.353553385 : f32
    %92 = vector.broadcast %cst_43 : f32 to vector<2x8x8xf32>
    %93 = arith.mulf %91, %92 : vector<2x8x8xf32>
    %cst_44 = arith.constant dense<0xFF800000> : vector<2x8xf32>
    %94 = vector.multi_reduction <maximumf>, %93, %cst_44 [2] : vector<2x8x8xf32> to vector<2x8xf32>
    %95 = vector.shape_cast %94 : vector<2x8xf32> to vector<2x8x1xf32>
    %96 = vector.broadcast %95 : vector<2x8x1xf32> to vector<2x8x8xf32>
    %97 = arith.subf %93, %96 : vector<2x8x8xf32>
    %98 = math.exp %97 : vector<2x8x8xf32>
    %cst_45 = arith.constant dense<0.000000e+00> : vector<2x8xf32>
    %99 = vector.multi_reduction <add>, %98, %cst_45 [2] : vector<2x8x8xf32> to vector<2x8xf32>
    %100 = vector.shape_cast %99 : vector<2x8xf32> to vector<2x8x1xf32>
    %101 = tpu.reciprocal %100 {approx = true} : vector<2x8x1xf32> -> vector<2x8x1xf32>
    %102 = vector.broadcast %101 : vector<2x8x1xf32> to vector<2x8x8xf32>
    %103 = arith.mulf %98, %102 : vector<2x8x8xf32>
    %104 = arith.truncf %103 : vector<2x8x8xf32> to vector<2x8x8xbf16>
    "tpu.trace_start"() <{level = 10 : i32, message = "bqk,bkd->bqd"}> : () -> ()
    %cst_46 = arith.constant dense<0.000000e+00> : vector<2x8x8xf32>
    %105 = tpu.matmul %104, %90, %cst_46 {dimension_numbers = #tpu.dot_dimension_numbers<[2], [1], [1], [2], [0, 0, 0, 1, 1, 2], [0], [0]>} : vector<2x8x8xbf16>, vector<2x8x8xbf16>, vector<2x8x8xf32> -> vector<2x8x8xf32>
    "tpu.trace_stop"() : () -> ()
    %c0_47 = arith.constant 0 : index
    %c0_48 = arith.constant 0 : index
    %c16 = arith.constant 16 : index
    %106 = vector.load %arg20[%c0_47, %c0_48, %c16] : memref<2x8x32xf32, #tpu.memory_space<vmem>>, vector<2x8x8xf32>
    tpu.vector_store %arg20[%c0_47, %c0_48, %c16], %105 {strides = array<i32>} : memref<2x8x32xf32, #tpu.memory_space<vmem>>, vector<2x8x8xf32>,
    %107 = vector.extract_strided_slice %45 {offsets = [0, 0, 24], sizes = [2, 8, 8], strides = [1, 1, 1]} : vector<2x8x32xbf16> to vector<2x8x8xbf16>
    %108 = vector.extract_strided_slice %47 {offsets = [0, 0, 24], sizes = [2, 8, 8], strides = [1, 1, 1]} : vector<2x8x32xbf16> to vector<2x8x8xbf16>
    %109 = vector.extract_strided_slice %49 {offsets = [0, 0, 24], sizes = [2, 8, 8], strides = [1, 1, 1]} : vector<2x8x32xbf16> to vector<2x8x8xbf16>
    "tpu.trace_start"() <{level = 10 : i32, message = "bqd,bkd->bqk"}> : () -> ()
    %cst_49 = arith.constant dense<0.000000e+00> : vector<2x8x8xf32>
    %110 = tpu.matmul %107, %108, %cst_49 {dimension_numbers = #tpu.dot_dimension_numbers<[2], [2], [1], [1], [0, 0, 0, 1, 1, 1], [0], [0]>} : vector<2x8x8xbf16>, vector<2x8x8xbf16>, vector<2x8x8xf32> -> vector<2x8x8xf32>
    "tpu.trace_stop"() : () -> ()
    %cst_50 = arith.constant 0.353553385 : f32
    %111 = vector.broadcast %cst_50 : f32 to vector<2x8x8xf32>
    %112 = arith.mulf %110, %111 : vector<2x8x8xf32>
    %cst_51 = arith.constant dense<0xFF800000> : vector<2x8xf32>
    %113 = vector.multi_reduction <maximumf>, %112, %cst_51 [2] : vector<2x8x8xf32> to vector<2x8xf32>
    %114 = vector.shape_cast %113 : vector<2x8xf32> to vector<2x8x1xf32>
    %115 = vector.broadcast %114 : vector<2x8x1xf32> to vector<2x8x8xf32>
    %116 = arith.subf %112, %115 : vector<2x8x8xf32>
    %117 = math.exp %116 : vector<2x8x8xf32>
    %cst_52 = arith.constant dense<0.000000e+00> : vector<2x8xf32>
    %118 = vector.multi_reduction <add>, %117, %cst_52 [2] : vector<2x8x8xf32> to vector<2x8xf32>
    %119 = vector.shape_cast %118 : vector<2x8xf32> to vector<2x8x1xf32>
    %120 = tpu.reciprocal %119 {approx = true} : vector<2x8x1xf32> -> vector<2x8x1xf32>
    %121 = vector.broadcast %120 : vector<2x8x1xf32> to vector<2x8x8xf32>
    %122 = arith.mulf %117, %121 : vector<2x8x8xf32>
    %123 = arith.truncf %122 : vector<2x8x8xf32> to vector<2x8x8xbf16>
    "tpu.trace_start"() <{level = 10 : i32, message = "bqk,bkd->bqd"}> : () -> ()
    %cst_53 = arith.constant dense<0.000000e+00> : vector<2x8x8xf32>
    %124 = tpu.matmul %123, %109, %cst_53 {dimension_numbers = #tpu.dot_dimension_numbers<[2], [1], [1], [2], [0, 0, 0, 1, 1, 2], [0], [0]>} : vector<2x8x8xbf16>, vector<2x8x8xbf16>, vector<2x8x8xf32> -> vector<2x8x8xf32>
    "tpu.trace_stop"() : () -> ()
    %c0_54 = arith.constant 0 : index
    %c0_55 = arith.constant 0 : index
    %c24 = arith.constant 24 : index
    %125 = vector.load %arg20[%c0_54, %c0_55, %c24] : memref<2x8x32xf32, #tpu.memory_space<vmem>>, vector<2x8x8xf32>
    tpu.vector_store %arg20[%c0_54, %c0_55, %c24], %124 {strides = array<i32>} : memref<2x8x32xf32, #tpu.memory_space<vmem>>, vector<2x8x8xf32>,
    %c0_56 = arith.constant 0 : index
    %c0_57 = arith.constant 0 : index
    %c0_58 = arith.constant 0 : index
    %126 = vector.load %arg20[%c0_56, %c0_57, %c0_58] : memref<2x8x32xf32, #tpu.memory_space<vmem>>, vector<2x8x32xf32>
    %127 = vector.shape_cast %126 : vector<2x8x32xf32> to vector<16x32xf32>
    %128 = arith.truncf %127 : vector<16x32xf32> to vector<16x32xbf16>
    %c0_59 = arith.constant 0 : index
    %c0_60 = arith.constant 0 : index
    %129 = vector.load %arg11[%c0_59, %c0_60] : memref<32x32xbf16, #tpu.memory_space<vmem>>, vector<32x32xbf16>
    %cst_61 = arith.constant dense<0.000000e+00> : vector<16x32xf32>
    %130 = tpu.matmul %128, %129, %cst_61 {dimension_numbers = #tpu.dot_dimension_numbers<[1], [0], [0], [1], [0, 0, 1, 1], [], []>} : vector<16x32xbf16>, vector<32x32xbf16>, vector<16x32xf32> -> vector<16x32xf32>
    %c0_62 = arith.constant 0 : index
    %c0_63 = arith.constant 0 : index
    %131 = vector.load %arg12[%c0_62, %c0_63] : memref<1x32xf32, #tpu.memory_space<vmem>>, vector<1x32xf32>
    %132 = vector.broadcast %131 : vector<1x32xf32> to vector<16x32xf32>
    %133 = arith.addf %130, %132 : vector<16x32xf32>
    %134 = arith.addf %5, %133 : vector<16x32xf32>
    %c0_64 = arith.constant 0 : index
    %c0_65 = arith.constant 0 : index
    %135 = vector.load %arg13[%c0_64, %c0_65] : memref<1x32xf32, #tpu.memory_space<vmem>>, vector<1x32xf32>
    %c0_66 = arith.constant 0 : index
    %c0_67 = arith.constant 0 : index
    %136 = vector.load %arg14[%c0_66, %c0_67] : memref<1x32xf32, #tpu.memory_space<vmem>>, vector<1x32xf32>
    %cst_68 = arith.constant dense<0.000000e+00> : vector<16xf32>
    %137 = vector.multi_reduction <add>, %134, %cst_68 [1] : vector<16x32xf32> to vector<16xf32>
    %138 = vector.shape_cast %137 : vector<16xf32> to vector<16x1xf32>
    %cst_69 = arith.constant 3.200000e+01 : f32
    %139 = vector.broadcast %cst_69 : f32 to vector<16x1xf32>
    %140 = arith.divf %138, %139 : vector<16x1xf32>
    %141 = vector.broadcast %140 : vector<16x1xf32> to vector<16x32xf32>
    %142 = arith.subf %134, %141 : vector<16x32xf32>
    %143 = arith.mulf %142, %142 : vector<16x32xf32>
    %cst_70 = arith.constant dense<0.000000e+00> : vector<16xf32>
    %144 = vector.multi_reduction <add>, %143, %cst_70 [1] : vector<16x32xf32> to vector<16xf32>
    %145 = vector.shape_cast %144 : vector<16xf32> to vector<16x1xf32>
    %cst_71 = arith.constant 3.200000e+01 : f32
    %146 = vector.broadcast %cst_71 : f32 to vector<16x1xf32>
    %147 = arith.divf %145, %146 : vector<16x1xf32>
    %cst_72 = arith.constant 9.99999974E-6 : f32
    %148 = vector.broadcast %cst_72 : f32 to vector<16x1xf32>
    %149 = arith.addf %147, %148 : vector<16x1xf32>
    %150 = math.rsqrt %149 : vector<16x1xf32>
    %151 = vector.broadcast %150 : vector<16x1xf32> to vector<16x32xf32>
    %152 = arith.mulf %142, %151 : vector<16x32xf32>
    %153 = vector.broadcast %135 : vector<1x32xf32> to vector<16x32xf32>
    %154 = arith.mulf %152, %153 : vector<16x32xf32>
    %155 = vector.broadcast %136 : vector<1x32xf32> to vector<16x32xf32>
    %156 = arith.addf %154, %155 : vector<16x32xf32>
    %157 = arith.truncf %156 : vector<16x32xf32> to vector<16x32xbf16>
    %c0_73 = arith.constant 0 : index
    %c0_74 = arith.constant 0 : index
    %158 = vector.load %arg15[%c0_73, %c0_74] : memref<32x64xbf16, #tpu.memory_space<vmem>>, vector<32x64xbf16>
    %cst_75 = arith.constant dense<0.000000e+00> : vector<16x64xf32>
    %159 = tpu.matmul %157, %158, %cst_75 {dimension_numbers = #tpu.dot_dimension_numbers<[1], [0], [0], [1], [0, 0, 1, 1], [], []>} : vector<16x32xbf16>, vector<32x64xbf16>, vector<16x64xf32> -> vector<16x64xf32>
    %c0_76 = arith.constant 0 : index
    %c0_77 = arith.constant 0 : index
    %160 = vector.load %arg16[%c0_76, %c0_77] : memref<1x64xf32, #tpu.memory_space<vmem>>, vector<1x64xf32>
    %161 = vector.broadcast %160 : vector<1x64xf32> to vector<16x64xf32>
    %162 = arith.addf %159, %161 : vector<16x64xf32>
    %cst_78 = arith.constant 5.000000e-01 : f32
    %163 = vector.broadcast %cst_78 : f32 to vector<16x64xf32>
    %164 = arith.mulf %163, %162 : vector<16x64xf32>
    %cst_79 = arith.constant 4.471500e-02 : f32
    %165 = vector.broadcast %cst_79 : f32 to vector<16x64xf32>
    %166 = arith.mulf %165, %162 : vector<16x64xf32>
    %167 = arith.mulf %166, %162 : vector<16x64xf32>
    %168 = arith.mulf %167, %162 : vector<16x64xf32>
    %169 = arith.addf %162, %168 : vector<16x64xf32>
    %cst_80 = arith.constant 0.797884583 : f32
    %170 = vector.broadcast %cst_80 : f32 to vector<16x64xf32>
    %171 = arith.mulf %170, %169 : vector<16x64xf32>
    %172 = math.tanh %171 : vector<16x64xf32>
    %cst_81 = arith.constant 1.000000e+00 : f32
    %173 = vector.broadcast %cst_81 : f32 to vector<16x64xf32>
    %174 = arith.addf %173, %172 : vector<16x64xf32>
    %175 = arith.mulf %164, %174 : vector<16x64xf32>
    %176 = arith.truncf %175 : vector<16x64xf32> to vector<16x64xbf16>
    %c0_82 = arith.constant 0 : index
    %c0_83 = arith.constant 0 : index
    %177 = vector.load %arg17[%c0_82, %c0_83] : memref<64x32xbf16, #tpu.memory_space<vmem>>, vector<64x32xbf16>
    %cst_84 = arith.constant dense<0.000000e+00> : vector<16x32xf32>
    %178 = tpu.matmul %176, %177, %cst_84 {dimension_numbers = #tpu.dot_dimension_numbers<[1], [0], [0], [1], [0, 0, 1, 1], [], []>} : vector<16x64xbf16>, vector<64x32xbf16>, vector<16x32xf32> -> vector<16x32xf32>
    %c0_85 = arith.constant 0 : index
    %c0_86 = arith.constant 0 : index
    %179 = vector.load %arg18[%c0_85, %c0_86] : memref<1x32xf32, #tpu.memory_space<vmem>>, vector<1x32xf32>
    %180 = vector.broadcast %179 : vector<1x32xf32> to vector<16x32xf32>
    %181 = arith.addf %178, %180 : vector<16x32xf32>
    %182 = arith.addf %134, %181 : vector<16x32xf32>
    %183 = vector.shape_cast %182 : vector<16x32xf32> to vector<2x8x32xf32>
    %c0_87 = arith.constant 0 : index
    %c0_88 = arith.constant 0 : index
    %c0_89 = arith.constant 0 : index
    %184 = vector.load %arg19[%c0_87, %c0_88, %c0_89] : memref<2x8x32xf32, #tpu.memory_space<vmem>>, vector<2x8x32xf32>
    tpu.vector_store %arg19[%c0_87, %c0_88, %c0_89], %183 {strides = array<i32>} : memref<2x8x32xf32, #tpu.memory_space<vmem>>, vector<2x8x32xf32>,
    return
  }
  func.func @transform_0(%arg0: i32) -> (i32, i32, i32) {
    %c0_i32 = arith.constant 0 : i32
    %c0_i32_0 = arith.constant 0 : i32
    %c0_i32_1 = arith.constant 0 : i32
    %c0_i32_2 = arith.constant 0 : i32
    return %c0_i32, %c0_i32_0, %c0_i32_1 : i32, i32, i32
  }
  func.func @transform_1(%arg0: i32) -> (i32, i32) {
    %c0_i32 = arith.constant 0 : i32
    %c0_i32_0 = arith.constant 0 : i32
    %c0_i32_1 = arith.constant 0 : i32
    return %c0_i32, %c0_i32_0 : i32, i32
  }
  func.func @transform_2(%arg0: i32) -> (i32, i32) {
    %c0_i32 = arith.constant 0 : i32
    %c0_i32_0 = arith.constant 0 : i32
    %c0_i32_1 = arith.constant 0 : i32
    return %c0_i32, %c0_i32_0 : i32, i32
  }
  func.func @transform_3(%arg0: i32) -> (i32, i32) {
    %c0_i32 = arith.constant 0 : i32
    %c0_i32_0 = arith.constant 0 : i32
    %c0_i32_1 = arith.constant 0 : i32
    return %c0_i32, %c0_i32_0 : i32, i32
  }
  func.func @transform_4(%arg0: i32) -> (i32, i32) {
    %c0_i32 = arith.constant 0 : i32
    %c0_i32_0 = arith.constant 0 : i32
    %c0_i32_1 = arith.constant 0 : i32
    return %c0_i32, %c0_i32_0 : i32, i32
  }
  func.func @transform_5(%arg0: i32) -> (i32, i32) {
    %c0_i32 = arith.constant 0 : i32
    %c0_i32_0 = arith.constant 0 : i32
    %c0_i32_1 = arith.constant 0 : i32
    return %c0_i32, %c0_i32_0 : i32, i32
  }
  func.func @transform_6(%arg0: i32) -> (i32, i32) {
    %c0_i32 = arith.constant 0 : i32
    %c0_i32_0 = arith.constant 0 : i32
    %c0_i32_1 = arith.constant 0 : i32
    return %c0_i32, %c0_i32_0 : i32, i32
  }
  func.func @transform_7(%arg0: i32) -> (i32, i32) {
    %c0_i32 = arith.constant 0 : i32
    %c0_i32_0 = arith.constant 0 : i32
    %c0_i32_1 = arith.constant 0 : i32
    return %c0_i32, %c0_i32_0 : i32, i32
  }
  func.func @transform_8(%arg0: i32) -> (i32, i32) {
    %c0_i32 = arith.constant 0 : i32
    %c0_i32_0 = arith.constant 0 : i32
    %c0_i32_1 = arith.constant 0 : i32
    return %c0_i32, %c0_i32_0 : i32, i32
  }
  func.func @transform_9(%arg0: i32) -> (i32, i32) {
    %c0_i32 = arith.constant 0 : i32
    %c0_i32_0 = arith.constant 0 : i32
    %c0_i32_1 = arith.constant 0 : i32
    return %c0_i32, %c0_i32_0 : i32, i32
  }
  func.func @transform_10(%arg0: i32) -> (i32, i32) {
    %c0_i32 = arith.constant 0 : i32
    %c0_i32_0 = arith.constant 0 : i32
    %c0_i32_1 = arith.constant 0 : i32
    return %c0_i32, %c0_i32_0 : i32, i32
  }
  func.func @transform_11(%arg0: i32) -> (i32, i32) {
    %c0_i32 = arith.constant 0 : i32
    %c0_i32_0 = arith.constant 0 : i32
    %c0_i32_1 = arith.constant 0 : i32
    return %c0_i32, %c0_i32_0 : i32, i32
  }
  func.func @transform_12(%arg0: i32) -> (i32, i32) {
    %c0_i32 = arith.constant 0 : i32
    %c0_i32_0 = arith.constant 0 : i32
    %c0_i32_1 = arith.constant 0 : i32
    return %c0_i32, %c0_i32_0 : i32, i32
  }
  func.func @transform_13(%arg0: i32) -> (i32, i32) {
    %c0_i32 = arith.constant 0 : i32
    %c0_i32_0 = arith.constant 0 : i32
    %c0_i32_1 = arith.constant 0 : i32
    return %c0_i32, %c0_i32_0 : i32, i32
  }
  func.func @transform_14(%arg0: i32) -> (i32, i32) {
    %c0_i32 = arith.constant 0 : i32
    %c0_i32_0 = arith.constant 0 : i32
    %c0_i32_1 = arith.constant 0 : i32
    return %c0_i32, %c0_i32_0 : i32, i32
  }
  func.func @transform_15(%arg0: i32) -> (i32, i32) {
    %c0_i32 = arith.constant 0 : i32
    %c0_i32_0 = arith.constant 0 : i32
    %c0_i32_1 = arith.constant 0 : i32
    return %c0_i32, %c0_i32_0 : i32, i32
  }
  func.func @transform_16(%arg0: i32) -> (i32, i32) {
    %c0_i32 = arith.constant 0 : i32
    %c0_i32_0 = arith.constant 0 : i32
    %c0_i32_1 = arith.constant 0 : i32
    return %c0_i32, %c0_i32_0 : i32, i32
  }
  func.func @transform_17(%arg0: i32) -> (i32, i32) {
    %c0_i32 = arith.constant 0 : i32
    %c0_i32_0 = arith.constant 0 : i32
    %c0_i32_1 = arith.constant 0 : i32
    return %c0_i32, %c0_i32_0 : i32, i32
  }
  func.func @transform_18(%arg0: i32) -> (i32, i32, i32) {
    %c0_i32 = arith.constant 0 : i32
    %c0_i32_0 = arith.constant 0 : i32
    %c0_i32_1 = arith.constant 0 : i32
    %c0_i32_2 = arith.constant 0 : i32
    return %c0_i32, %c0_i32_0, %c0_i32_1 : i32, i32, i32
  }
}

</mosaic_0001>

<bundles_post_ra>
// kernel: classic_model_forward.3
= control target key start
LH: loop header
LB: loop body
LE: loop exit
PB: predicated region body
PF: predicated region fallthrough
CT: control target
= control target key end

     0   :  { %s2490_s0 = inlined_call_operand.hbm [shape: f32[2,8,32], index: 0, kind: input, shape index: {}, may-alias: {0,21}]   ;;  %s2491_s1 = inlined_call_operand.vmem [shape: f32[1,32], index: 1, kind: input, shape index: {}]   ;;  %s2492_s2 = inlined_call_operand.vmem [shape: f32[1,32], index: 2, kind: input, shape index: {}]   ;;  %s2493_s3 = inlined_call_operand.vmem [shape: bf16[32,32], index: 3, kind: input, shape index: {}]   ;;  %s2494_s4 = inlined_call_operand.vmem [shape: f32[1,32], index: 4, kind: input, shape index: {}]   ;;  %s2495_s5 = inlined_call_operand.vmem [shape: bf16[32,32], index: 5, kind: input, shape index: {}]   ;;  %s2496_s6 = inlined_call_operand.vmem [shape: f32[1,32], index: 6, kind: input, shape index: {}]   ;;  %s2497_s7 = inlined_call_operand.vmem [shape: bf16[32,32], index: 7, kind: input, shape index: {}]   ;;  %s2498_s8 = inlined_call_operand.vmem [shape: f32[1,32], index: 8, kind: input, shape index: {}]   ;;  %s2499_s9 = inlined_call_operand.vmem [shape: bf16[32,32], index: 9, kind: input, shape index: {}]   ;;  %s2500_s10 = inlined_call_operand.vmem [shape: f32[1,32], index: 10, kind: input, shape index: {}]   ;;  %s2501_s11 = inlined_call_operand.vmem [shape: f32[1,32], index: 11, kind: input, shape index: {}]   ;;  %s2502_s12 = inlined_call_operand.vmem [shape: f32[1,32], index: 12, kind: input, shape index: {}]   ;;  %s2503_s13 = inlined_call_operand.vmem [shape: bf16[32,64], index: 13, kind: input, shape index: {}]   ;;  %s2504_s14 = inlined_call_operand.vmem [shape: f32[1,64], index: 14, kind: input, shape index: {}]   ;;  %s2505_s15 = inlined_call_operand.vmem [shape: bf16[64,32], index: 15, kind: input, shape index: {}]   ;;  %s2506_s16 = inlined_call_operand.vmem [shape: f32[1,32], index: 16, kind: input, shape index: {}]   ;;  %s2507_s17 = inlined_call_operand.vmem [shape: f32[1,32], index: 17, kind: input, shape index: {}]   ;;  %s2508_s18 = inlined_call_operand.vmem [shape: f32[1,32], index: 18, kind: input, shape index: {}]   ;;  %s2509_s19 = inlined_call_operand.vmem [shape: f32[1,32], index: 19, kind: input, shape index: {}]   ;;  %s2510_s20 = inlined_call_operand.vmem [shape: f32[1,32], index: 20, kind: input, shape index: {}]   ;;  %s2511_s21 = inlined_call_operand.hbm [shape: f32[2,8,32], index: 21, kind: output, shape index: {}, may-alias: {0,21}]  }
   0x1   :  { %2515 = sst [smem:[#allocation9_spill]] %s2490_s0 }
   0x2   :  { %2516 = sst [smem:[#allocation10_spill]] %s2491_s1 }
   0x3   :  { %2517 = sst [smem:[#allocation11_spill]] %s2492_s2 }
   0x4   :  { %2518 = sst [smem:[#allocation12_spill]] %s2493_s3 }
   0x5   :  { %2519 = sst [smem:[#allocation13_spill]] %s2494_s4 }
   0x6   :  { %2520 = sst [smem:[#allocation14_spill]] %s2495_s5 }
   0x7   :  { %26 = vsyncpa [#allocation4], 0 }
   0x8   :  { %27 = vsyncpa [#allocation5], 0  ;;  %s2024_s2 = smov [#allocation3]   ;;  %s2521_s3 = sld [smem:[#allocation9_spill]] }
   0x9   :  { %s33_s25 = sshll.u32 %s2024_s2, 4  ;;  %s34_s25 = int_to_ptr.vmem [resolvable:$true] %s33_s25 }
   0xe   :  { %s1976_s28 = scalar_lea.hbm %s2521_s3, 256 }
   0xf   :  { %p1977_p0 = scmp.ne.s32.totalorder %s2521_s3, %s1976_s28  ;;  %p1980_p1 = scmp.lt.u32.totalorder %s1976_s28, %s2521_s3 }
  0x11   :  { %p1982_p2 = pnand %p1980_p1, %p1977_p0 }
  0x13   :  { %1985 = shalt.err (!%p1982_p2)
}
  0x14   :  { %s1986_s5 = scalar_lea.vmem %s34_s25, 256  ;;  %p1991_p4 = scmp.lt.s32.totalorder %s34_s25, %s34_s25 }
  0x15   :  { %p1987_p3 = scmp.ne.s32.totalorder %s34_s25, %s1986_s5  ;;  %p1992_p5 = scmp.lt.s32.totalorder %s1986_s5, %s1986_s5 }
  0x17   :  { %p1993_p6 = por %p1992_p5, %p1991_p4 }
  0x19   :  { %p1994_p7 = pnand %p1993_p6, %p1987_p3 }
  0x1b   :  { %1997 = shalt.err (!%p1994_p7)
}
  0x1c   :  { %s2025_s22 = smov 128   ;;  %s2026_s23 = smov 8  }
  0x1d   :  { %39 = dma.hbm_to_vmem [thread:$0]  %s2521_s3, 256, %s34_s25, [#allocation4], %s2025_s22, %s2025_s22, %s2026_s23  }
  0x1e   :  { %2020 = dma.done.wait [#allocation4], 256  }
  0x1f   :  { %2021 = vsyncadd [#allocation4], 4294967040  ;;  %vm88_vm0 = vcmask 261120   ;;  %v2160_v0 = vld [vmem:[#allocation3] sm:$0xff]  ;;  %v2162_v1 = vld [vmem:[#allocation3 + $0x8] sm:$0xff]  ;;  %s2522_s26 = sld [smem:[#allocation12_spill]] }
  0x20   :  { %v89_v2 = vsel %vm88_vm0, %v2160_v0, 0.0  ;;  %v92_v3 = vsel %vm88_vm0, %v2162_v1, 0.0  ;;  %s2523_s28 = sld [smem:[#allocation14_spill]]  ;;  %v2027_v16 = vmov 0.0   ;;  %vm2028_vm1 = vmmov 0   ;;  %s2524_s24 = sld [smem:[#allocation10_spill]] }
  0x21   :  { %90 = vadd.xlane.f32.xlu0 %v89_v2  ;;  %1751 = vmatprep.subr.bf16.mxu0 %v2027_v16  ;;  %v1914_v35 = vld [vmem:[%s2497_s7] sm:$0xff]   ;;  %v1915_v37 = vld [vmem:[%s2497_s7 + $0x8] sm:$0xff]   ;;  %vm334_vm2 = vcmask 64512   ;;  %s2526_s5 = sld [smem:[#allocation13_spill]]  ;;  %vm456_vm3 = vcmask 1043456   ;;  %s2031_s2 = smov 104  }
  0x22   :  { %1759 = vmatprep.subr.bf16.mxu1 %v2027_v16  ;;  %1755 = vmatprep.mubr.msk.bf16.mxu0 %vm2028_vm1, %v2027_v16  ;;  %v1655_v38 = vld [vmem:[%s2496_s6] ss:$0 sm:$0xff]  ;;  %s2032_s25 = smov 16   ;;  %vm784_vm4 = vcmask 130112   ;;  %vm1017_vm5 = vcmask 195712   ;;  %s2033_s29 = smov 24  }
  0x23   :  { %1763 = vmatprep.mubr.msk.bf16.mxu1 %vm2028_vm1, %v2027_v16  ;;  %v1659_v53 = vld [vmem:[%s2498_s8] ss:$0 sm:$0xff]  ;;  %s2029_s8 = smov 120   ;;  %vm1250_vm6 = vcmask 261312   ;;  %vm1495_vm7 = vcmask 523264   ;;  %s2034_s7 = smov [#allocation6]  }
  0x24   :  { %s1637_s30 = sshll.u32 %s2034_s7, 4  ;;  %s1638_s30 = int_to_ptr.vmem [resolvable:$true] %s1637_s30 }
  0x25   :  { %93 = vadd.xlane.f32.xlu0 %v92_v3  ;;  %v1910_v14 = vld [vmem:[%s2522_s26] sm:$0xff]   ;;  %v1912_v17 = vld [vmem:[%s2522_s26 + $0x8] sm:$0xff]   ;;  %s2525_s26 = sld [smem:[#allocation11_spill]]  ;;  %p2003_p9 = scmp.lt.s32.totalorder %s1638_s30, %s1638_s30 }
  0x26   :  { %v1911_v15 = vld [vmem:[%s2523_s28] sm:$0xff]   ;;  %1752 = vmatpush3.bf16.msra.mxu0 %v1910_v14  ;;  %v1913_v18 = vld [vmem:[%s2523_s28 + $0x8] sm:$0xff]  }
  0x27   :  { %1760 = vmatpush3.bf16.msra.mxu1 %v1911_v15  ;;  %1753 = vmatprep.subr.bf16.mxu0 %v2027_v16  ;;  %v1649_v27 = vld [vmem:[%s2524_s24] ss:$0 sm:$0xff]  ;;  %s2030_s24 = smov 112  }
  0x28   :  { %1761 = vmatprep.subr.bf16.mxu1 %v2027_v16  ;;  %v1651_v50 = vld [vmem:[%s2526_s5] ss:$0 sm:$0xff]  ;;  %s1998_s5 = scalar_lea.vmem %s1638_s30, 256 }
  0x29   :  { %p1999_p8 = scmp.ne.s32.totalorder %s1638_s30, %s1998_s5  ;;  %p2004_p10 = scmp.lt.s32.totalorder %s1998_s5, %s1998_s5 }
  0x2a   :  { %1754 = vmatpush3.bf16.msra.mxu0 %v1912_v17 }
  0x2b   :  { %1762 = vmatpush3.bf16.msra.mxu1 %v1913_v18  ;;  %1767 = vmatprep.subr.bf16.mxu0 %v2027_v16  ;;  %v1650_v31 = vld [vmem:[%s2525_s26] ss:$0 sm:$0xff]  ;;  %p2005_p11 = por %p2004_p10, %p2003_p9 }
  0x2c   :  { %1775 = vmatprep.subr.bf16.mxu1 %v2027_v16 }
  0x2d   :  { %p2006_p12 = pnand %p2005_p11, %p1999_p8 }
  0xae   :  { %v91_v4 = vpop.xlane.xlu0 %90 }
  0xaf   :  { %v96_v5 = vmul.f32 0.03125, %v91_v4 }
  0xb1   :  { %v98_v6 = vsub.f32 %v2160_v0, %v96_v5 }
  0xb2   :  { %v94_v7 = vpop.xlane.xlu0 %93 }
  0xb3   :  { %v97_v8 = vmul.f32 0.03125, %v94_v7  ;;  %v100_v9 = vmul.f32 %v98_v6, %v98_v6 }
  0xb5   :  { %v99_v10 = vsub.f32 %v2162_v1, %v97_v8  ;;  %v102_v11 = vsel %vm88_vm0, %v100_v9, 0.0 }
  0xb6   :  { %103 = vadd.xlane.f32.xlu1 %v102_v11 }
  0xb7   :  { %v101_v12 = vmul.f32 %v99_v10, %v99_v10 }
  0xb9   :  { %v105_v13 = vsel %vm88_vm0, %v101_v12, 0.0 }
  0xba   :  { %106 = vadd.xlane.f32.xlu1 %v105_v13 }
 0x143   :  { %v104_v19 = vpop.xlane.xlu1 %103 }
 0x144   :  { %v108_v20 = vmul.f32 0.03125, %v104_v19 }
 0x146   :  { %v110_v21 = vadd.f32 1e-05, %v108_v20 }
 0x147   :  { %v107_v22 = vpop.xlane.xlu1 %106 }
 0x148   :  { %1924 = vrsqrt.f32 %v110_v21  ;;  %v109_v23 = vmul.f32 0.03125, %v107_v22 }
 0x14a   :  { %v111_v24 = vadd.f32 1e-05, %v109_v23 }
 0x14c   :  { %1926 = vrsqrt.f32 %v111_v24 }
 0x152   :  { %v1925_v25 = vpop.eup %1924 }
 0x153   :  { %v114_v26 = vmul.f32 %v1925_v25, %v98_v6 }
 0x155   :  { %v122_v30 = vmul.f32 %v1649_v27, %v114_v26 }
 0x156   :  { %v1927_v28 = vpop.eup %1926 }
 0x157   :  { %v115_v29 = vmul.f32 %v1927_v28, %v99_v10  ;;  %v130_v33 = vadd.f32 %v1650_v31, %v122_v30 }
 0x159   :  { %v123_v32 = vmul.f32 %v1649_v27, %v115_v29 }
 0x15b   :  { %v131_v34 = vadd.f32 %v1650_v31, %v123_v32 }
 0x15d   :  { %v132_v36 = vpack.c.bf16 %v131_v34, %v130_v33 }
 0x15f   :  { %1756 = vmatmul.mubr.msk.bf16.vlgmr.msra.gmra.mrb[0].mxu0 %vm88_vm0, %v132_v36  ;;  %1764 = vmatmul.mubr.msk.bf16.vlgmr.msra.gmra.mrb[0].mxu1 %vm88_vm0, %v132_v36 }
 0x160   :  { %1768 = vmatpush3.bf16.msra.mxu0 %v1914_v35  ;;  %1771 = vmatprep.mubr.msk.bf16.mxu0 %vm2028_vm1, %v2027_v16 }
 0x161   :  { %1769 = vmatprep.subr.bf16.mxu0 %v2027_v16  ;;  %1777 = vmatprep.mubr.msk.bf16.mxu1 %vm2028_vm1, %v2027_v16 }
 0x164   :  { %1770 = vmatpush3.bf16.msra.mxu0 %v1915_v37 }
 0x165   :  { %1781 = vmatprep.subr.bf16.mxu0 %v2027_v16 }
 0x167   :  { %1772 = vmatmul.mubr.msk.bf16.vlgmr.msra.gmra.mrb[4].mxu0 %vm88_vm0, %v132_v36 }
 0x168   :  { %1783 = vmatprep.mubr.msk.bf16.mxu0 %vm2028_vm1, %v2027_v16 }
 0x232   :  { %v193_v39 = vpop.f32.mrb[0].mxu0  ;;  %v257_v40 = vpop.f32.mrb[0].mxu1 }
 0x233   :  { %v258_v41 = vadd.f32 %v1655_v38, %v257_v40  ;;  %v1757_v42 = vpop.f32.mrb[1].mxu0  ;;  %v1765_v43 = vpop.f32.mrb[1].mxu1  ;;  %v194_v54 = vadd.f32 %v1651_v50, %v193_v39 }
 0x234   :  { %v196_v44 = vpop.f32.mrb[2].mxu0  ;;  %v260_v45 = vpop.f32.mrb[2].mxu1 }
 0x235   :  { %v2220_v46 = vpack.c.bf16 %v258_v41, %v258_v41  ;;  %v261_v47 = vadd.f32 %v1655_v38, %v260_v45  ;;  %v1758_v48 = vpop.f32.mrb[3].mxu0  ;;  %v1766_v49 = vpop.f32.mrb[3].mxu1  ;;  %v197_v57 = vadd.f32 %v1651_v50, %v196_v44  ;;  %v2236_v61 = vpack.c.bf16 %v194_v54, %v194_v54 }
 0x237   :  { %v2225_v51 = vpack.c.bf16 %v261_v47, %v261_v47  ;;  %v339_v52 = vsel %vm334_vm2, %v2220_v46, 0  ;;  %v2240_v3 = vpack.c.bf16 %v197_v57, %v197_v57 }
 0x238   :  { %1776 = vmatpush3.bf16.xpose.msra.mxu1 %v339_v52 }
 0x239   :  { %v385_v55 = vsel %vm334_vm2, %v2225_v51, 0  ;;  %1787 = vmatprep.subr.bf16.mxu1 %v2027_v16 }
 0x23a   :  { %v321_v56 = vpop.f32.mrb[4].mxu0  ;;  %1782 = vmatpush3.bf16.xpose.msra.mxu0 %v385_v55 }
 0x23b   :  { %v322_v58 = vadd.f32 %v1659_v53, %v321_v56  ;;  %v1773_v59 = vpop.f32.mrb[5].mxu0  ;;  %1793 = vmatprep.subr.bf16.mxu0 %v2027_v16 }
 0x23c   :  { %v324_v60 = vpop.f32.mrb[6].mxu0 }
 0x23d   :  { %v2238_v62 = vpack.c.bf16 %v322_v58, %v322_v58  ;;  %v325_v63 = vadd.f32 %v1659_v53, %v324_v60  ;;  %v1774_v2 = vpop.f32.mrb[7].mxu0 }
 0x23f   :  { %v2242_v4 = vpack.c.bf16 %v325_v63, %v325_v63  ;;  %1778 = vmatmul.mubr.msk.bf16.vlgmr.msra.gmra.mrb[4].mxu1 %vm334_vm2, %v2236_v61  ;;  %v458_v5 = vsel %vm456_vm3, %v2238_v62, 0 }
 0x240   :  { %1788 = vmatpush3.bf16.msra.mxu1 %v458_v5  ;;  %1789 = vmatprep.mubr.msk.bf16.mxu1 %vm2028_vm1, %v2027_v16 }
 0x241   :  { %1784 = vmatmul.mubr.msk.bf16.vlgmr.msra.gmra.mrb[8].mxu0 %vm334_vm2, %v2240_v3  ;;  %v504_v6 = vsel %vm456_vm3, %v2242_v4, 0  ;;  %1799 = vmatprep.subr.bf16.mxu1 %v2027_v16 }
 0x242   :  { %1794 = vmatpush3.bf16.msra.mxu0 %v504_v6  ;;  %1795 = vmatprep.mubr.msk.bf16.mxu0 %vm2028_vm1, %v2027_v16 }
 0x243   :  { %1805 = vmatprep.subr.bf16.mxu0 %v2027_v16 }
 0x312   :  { %v375_v7 = vpop.f32.mrb[4].mxu1 }
 0x313   :  { %v427_v8 = vmul.f32 0.35355338, %v375_v7  ;;  %v1779_v9 = vpop.f32.mrb[5].mxu1 }
 0x314   :  { %v378_v10 = vpop.f32.mrb[6].mxu1  ;;  %v421_v11 = vpop.f32.mrb[8].mxu0 }
 0x315   :  { %v428_v12 = vmul.f32 0.35355338, %v421_v11  ;;  %v1780_v13 = vpop.f32.mrb[7].mxu1  ;;  %v1785_v14 = vpop.f32.mrb[9].mxu0  ;;  %v429_v15 = vsel %vm334_vm2, %v427_v8, -inf }
 0x316   :  { %430 = vmax.xlane.f32.xlu0 %v429_v15  ;;  %v424_v17 = vpop.f32.mrb[10].mxu0 }
 0x317   :  { %v1786_v18 = vpop.f32.mrb[11].mxu0  ;;  %v432_v19 = vsel %vm334_vm2, %v428_v12, -inf }
 0x318   :  { %433 = vmax.xlane.f32.xlu1 %v432_v19 }
 0x329   :  { %604 = vrot.lane.b32.xlu1 %v2225_v51, %s2029_s8 }
 0x3a3   :  { %v431_v20 = vpop.xlane.xlu0 %430 }
 0x3a4   :  { %v435_v21 = vsub.f32 %v427_v8, %v431_v20 }
 0x3a5   :  { %v434_v22 = vpop.xlane.xlu1 %433 }
 0x3a6   :  { %v437_v23 = vmul.f32 1.442695, %v435_v21  ;;  %v436_v24 = vsub.f32 %v428_v12, %v434_v22 }
 0x3a8   :  { %1928 = vpow2.f32 %v437_v23  ;;  %v439_v25 = vmul.f32 1.442695, %v436_v24 }
 0x3a9   :  { %v605_v30 = vpop.permute.xlu1 %604 }
 0x3aa   :  { %1930 = vpow2.f32 %v439_v25  ;;  %v610_v41 = vsel %vm334_vm2, %v605_v30, 0 }
 0x3b2   :  { %v1929_v26 = vpop.eup %1928 }
 0x3b3   :  { %v441_v27 = vsel %vm334_vm2, %v1929_v26, 0.0 }
 0x3b4   :  { %v1931_v28 = vpop.eup %1930  ;;  %442 = vadd.xlane.f32.xlu0 %v441_v27 }
 0x3b5   :  { %v444_v29 = vsel %vm334_vm2, %v1931_v28, 0.0 }
 0x3b6   :  { %445 = vadd.xlane.f32.xlu1 %v444_v29 }
 0x3c7   :  { %549 = vrot.lane.b32.xlu1 %v2236_v61, %s2029_s8 }
 0x3ca   :  { %552 = vrot.lane.b32.xlu0 %v2220_v46, %s2029_s8 }
 0x3cb   :  { %601 = vrot.lane.b32.xlu1 %v2240_v3, %s2029_s8 }
 0x441   :  { %v443_v31 = vpop.xlane.xlu0 %442 }
 0x442   :  { %1932 = vrcp.f32 %v443_v31 }
 0x443   :  { %v446_v32 = vpop.xlane.xlu1 %445 }
 0x444   :  { %1934 = vrcp.f32 %v446_v32 }
 0x445   :  { %v553_v36 = vpop.permute.xlu0 %552 }
 0x446   :  { %v558_v39 = vsel %vm334_vm2, %v553_v36, 0 }
 0x447   :  { %v550_v42 = vpop.permute.xlu1 %549 }
 0x44b   :  { %v602_v43 = vpop.permute.xlu1 %601 }
 0x44c   :  { %v1933_v33 = vpop.eup %1932 }
 0x44d   :  { %v449_v34 = vmul.f32 %v1933_v33, %v1929_v26 }
 0x44e   :  { %v1935_v35 = vpop.eup %1934 }
 0x44f   :  { %v450_v37 = vmul.f32 %v1935_v35, %v1931_v28  ;;  %v451_v38 = vpack.c.bf16 %v449_v34, %v449_v34 }
 0x451   :  { %1790 = vmatmul.mubr.msk.bf16.vlgmr.msra.gmra.mrb[8].mxu1 %vm334_vm2, %v451_v38  ;;  %v452_v40 = vpack.c.bf16 %v450_v37, %v450_v37 }
 0x452   :  { %1800 = vmatpush3.bf16.xpose.msra.mxu1 %v558_v39  ;;  %1801 = vmatprep.mubr.msk.bf16.mxu1 %vm2028_vm1, %v2027_v16 }
 0x453   :  { %1796 = vmatmul.mubr.msk.bf16.vlgmr.msra.gmra.mrb[12].mxu0 %vm334_vm2, %v452_v40  ;;  %1811 = vmatprep.subr.bf16.mxu1 %v2027_v16 }
 0x454   :  { %1806 = vmatpush3.bf16.xpose.msra.mxu0 %v610_v41  ;;  %1807 = vmatprep.mubr.msk.bf16.mxu0 %vm2028_vm1, %v2027_v16 }
 0x455   :  { %1817 = vmatprep.subr.bf16.mxu0 %v2027_v16 }
 0x459   :  { %1802 = vmatmul.mubr.msk.bf16.vlgmr.msra.gmra.mrb[12].mxu1 %vm334_vm2, %v550_v42 }
 0x45a   :  { %1813 = vmatprep.mubr.msk.bf16.mxu1 %vm2028_vm1, %v2027_v16 }
 0x45b   :  { %1808 = vmatmul.mubr.msk.bf16.vlgmr.msra.gmra.mrb[16].mxu0 %vm334_vm2, %v602_v43 }
 0x45c   :  { %1819 = vmatprep.mubr.msk.bf16.mxu0 %vm2028_vm1, %v2027_v16 }
 0x524   :  { %v494_v44 = vpop.f32.mrb[8].mxu1 }
 0x525   :  { %546 = vst.msk [vmem:[#allocation2] sm:$0xff] %vm334_vm2, %v494_v44  ;;  %v1791_v45 = vpop.f32.mrb[9].mxu1 }
 0x526   :  { %v497_v47 = vpop.f32.mrb[10].mxu1  ;;  %v540_v48 = vpop.f32.mrb[12].mxu0 }
 0x527   :  { %547 = vst.msk [vmem:[#allocation2 + $0x8] sm:$0xff] %vm334_vm2, %v540_v48  ;;  %v1792_v49 = vpop.f32.mrb[11].mxu1  ;;  %v1797_v50 = vpop.f32.mrb[13].mxu0 }
 0x528   :  { %v543_v52 = vpop.f32.mrb[14].mxu0 }
 0x529   :  { %v1798_v53 = vpop.f32.mrb[15].mxu0 }
 0x52c   :  { %v594_v54 = vpop.f32.mrb[12].mxu1 }
 0x52d   :  { %v652_v55 = vmul.f32 0.35355338, %v594_v54  ;;  %v1803_v56 = vpop.f32.mrb[13].mxu1 }
 0x52e   :  { %v597_v57 = vpop.f32.mrb[14].mxu1  ;;  %v646_v58 = vpop.f32.mrb[16].mxu0 }
 0x52f   :  { %v653_v59 = vmul.f32 0.35355338, %v646_v58  ;;  %v1804_v60 = vpop.f32.mrb[15].mxu1  ;;  %v1809_v63 = vpop.f32.mrb[17].mxu0  ;;  %v654_v2 = vsel %vm334_vm2, %v652_v55, -inf }
 0x530   :  { %655 = vmax.xlane.f32.xlu0 %v654_v2  ;;  %v649_v5 = vpop.f32.mrb[18].mxu0 }
 0x531   :  { %v1810_v6 = vpop.f32.mrb[19].mxu0  ;;  %v657_v7 = vsel %vm334_vm2, %v653_v59, -inf }
 0x532   :  { %658 = vmax.xlane.f32.xlu1 %v657_v7 }
 0x543   :  { %728 = vrot.lane.b32.xlu1 %v2242_v4, %s2029_s8 }
 0x547   :  { %789 = vrot.lane.b32.xlu1 %v2220_v46, %s2030_s24 }
 0x54b   :  { %839 = vrot.lane.b32.xlu1 %v2225_v51, %s2030_s24 }
 0x54f   :  { %837 = vrot.lane.b32.xlu1 %v2240_v3, %s2030_s24 }
 0x5bd   :  { %v656_v8 = vpop.xlane.xlu0 %655 }
 0x5be   :  { %v660_v9 = vsub.f32 %v652_v55, %v656_v8 }
 0x5bf   :  { %v659_v10 = vpop.xlane.xlu1 %658 }
 0x5c0   :  { %v662_v11 = vmul.f32 1.442695, %v660_v9  ;;  %v661_v12 = vsub.f32 %v653_v59, %v659_v10 }
 0x5c2   :  { %1936 = vpow2.f32 %v662_v11  ;;  %v664_v13 = vmul.f32 1.442695, %v661_v12 }
 0x5c3   :  { %v729_v14 = vpop.permute.xlu1 %728 }
 0x5c4   :  { %1938 = vpow2.f32 %v664_v13  ;;  %v734_v15 = vsel %vm456_vm3, %v729_v14, 0 }
 0x5c5   :  { %1818 = vmatpush3.bf16.msra.mxu0 %v734_v15 }
 0x5c6   :  { %1829 = vmatprep.subr.bf16.mxu0 %v2027_v16 }
 0x5c7   :  { %v790_v26 = vpop.permute.xlu1 %789 }
 0x5c8   :  { %v795_v32 = vsel %vm334_vm2, %v790_v26, 0 }
 0x5cb   :  { %v840_v31 = vpop.permute.xlu1 %839 }
 0x5cc   :  { %v1937_v17 = vpop.eup %1936  ;;  %v845_v34 = vsel %vm334_vm2, %v840_v31, 0 }
 0x5cd   :  { %v666_v18 = vsel %vm334_vm2, %v1937_v17, 0.0 }
 0x5ce   :  { %v1939_v19 = vpop.eup %1938  ;;  %667 = vadd.xlane.f32.xlu0 %v666_v18 }
 0x5cf   :  { %v669_v20 = vsel %vm334_vm2, %v1939_v19, 0.0  ;;  %v838_v36 = vpop.permute.xlu1 %837 }
 0x5d2   :  { %670 = vadd.xlane.f32.xlu0 %v669_v20 }
 0x5e8   :  { %679 = vrot.lane.b32.xlu0 %v2238_v62, %s2029_s8 }
 0x5ec   :  { %787 = vrot.lane.b32.xlu0 %v2236_v61, %s2030_s24 }
 0x65b   :  { %v668_v21 = vpop.xlane.xlu0 %667 }
 0x65c   :  { %1940 = vrcp.f32 %v668_v21 }
 0x65f   :  { %v671_v22 = vpop.xlane.xlu0 %670 }
 0x660   :  { %1942 = vrcp.f32 %v671_v22 }
 0x663   :  { %v680_v23 = vpop.permute.xlu0 %679 }
 0x664   :  { %v685_v24 = vsel %vm456_vm3, %v680_v23, 0 }
 0x665   :  { %1812 = vmatpush3.bf16.msra.mxu1 %v685_v24 }
 0x666   :  { %v1941_v25 = vpop.eup %1940  ;;  %1823 = vmatprep.subr.bf16.mxu1 %v2027_v16 }
 0x667   :  { %v674_v27 = vmul.f32 %v1941_v25, %v1937_v17  ;;  %v788_v35 = vpop.permute.xlu0 %787 }
 0x669   :  { %v676_v28 = vpack.c.bf16 %v674_v27, %v674_v27 }
 0x66a   :  { %v1943_v29 = vpop.eup %1942 }
 0x66b   :  { %v675_v30 = vmul.f32 %v1943_v29, %v1939_v19  ;;  %1814 = vmatmul.mubr.msk.bf16.vlgmr.msra.gmra.mrb[16].mxu1 %vm334_vm2, %v676_v28 }
 0x66c   :  { %1825 = vmatprep.mubr.msk.bf16.mxu1 %vm2028_vm1, %v2027_v16 }
 0x66d   :  { %v677_v33 = vpack.c.bf16 %v675_v30, %v675_v30 }
 0x66e   :  { %1824 = vmatpush3.bf16.xpose.msra.mxu1 %v795_v32 }
 0x66f   :  { %1820 = vmatmul.mubr.msk.bf16.vlgmr.msra.gmra.mrb[20].mxu0 %vm334_vm2, %v677_v33  ;;  %1835 = vmatprep.subr.bf16.mxu1 %v2027_v16 }
 0x670   :  { %1830 = vmatpush3.bf16.xpose.msra.mxu0 %v845_v34  ;;  %1831 = vmatprep.mubr.msk.bf16.mxu0 %vm2028_vm1, %v2027_v16 }
 0x671   :  { %1841 = vmatprep.subr.bf16.mxu0 %v2027_v16 }
 0x675   :  { %1826 = vmatmul.mubr.msk.bf16.vlgmr.msra.gmra.mrb[20].mxu1 %vm334_vm2, %v788_v35 }
 0x676   :  { %1837 = vmatprep.mubr.msk.bf16.mxu1 %vm2028_vm1, %v2027_v16 }
 0x677   :  { %1832 = vmatmul.mubr.msk.bf16.vlgmr.msra.gmra.mrb[24].mxu0 %vm334_vm2, %v838_v36 }
 0x678   :  { %1843 = vmatprep.mubr.msk.bf16.mxu0 %vm2028_vm1, %v2027_v16 }
 0x73e   :  { %v2324_v37 = vpop.f32.mrb[16].mxu1 }
 0x73f   :  { %v1815_v38 = vpop.f32.mrb[17].mxu1 }
 0x740   :  { %v724_v39 = vpop.f32.mrb[18].mxu1 }
 0x741   :  { %v1816_v40 = vpop.f32.mrb[19].mxu1 }
 0x742   :  { %v2326_v41 = vpop.f32.mrb[20].mxu0 }
 0x743   :  { %v1821_v42 = vpop.f32.mrb[21].mxu0 }
 0x744   :  { %v773_v43 = vpop.f32.mrb[22].mxu0 }
 0x745   :  { %v1822_v44 = vpop.f32.mrb[23].mxu0 }
 0x748   :  { %v831_v45 = vpop.f32.mrb[20].mxu1 }
 0x749   :  { %v887_v47 = vmul.f32 0.35355338, %v831_v45  ;;  %v1827_v48 = vpop.f32.mrb[21].mxu1 }
 0x74a   :  { %v834_v49 = vpop.f32.mrb[22].mxu1  ;;  %v881_v50 = vpop.f32.mrb[24].mxu0 }
 0x74b   :  { %v888_v52 = vmul.f32 0.35355338, %v881_v50  ;;  %v1828_v53 = vpop.f32.mrb[23].mxu1  ;;  %v1833_v54 = vpop.f32.mrb[25].mxu0  ;;  %v889_v55 = vsel %vm334_vm2, %v887_v47, -inf }
 0x74c   :  { %890 = vmax.xlane.f32.xlu0 %v889_v55  ;;  %v884_v56 = vpop.f32.mrb[26].mxu0 }
 0x74d   :  { %v1834_v57 = vpop.f32.mrb[27].mxu0  ;;  %v892_v58 = vsel %vm334_vm2, %v888_v52, -inf }
 0x74e   :  { %893 = vmax.xlane.f32.xlu1 %v892_v58 }
 0x75f   :  { %961 = vrot.lane.b32.xlu1 %v2242_v4, %s2030_s24 }
 0x763   :  { %1022 = vrot.lane.b32.xlu1 %v2220_v46, %s2031_s2 }
 0x767   :  { %1072 = vrot.lane.b32.xlu1 %v2225_v51, %s2031_s2 }
 0x76b   :  { %1070 = vrot.lane.b32.xlu1 %v2240_v3, %s2031_s2 }
 0x7d9   :  { %v891_v59 = vpop.xlane.xlu0 %890 }
 0x7da   :  { %v895_v60 = vsub.f32 %v887_v47, %v891_v59 }
 0x7db   :  { %v894_v63 = vpop.xlane.xlu1 %893 }
 0x7dc   :  { %v897_v2 = vmul.f32 1.442695, %v895_v60  ;;  %v896_v5 = vsub.f32 %v888_v52, %v894_v63 }
 0x7de   :  { %1944 = vpow2.f32 %v897_v2  ;;  %v899_v6 = vmul.f32 1.442695, %v896_v5 }
 0x7df   :  { %v962_v7 = vpop.permute.xlu1 %961 }
 0x7e0   :  { %1946 = vpow2.f32 %v899_v6  ;;  %v967_v8 = vsel %vm456_vm3, %v962_v7, 0 }
 0x7e1   :  { %1842 = vmatpush3.bf16.msra.mxu0 %v967_v8 }
 0x7e2   :  { %1853 = vmatprep.subr.bf16.mxu0 %v2027_v16 }
 0x7e3   :  { %v1023_v15 = vpop.permute.xlu1 %1022 }
 0x7e7   :  { %v1073_v21 = vpop.permute.xlu1 %1072 }
 0x7e8   :  { %v1945_v46 = vpop.eup %1944  ;;  %v1078_v23 = vsel %vm334_vm2, %v1073_v21, 0 }
 0x7e9   :  { %v901_v51 = vsel %vm334_vm2, %v1945_v46, 0.0 }
 0x7ea   :  { %v1947_v9 = vpop.eup %1946  ;;  %902 = vadd.xlane.f32.xlu0 %v901_v51 }
 0x7eb   :  { %v904_v3 = vsel %vm334_vm2, %v1947_v9, 0.0  ;;  %v1071_v25 = vpop.permute.xlu1 %1070 }
 0x7ee   :  { %905 = vadd.xlane.f32.xlu0 %v904_v3 }
 0x804   :  { %913 = vrot.lane.b32.xlu0 %v2238_v62, %s2030_s24 }
 0x808   :  { %1020 = vrot.lane.b32.xlu0 %v2236_v61, %s2031_s2  ;;  %v1028_v61 = vsel %vm334_vm2, %v1023_v15, 0 }
 0x877   :  { %v903_v10 = vpop.xlane.xlu0 %902 }
 0x878   :  { %1948 = vrcp.f32 %v903_v10 }
 0x87b   :  { %v906_v11 = vpop.xlane.xlu0 %905 }
 0x87c   :  { %1950 = vrcp.f32 %v906_v11  ;;  %v1916_v11 = vld [vmem:[%s2499_s9] sm:$0xff]  }
 0x87f   :  { %v914_v12 = vpop.permute.xlu0 %913 }
 0x880   :  { %v919_v13 = vsel %vm456_vm3, %v914_v12, 0  ;;  %v1917_v12 = vld [vmem:[%s2499_s9 + $0x8] sm:$0xff]  }
 0x881   :  { %1836 = vmatpush3.bf16.msra.mxu1 %v919_v13 }
 0x882   :  { %v1949_v14 = vpop.eup %1948  ;;  %1847 = vmatprep.subr.bf16.mxu1 %v2027_v16 }
 0x883   :  { %v909_v17 = vmul.f32 %v1949_v14, %v1945_v46  ;;  %v1021_v24 = vpop.permute.xlu0 %1020 }
 0x885   :  { %v911_v18 = vpack.c.bf16 %v909_v17, %v909_v17 }
 0x886   :  { %v1951_v19 = vpop.eup %1950 }
 0x887   :  { %v910_v20 = vmul.f32 %v1951_v19, %v1947_v9  ;;  %1838 = vmatmul.mubr.msk.bf16.vlgmr.msra.gmra.mrb[24].mxu1 %vm334_vm2, %v911_v18 }
 0x888   :  { %1849 = vmatprep.mubr.msk.bf16.mxu1 %vm2028_vm1, %v2027_v16 }
 0x889   :  { %v912_v22 = vpack.c.bf16 %v910_v20, %v910_v20 }
 0x88a   :  { %1848 = vmatpush3.bf16.xpose.msra.mxu1 %v1028_v61 }
 0x88b   :  { %1844 = vmatmul.mubr.msk.bf16.vlgmr.msra.gmra.mrb[28].mxu0 %vm334_vm2, %v912_v22  ;;  %1859 = vmatprep.subr.bf16.mxu1 %v2027_v16 }
 0x88c   :  { %1854 = vmatpush3.bf16.xpose.msra.mxu0 %v1078_v23  ;;  %1855 = vmatprep.mubr.msk.bf16.mxu0 %vm2028_vm1, %v2027_v16 }
 0x88d   :  { %1865 = vmatprep.subr.bf16.mxu0 %v2027_v16 }
 0x891   :  { %1850 = vmatmul.mubr.msk.bf16.vlgmr.msra.gmra.mrb[28].mxu1 %vm334_vm2, %v1021_v24 }
 0x892   :  { %1861 = vmatprep.mubr.msk.bf16.mxu1 %vm2028_vm1, %v2027_v16 }
 0x893   :  { %1856 = vmatmul.mubr.msk.bf16.vlgmr.msra.gmra.mrb[32].mxu0 %vm334_vm2, %v1071_v25 }
 0x894   :  { %1867 = vmatprep.mubr.msk.bf16.mxu0 %vm2028_vm1, %v2027_v16 }
 0x95a   :  { %v955_v26 = vpop.f32.mrb[24].mxu1 }
 0x95b   :  { %v1839_v27 = vpop.f32.mrb[25].mxu1 }
 0x95c   :  { %v958_v28 = vpop.f32.mrb[26].mxu1 }
 0x95d   :  { %v1840_v29 = vpop.f32.mrb[27].mxu1 }
 0x95e   :  { %v1003_v30 = vpop.f32.mrb[28].mxu0 }
 0x95f   :  { %v1845_v31 = vpop.f32.mrb[29].mxu0 }
 0x960   :  { %v1006_v32 = vpop.f32.mrb[30].mxu0 }
 0x961   :  { %v1846_v33 = vpop.f32.mrb[31].mxu0 }
 0x964   :  { %v1064_v34 = vpop.f32.mrb[28].mxu1 }
 0x965   :  { %v1120_v35 = vmul.f32 0.35355338, %v1064_v34  ;;  %v1851_v36 = vpop.f32.mrb[29].mxu1 }
 0x966   :  { %v1067_v38 = vpop.f32.mrb[30].mxu1  ;;  %v1114_v39 = vpop.f32.mrb[32].mxu0 }
 0x967   :  { %v1121_v40 = vmul.f32 0.35355338, %v1114_v39  ;;  %v1852_v42 = vpop.f32.mrb[31].mxu1  ;;  %v1857_v43 = vpop.f32.mrb[33].mxu0  ;;  %v1122_v44 = vsel %vm334_vm2, %v1120_v35, -inf }
 0x968   :  { %1123 = vmax.xlane.f32.xlu0 %v1122_v44  ;;  %v1117_v45 = vpop.f32.mrb[34].mxu0 }
 0x969   :  { %v1858_v47 = vpop.f32.mrb[35].mxu0  ;;  %v1125_v48 = vsel %vm334_vm2, %v1121_v40, -inf }
 0x96a   :  { %1126 = vmax.xlane.f32.xlu1 %v1125_v48  ;;  %v1918_v48 = vld [vmem:[%s2503_s13] sm:$0xff]  }
 0x97b   :  { %1194 = vrot.lane.b32.xlu1 %v2242_v4, %s2031_s2 }
 0x97f   :  { %778 = vrot.lane.b32.xlu1 %v2324_v37, %s2026_s23 }
 0x983   :  { %780 = vrot.lane.b32.xlu1 %v2326_v41, %s2026_s23 }
 0x987   :  { %1013 = vrot.lane.b32.xlu1 %v1003_v30, %s2032_s25 }
 0x9f5   :  { %v1124_v49 = vpop.xlane.xlu0 %1123 }
 0x9f6   :  { %v1128_v50 = vsub.f32 %v1120_v35, %v1124_v49  ;;  %v1919_v49 = vld [vmem:[%s2503_s13 + $0x8] sm:$0xff]  }
 0x9f7   :  { %v1127_v52 = vpop.xlane.xlu1 %1126 }
 0x9f8   :  { %v1130_v53 = vmul.f32 1.442695, %v1128_v50  ;;  %v1129_v54 = vsub.f32 %v1121_v40, %v1127_v52 }
 0x9fa   :  { %1952 = vpow2.f32 %v1130_v53  ;;  %v1132_v55 = vmul.f32 1.442695, %v1129_v54 }
 0x9fb   :  { %v1195_v56 = vpop.permute.xlu1 %1194 }
 0x9fc   :  { %1954 = vpow2.f32 %v1132_v55  ;;  %v1200_v57 = vsel %vm456_vm3, %v1195_v56, 0 }
 0x9fd   :  { %1866 = vmatpush3.bf16.msra.mxu0 %v1200_v57 }
 0x9fe   :  { %1879 = vmatprep.subr.bf16.mxu0 %v2027_v16 }
 0x9ff   :  { %v779_v4 = vpop.permute.xlu1 %778 }
 0xa00   :  { %785 = vst.msk [vmem:[#allocation2] sm:$0xff] %vm784_vm4, %v779_v4 }
 0xa03   :  { %v781_v37 = vpop.permute.xlu1 %780 }
 0xa04   :  { %v1953_v41 = vpop.eup %1952  ;;  %786 = vst.msk [vmem:[#allocation2 + $0x8] sm:$0xff] %vm784_vm4, %v781_v37  ;;  %v1683_v37 = vld [vmem:[%s2501_s11] ss:$0 sm:$0xff] }
 0xa05   :  { %v1134_v58 = vsel %vm334_vm2, %v1953_v41, 0.0 }
 0xa06   :  { %v1955_v59 = vpop.eup %1954  ;;  %1135 = vadd.xlane.f32.xlu0 %v1134_v58 }
 0xa07   :  { %v1014_v60 = vpop.permute.xlu1 %1013  ;;  %v1137_v63 = vsel %vm334_vm2, %v1955_v59, 0.0 }
 0xa08   :  { %1019 = vst.msk [vmem:[#allocation2 + $0x8] sm:$0xff] %vm1017_vm5, %v1014_v60  ;;  %v1684_v60 = vld [vmem:[%s2502_s12] ss:$0 sm:$0xff] }
 0xa0a   :  { %1138 = vadd.xlane.f32.xlu0 %v1137_v63 }
 0xa20   :  { %1146 = vrot.lane.b32.xlu0 %v2238_v62, %s2031_s2 }
 0xa24   :  { %1011 = vrot.lane.b32.xlu0 %v955_v26, %s2032_s25  ;;  %v1679_v26 = vld [vmem:[%s2500_s10] ss:$0 sm:$0xff] }
 0xa93   :  { %v1136_v2 = vpop.xlane.xlu0 %1135 }
 0xa94   :  { %1956 = vrcp.f32 %v1136_v2 }
 0xa97   :  { %v1139_v5 = vpop.xlane.xlu0 %1138 }
 0xa98   :  { %1958 = vrcp.f32 %v1139_v5 }
 0xa9b   :  { %v1147_v6 = vpop.permute.xlu0 %1146 }
 0xa9c   :  { %v1152_v7 = vsel %vm456_vm3, %v1147_v6, 0 }
 0xa9d   :  { %1860 = vmatpush3.bf16.msra.mxu1 %v1152_v7  ;;  %v1920_v7 = vld [vmem:[%s2505_s15] sm:$0xff]  }
 0xa9e   :  { %v1957_v8 = vpop.eup %1956  ;;  %1871 = vmatprep.subr.bf16.mxu1 %v2027_v16 }
 0xa9f   :  { %v1142_v46 = vmul.f32 %v1957_v8, %v1953_v41  ;;  %v1012_v51 = vpop.permute.xlu0 %1011  ;;  %v1921_v8 = vld [vmem:[%s2505_s15 + $0x8] sm:$0xff]  }
 0xaa0   :  { %1018 = vst.msk [vmem:[#allocation2] sm:$0xff] %vm1017_vm5, %v1012_v51  ;;  %v1923_v51 = vld [vmem:[%s2505_s15 + $0x18] sm:$0xff]  }
 0xaa1   :  { %v1144_v9 = vpack.c.bf16 %v1142_v46, %v1142_v46  ;;  %v1922_v46 = vld [vmem:[%s2505_s15 + $0x10] sm:$0xff]  }
 0xaa2   :  { %v1959_v3 = vpop.eup %1958 }
 0xaa3   :  { %v1143_v10 = vmul.f32 %v1959_v3, %v1955_v59  ;;  %1862 = vmatmul.mubr.msk.bf16.vlgmr.msra.gmra.mrb[32].mxu1 %vm334_vm2, %v1144_v9  ;;  %v1685_v9 = vld [vmem:[%s2504_s14] ss:$0 sm:$0xff] }
 0xaa4   :  { %1875 = vmatprep.mubr.msk.bf16.mxu1 %vm2028_vm1, %v2027_v16  ;;  %1872 = vmatpush3.bf16.msra.mxu1 %v1916_v11 }
 0xaa5   :  { %v1145_v62 = vpack.c.bf16 %v1143_v10, %v1143_v10  ;;  %1873 = vmatprep.subr.bf16.mxu1 %v2027_v16 }
 0xaa7   :  { %1868 = vmatmul.mubr.msk.bf16.vlgmr.msra.gmra.mrb[36].mxu0 %vm334_vm2, %v1145_v62 }
 0xaa8   :  { %1883 = vmatprep.mubr.msk.bf16.mxu0 %vm2028_vm1, %v2027_v16  ;;  %1874 = vmatpush3.bf16.msra.mxu1 %v1917_v12 }
 0xaa9   :  { %1887 = vmatprep.subr.bf16.mxu1 %v2027_v16  ;;  %1880 = vmatpush3.bf16.msra.mxu0 %v1918_v48 }
 0xaaa   :  { %1881 = vmatprep.subr.bf16.mxu0 %v2027_v16 }
 0xaad   :  { %1882 = vmatpush3.bf16.msra.mxu0 %v1919_v49 }
 0xb76   :  { %v1188_v13 = vpop.f32.mrb[32].mxu1 }
 0xb77   :  { %1244 = vrot.lane.b32.xlu0 %v1188_v13, %s2033_s29  ;;  %v1863_v14 = vpop.f32.mrb[33].mxu1 }
 0xb78   :  { %v1191_v15 = vpop.f32.mrb[34].mxu1 }
 0xb79   :  { %v1864_v17 = vpop.f32.mrb[35].mxu1 }
 0xb7a   :  { %v1236_v18 = vpop.f32.mrb[36].mxu0 }
 0xb7b   :  { %1246 = vrot.lane.b32.xlu1 %v1236_v18, %s2033_s29  ;;  %v1869_v19 = vpop.f32.mrb[37].mxu0 }
 0xb7c   :  { %v1239_v20 = vpop.f32.mrb[38].mxu0 }
 0xb7d   :  { %v1870_v21 = vpop.f32.mrb[39].mxu0 }
 0xbe9   :  { %v1245_v61 = vpop.permute.xlu0 %1244 }
 0xbea   :  { %1251 = vst.msk [vmem:[#allocation2] sm:$0xff] %vm1250_vm6, %v1245_v61 }
 0xbed   :  { %v1247_v22 = vpop.permute.xlu1 %1246 }
 0xbee   :  { %1252 = vst.msk [vmem:[#allocation2 + $0x8] sm:$0xff] %vm1250_vm6, %v1247_v22 }
 0xbf1   :  { %v1253_v23 = vld [vmem:[#allocation2] sm:$0xff] }
 0xbf5   :  { %v1254_v24 = vld [vmem:[#allocation2 + $0x8] sm:$0xff] }
 0xbf6   :  { %v1255_v25 = vpack.c.bf16 %v1254_v24, %v1253_v23 }
 0xbf8   :  { %1876 = vmatmul.mubr.msk.bf16.vlgmr.msra.gmra.mrb[36].mxu1 %vm88_vm0, %v1255_v25 }
 0xbf9   :  { %1895 = vmatprep.mubr.msk.bf16.mxu1 %vm2028_vm1, %v2027_v16  ;;  %1888 = vmatpush3.bf16.msra.mxu1 %v1920_v7 }
 0xbfa   :  { %1889 = vmatprep.subr.bf16.mxu1 %v2027_v16 }
 0xbfd   :  { %1890 = vmatpush3.bf16.msra.mxu1 %v1921_v8 }
 0xbfe   :  { %1891 = vmatprep.subr.bf16.mxu1 %v2027_v16 }
 0xc01   :  { %1892 = vmatpush3.bf16.msra.mxu1 %v1922_v46 }
 0xc02   :  { %1893 = vmatprep.subr.bf16.mxu1 %v2027_v16 }
 0xc05   :  { %1894 = vmatpush3.bf16.msra.mxu1 %v1923_v51 }
 0xccb   :  { %v1316_v27 = vpop.f32.mrb[36].mxu1 }
 0xccc   :  { %v1317_v28 = vadd.f32 %v1679_v26, %v1316_v27  ;;  %v1877_v29 = vpop.f32.mrb[37].mxu1 }
 0xccd   :  { %v1319_v30 = vpop.f32.mrb[38].mxu1 }
 0xcce   :  { %v2403_v31 = vadd.f32 %v1317_v28, %v2160_v0  ;;  %v1320_v32 = vadd.f32 %v1679_v26, %v1319_v30  ;;  %v1878_v33 = vpop.f32.mrb[39].mxu1 }
 0xccf   :  { %v1689_v33 = vld [vmem:[%s2506_s16] ss:$0 sm:$0xff] }
 0xcd0   :  { %v2406_v34 = vadd.f32 %v1320_v32, %v2162_v1  ;;  %v1327_v35 = vsel %vm88_vm0, %v2403_v31, 0.0 }
 0xcd1   :  { %1328 = vadd.xlane.f32.xlu0 %v1327_v35 }
 0xcd2   :  { %v1330_v36 = vsel %vm88_vm0, %v2406_v34, 0.0 }
 0xcd3   :  { %1331 = vadd.xlane.f32.xlu1 %v1330_v36 }
 0xd5e   :  { %v1329_v38 = vpop.xlane.xlu0 %1328 }
 0xd5f   :  { %v1333_v39 = vmul.f32 0.03125, %v1329_v38 }
 0xd60   :  { %v1332_v40 = vpop.xlane.xlu1 %1331 }
 0xd61   :  { %v1335_v42 = vsub.f32 %v2403_v31, %v1333_v39  ;;  %v1334_v0 = vmul.f32 0.03125, %v1332_v40 }
 0xd63   :  { %v1336_v43 = vsub.f32 %v2406_v34, %v1334_v0  ;;  %v1337_v44 = vmul.f32 %v1335_v42, %v1335_v42 }
 0xd65   :  { %v1339_v1 = vsel %vm88_vm0, %v1337_v44, 0.0  ;;  %v1338_v45 = vmul.f32 %v1336_v43, %v1336_v43 }
 0xd66   :  { %1340 = vadd.xlane.f32.xlu0 %v1339_v1 }
 0xd67   :  { %v1342_v47 = vsel %vm88_vm0, %v1338_v45, 0.0 }
 0xd6a   :  { %1343 = vadd.xlane.f32.xlu0 %v1342_v47 }
 0xdf3   :  { %v1341_v50 = vpop.xlane.xlu0 %1340 }
 0xdf4   :  { %v1345_v52 = vmul.f32 0.03125, %v1341_v50 }
 0xdf6   :  { %v1347_v53 = vadd.f32 1e-05, %v1345_v52 }
 0xdf7   :  { %v1344_v54 = vpop.xlane.xlu0 %1343 }
 0xdf8   :  { %1960 = vrsqrt.f32 %v1347_v53  ;;  %v1346_v55 = vmul.f32 0.03125, %v1344_v54 }
 0xdfa   :  { %v1348_v56 = vadd.f32 1e-05, %v1346_v55 }
 0xdfc   :  { %1962 = vrsqrt.f32 %v1348_v56 }
 0xe02   :  { %v1961_v57 = vpop.eup %1960 }
 0xe03   :  { %v1351_v4 = vmul.f32 %v1961_v57, %v1335_v42 }
 0xe05   :  { %v1359_v58 = vmul.f32 %v1683_v37, %v1351_v4 }
 0xe06   :  { %v1963_v41 = vpop.eup %1962 }
 0xe07   :  { %v1352_v59 = vmul.f32 %v1963_v41, %v1336_v43  ;;  %v1367_v2 = vadd.f32 %v1684_v60, %v1359_v58 }
 0xe09   :  { %v1360_v63 = vmul.f32 %v1683_v37, %v1352_v59  ;;  %v1695_v59 = vld [vmem:[%s2507_s17] ss:$0 sm:$0xff] }
 0xe0b   :  { %v1368_v5 = vadd.f32 %v1684_v60, %v1360_v63 }
 0xe0d   :  { %v1369_v6 = vpack.c.bf16 %v1368_v5, %v1367_v2  ;;  %v1696_v2 = vld [vmem:[%s2508_s18] ss:$0 sm:$0xff] }
 0xe0f   :  { %1884 = vmatmul.mubr.msk.bf16.vlgmr.msra.gmra.mrb[40].mxu0 %vm88_vm0, %v1369_v6 }
 0xee2   :  { %v1430_v3 = vpop.f32.mrb[40].mxu0 }
 0xee3   :  { %v1431_v10 = vadd.f32 %v1685_v9, %v1430_v3  ;;  %v1885_v62 = vpop.f32.mrb[41].mxu0 }
 0xee4   :  { %v1433_v11 = vpop.f32.mrb[42].mxu0 }
 0xee5   :  { %v1439_v12 = vmul.f32 0.044715, %v1431_v10  ;;  %v1434_v13 = vadd.f32 %v1685_v9, %v1433_v11  ;;  %v1886_v14 = vpop.f32.mrb[43].mxu0  ;;  %v1437_v26 = vmul.f32 0.5, %v1431_v10 }
 0xee7   :  { %v1441_v15 = vmul.f32 %v1439_v12, %v1431_v10  ;;  %v1440_v17 = vmul.f32 0.044715, %v1434_v13  ;;  %v1438_v27 = vmul.f32 0.5, %v1434_v13 }
 0xee9   :  { %v1443_v18 = vmul.f32 %v1441_v15, %v1431_v10  ;;  %v1442_v19 = vmul.f32 %v1440_v17, %v1434_v13 }
 0xeeb   :  { %v1445_v20 = vadd.f32 %v1443_v18, %v1431_v10  ;;  %v1444_v21 = vmul.f32 %v1442_v19, %v1434_v13 }
 0xeed   :  { %v1447_v61 = vmul.f32 0.7978846, %v1445_v20  ;;  %v1446_v16 = vadd.f32 %v1444_v21, %v1434_v13 }
 0xeef   :  { %1964 = vtanh.f32 %v1447_v61  ;;  %v1448_v22 = vmul.f32 0.7978846, %v1446_v16 }
 0xef1   :  { %1966 = vtanh.f32 %v1448_v22 }
 0xef9   :  { %v1965_v23 = vpop.eup %1964 }
 0xefa   :  { %v1451_v24 = vadd.f32 1.0, %v1965_v23 }
 0xefb   :  { %v1967_v25 = vpop.eup %1966 }
 0xefc   :  { %v1452_v28 = vadd.f32 1.0, %v1967_v25  ;;  %v1453_v29 = vmul.f32 %v1451_v24, %v1437_v26  ;;  %v1697_v24 = vld [vmem:[%s2509_s19] ss:$0 sm:$0xff] }
 0xefe   :  { %v1454_v30 = vmul.f32 %v1452_v28, %v1438_v27  ;;  %v1698_v27 = vld [vmem:[%s2510_s20] ss:$0 sm:$0xff] }
 0xf00   :  { %v1455_v32 = vpack.c.bf16 %v1454_v30, %v1453_v29 }
 0xf02   :  { %1896 = vmatmul.mubr.msk.bf16.vlgmr.msra.gmra.mrb[40].mxu1 %vm1495_vm7, %v1455_v32 }
 0xfd5   :  { %v1533_v35 = vpop.f32.mrb[40].mxu1 }
 0xfd6   :  { %v1534_v36 = vadd.f32 %v1689_v33, %v1533_v35  ;;  %v1897_v38 = vpop.f32.mrb[41].mxu1 }
 0xfd7   :  { %v1536_v39 = vpop.f32.mrb[42].mxu1 }
 0xfd8   :  { %v1537_v40 = vadd.f32 %v1689_v33, %v1536_v39  ;;  %v1898_v42 = vpop.f32.mrb[43].mxu1  ;;  %v1540_v0 = vadd.f32 %v1534_v36, %v2403_v31 }
 0xfda   :  { %v1544_v43 = vsel %vm88_vm0, %v1540_v0, 0.0  ;;  %v1541_v44 = vadd.f32 %v1537_v40, %v2406_v34 }
 0xfdb   :  { %1545 = vadd.xlane.f32.xlu0 %v1544_v43 }
 0xfdc   :  { %v1547_v1 = vsel %vm88_vm0, %v1541_v44, 0.0 }
 0xfdd   :  { %1548 = vadd.xlane.f32.xlu1 %v1547_v1 }
0x1068   :  { %v1546_v45 = vpop.xlane.xlu0 %1545 }
0x1069   :  { %v1550_v47 = vmul.f32 0.03125, %v1546_v45 }
0x106a   :  { %v1549_v48 = vpop.xlane.xlu1 %1548 }
0x106b   :  { %v1552_v49 = vsub.f32 %v1540_v0, %v1550_v47  ;;  %v1551_v50 = vmul.f32 0.03125, %v1549_v48 }
0x106d   :  { %v1553_v52 = vsub.f32 %v1541_v44, %v1551_v50  ;;  %v1554_v53 = vmul.f32 %v1552_v49, %v1552_v49 }
0x106f   :  { %v1556_v54 = vsel %vm88_vm0, %v1554_v53, 0.0  ;;  %v1555_v55 = vmul.f32 %v1553_v52, %v1553_v52 }
0x1070   :  { %1557 = vadd.xlane.f32.xlu0 %v1556_v54 }
0x1071   :  { %v1559_v31 = vsel %vm88_vm0, %v1555_v55, 0.0 }
0x1072   :  { %1560 = vadd.xlane.f32.xlu1 %v1559_v31 }
0x10fd   :  { %v1558_v56 = vpop.xlane.xlu0 %1557 }
0x10fe   :  { %v1562_v34 = vmul.f32 0.03125, %v1558_v56 }
0x10ff   :  { %v1561_v57 = vpop.xlane.xlu1 %1560 }
0x1100   :  { %v1564_v4 = vadd.f32 1e-05, %v1562_v34  ;;  %v1563_v37 = vmul.f32 0.03125, %v1561_v57 }
0x1102   :  { %1968 = vrsqrt.f32 %v1564_v4  ;;  %v1565_v41 = vadd.f32 1e-05, %v1563_v37 }
0x1104   :  { %1970 = vrsqrt.f32 %v1565_v41 }
0x110c   :  { %v1969_v58 = vpop.eup %1968 }
0x110d   :  { %v1568_v60 = vmul.f32 %v1969_v58, %v1552_v49 }
0x110e   :  { %v1971_v63 = vpop.eup %1970 }
0x110f   :  { %v1576_v5 = vmul.f32 %v1695_v59, %v1568_v60  ;;  %v1569_v6 = vmul.f32 %v1971_v63, %v1553_v52 }
0x1111   :  { %v1584_v7 = vadd.f32 %v1696_v2, %v1576_v5  ;;  %v1577_v8 = vmul.f32 %v1695_v59, %v1569_v6 }
0x1113   :  { %v1588_v46 = vsel %vm88_vm0, %v1584_v7, 0.0  ;;  %v1585_v51 = vadd.f32 %v1696_v2, %v1577_v8 }
0x1114   :  { %1589 = vadd.xlane.f32.xlu0 %v1588_v46 }
0x1115   :  { %v1591_v9 = vsel %vm88_vm0, %v1585_v51, 0.0 }
0x1116   :  { %1592 = vadd.xlane.f32.xlu1 %v1591_v9 }
0x11a1   :  { %v1590_v3 = vpop.xlane.xlu0 %1589 }
0x11a2   :  { %v1594_v10 = vmul.f32 0.03125, %v1590_v3 }
0x11a3   :  { %v1593_v62 = vpop.xlane.xlu1 %1592 }
0x11a4   :  { %v1596_v11 = vsub.f32 %v1584_v7, %v1594_v10  ;;  %v1595_v12 = vmul.f32 0.03125, %v1593_v62 }
0x11a6   :  { %v1597_v13 = vsub.f32 %v1585_v51, %v1595_v12  ;;  %v1598_v14 = vmul.f32 %v1596_v11, %v1596_v11 }
0x11a8   :  { %v1600_v15 = vsel %vm88_vm0, %v1598_v14, 0.0  ;;  %v1599_v17 = vmul.f32 %v1597_v13, %v1597_v13 }
0x11a9   :  { %1601 = vadd.xlane.f32.xlu0 %v1600_v15 }
0x11aa   :  { %v1603_v18 = vsel %vm88_vm0, %v1599_v17, 0.0 }
0x11ab   :  { %1604 = vadd.xlane.f32.xlu1 %v1603_v18 }
0x1236   :  { %v1602_v19 = vpop.xlane.xlu0 %1601 }
0x1237   :  { %v1606_v20 = vmul.f32 0.03125, %v1602_v19 }
0x1238   :  { %v1605_v21 = vpop.xlane.xlu1 %1604 }
0x1239   :  { %v1608_v61 = vadd.f32 1e-05, %v1606_v20  ;;  %v1607_v16 = vmul.f32 0.03125, %v1605_v21 }
0x123b   :  { %1972 = vrsqrt.f32 %v1608_v61  ;;  %v1609_v22 = vadd.f32 1e-05, %v1607_v16 }
0x123d   :  { %1974 = vrsqrt.f32 %v1609_v22 }
0x1245   :  { %v1973_v23 = vpop.eup %1972 }
0x1246   :  { %v1612_v25 = vmul.f32 %v1973_v23, %v1596_v11 }
0x1247   :  { %v1975_v26 = vpop.eup %1974 }
0x1248   :  { %v1613_v28 = vmul.f32 %v1975_v26, %v1597_v13  ;;  %v1620_v29 = vmul.f32 %v1697_v24, %v1612_v25 }
0x124a   :  { %v1621_v30 = vmul.f32 %v1697_v24, %v1613_v28  ;;  %v1628_v32 = vadd.f32 %v1698_v27, %v1620_v29 }
0x124c   :  { %v1629_v33 = vadd.f32 %v1698_v27, %v1621_v30  ;;  %1630 = vst.msk [vmem:[#allocation6] sm:$0xff] %vm88_vm0, %v1628_v32 }
0x124e   :  { %1631 = vst.msk [vmem:[#allocation6 + $0x8] sm:$0xff] %vm88_vm0, %v1629_v33 }
0x124f   :  { %2009 = shalt.err (!%p2006_p12)
}
0x1250   :  { %s2010_s6 = scalar_lea.hbm %s2511_s21, 256 }
0x1251   :  { %p2011_p13 = scmp.ne.s32.totalorder %s2511_s21, %s2010_s6  ;;  %p2014_p0 = scmp.lt.u32.totalorder %s2010_s6, %s2511_s21 }
0x1253   :  { %p2016_p1 = pnand %p2014_p0, %p2011_p13 }
0x1255   :  { %2019 = shalt.err (!%p2016_p1)
}
0x1256   :  { %1643 = dma.vmem_to_hbm [thread:$0]  %s1638_s30, 256, %s2511_s21, [#allocation5], %s2025_s22, %s2025_s22, %s2026_s23  }
0x1257   :  { %2022 = dma.done.wait [#allocation5], 256  }
0x1258   :  { %2023 = vsyncadd [#allocation5], 4294967040 }
0x1259   :  { %1647 = vsyncpa [#allocation4], 1 }
0x125a   :  { %1648 = vsyncpa [#allocation5], 1 }

// kernel: classic_model_forward.2
= control target key start
LH: loop header
LB: loop body
LE: loop exit
PB: predicated region body
PF: predicated region fallthrough
CT: control target
= control target key end

     0   :  { %vm67_vm0 = vcmask 261120   ;;  %v1839_v18 = vmov 0.0   ;;  %vm1840_vm1 = vmmov 0   ;;  %vm313_vm2 = vcmask 64512   ;;  %s1844_s22 = smov 8   ;;  %s2250_s0 = inlined_call_operand.vmem [shape: f32[2,8,32], index: 0, kind: input, shape index: {}, may-alias: {0,18}]   ;;  %s2251_s1 = inlined_call_operand.vmem [shape: f32[8,32], index: 1, kind: input, shape index: {}]   ;;  %s2252_s4 = inlined_call_operand.vmem [shape: bf16[32,32], index: 4, kind: input, shape index: {}]   ;;  %s2253_s6 = inlined_call_operand.vmem [shape: bf16[32,32], index: 6, kind: input, shape index: {}]   ;;  %s2254_s8 = inlined_call_operand.vmem [shape: bf16[32,32], index: 8, kind: input, shape index: {}]   ;;  %s2255_s2 = inlined_call_operand.vmem [shape: f32[1,32], index: 2, kind: input, shape index: {}]   ;;  %s2256_s3 = inlined_call_operand.vmem [shape: f32[1,32], index: 3, kind: input, shape index: {}]   ;;  %s2257_s7 = inlined_call_operand.vmem [shape: f32[1,32], index: 7, kind: input, shape index: {}]   ;;  %s2258_s5 = inlined_call_operand.vmem [shape: f32[1,32], index: 5, kind: input, shape index: {}]   ;;  %s2259_s9 = inlined_call_operand.vmem [shape: f32[1,32], index: 9, kind: input, shape index: {}]   ;;  %s2260_s10 = inlined_call_operand.vmem [shape: bf16[32,32], index: 10, kind: input, shape index: {}]   ;;  %s2261_s11 = inlined_call_operand.vmem [shape: f32[1,32], index: 11, kind: input, shape index: {}]   ;;  %s2262_s14 = inlined_call_operand.vmem [shape: bf16[32,64], index: 14, kind: input, shape index: {}]   ;;  %s2263_s12 = inlined_call_operand.vmem [shape: f32[1,32], index: 12, kind: input, shape index: {}]   ;;  %s2264_s13 = inlined_call_operand.vmem [shape: f32[1,32], index: 13, kind: input, shape index: {}]   ;;  %s2265_s16 = inlined_call_operand.vmem [shape: bf16[64,32], index: 16, kind: input, shape index: {}]   ;;  %s2266_s15 = inlined_call_operand.vmem [shape: f32[1,64], index: 15, kind: input, shape index: {}]   ;;  %s2267_s17 = inlined_call_operand.vmem [shape: f32[1,32], index: 17, kind: input, shape index: {}]   ;;  %s2268_s18 = inlined_call_operand.vmem [shape: f32[2,8,32], index: 18, kind: output, shape index: {}, may-alias: {0,18}]  }
   0x1   :  { %2271 = sst [smem:[#allocation3_spill]] %s2250_s0  ;;  %1625 = vmatprep.subr.bf16.mxu0 %v1839_v18  ;;  %1633 = vmatprep.subr.bf16.mxu1 %v1839_v18  ;;  %v1782_v19 = vld [vmem:[%s2253_s6] sm:$0xff]   ;;  %v1784_v21 = vld [vmem:[%s2253_s6 + $0x8] sm:$0xff]   ;;  %vm435_vm3 = vcmask 1043456   ;;  %vm763_vm4 = vcmask 130112   ;;  %vm996_vm5 = vcmask 195712  }
   0x2   :  { %2272 = sst [smem:[#allocation4_spill]] %s2251_s1  ;;  %s2275_s29 = sld [smem:[#allocation3_spill]]  ;;  %1629 = vmatprep.mubr.msk.bf16.mxu0 %vm1840_vm1, %v1839_v18  ;;  %1634 = vmatpush3.bf16.msra.mxu1 %v1782_v19  ;;  %v1527_v30 = vld [vmem:[%s2255_s2] ss:$0 sm:$0xff]  ;;  %v1786_v40 = vld [vmem:[%s2254_s8 + $0x8] sm:$0xff]   ;;  %vm1229_vm6 = vcmask 261312  }
   0x3   :  { %2273 = sst [smem:[#allocation5_spill]] %s2252_s4  ;;  %1635 = vmatprep.subr.bf16.mxu1 %v1839_v18  ;;  %1637 = vmatprep.mubr.msk.bf16.mxu1 %vm1840_vm1, %v1839_v18  ;;  %v1528_v34 = vld [vmem:[%s2256_s3] ss:$0 sm:$0xff]  ;;  %s1845_s4 = smov 16   ;;  %vm1474_vm7 = vcmask 523264  }
   0x4   :  { %2274 = sst [smem:[#allocation6_spill]] %s2263_s12  ;;  %s2276_s12 = sld [smem:[#allocation4_spill]]  ;;  %v1785_v38 = vld [vmem:[%s2254_s8] sm:$0xff]  }
   0x5   :  { %s2277_s21 = sld [smem:[#allocation5_spill]]  ;;  %v1533_v41 = vld [vmem:[%s2257_s7] ss:$0 sm:$0xff]  ;;  %s1846_s6 = smov 24  }
   0x6   :  { %1636 = vmatpush3.bf16.msra.mxu1 %v1784_v21  ;;  %v1529_v53 = vld [vmem:[%s2258_s5] ss:$0 sm:$0xff]  ;;  %s1841_s5 = smov 120   ;;  %s2278_s19 = sld [smem:[#allocation6_spill]] }
   0x7   :  { %1649 = vmatprep.subr.bf16.mxu1 %v1839_v18  ;;  %v1537_v56 = vld [vmem:[%s2259_s9] ss:$0 sm:$0xff]  ;;  %s1842_s9 = smov 112  }
   0x8   :  { %v60_v0 = vld [vmem:[%s2275_s29] sm:$0xff]  ;;  %v61_v2 = vld [vmem:[%s2275_s29 + $0x8] sm:$0xff] }
   0xa   :  { %v62_v1 = vld [vmem:[%s2276_s12] sm:$0xff] }
   0xb   :  { %v1951_v3 = vadd.f32 %v62_v1, %v60_v0  ;;  %v1953_v4 = vadd.f32 %v62_v1, %v61_v2  ;;  %v1781_v17 = vld [vmem:[%s2277_s21] sm:$0xff]   ;;  %v1783_v20 = vld [vmem:[%s2277_s21 + $0x8] sm:$0xff]   ;;  %s1843_s21 = smov 104  }
   0xc   :  { %1626 = vmatpush3.bf16.msra.mxu0 %v1781_v17 }
   0xd   :  { %v68_v5 = vsel %vm67_vm0, %v1951_v3, 0.0  ;;  %v71_v6 = vsel %vm67_vm0, %v1953_v4, 0.0  ;;  %1627 = vmatprep.subr.bf16.mxu0 %v1839_v18 }
   0xe   :  { %69 = vadd.xlane.f32.xlu0 %v68_v5 }
  0x10   :  { %1628 = vmatpush3.bf16.msra.mxu0 %v1783_v20 }
  0x11   :  { %1641 = vmatprep.subr.bf16.mxu0 %v1839_v18 }
  0x12   :  { %72 = vadd.xlane.f32.xlu0 %v71_v6 }
  0x9b   :  { %v70_v7 = vpop.xlane.xlu0 %69 }
  0x9c   :  { %v75_v8 = vmul.f32 0.03125, %v70_v7 }
  0x9e   :  { %v77_v9 = vsub.f32 %v1951_v3, %v75_v8 }
  0x9f   :  { %v73_v10 = vpop.xlane.xlu0 %72 }
  0xa0   :  { %v76_v11 = vmul.f32 0.03125, %v73_v10  ;;  %v79_v12 = vmul.f32 %v77_v9, %v77_v9 }
  0xa2   :  { %v78_v13 = vsub.f32 %v1953_v4, %v76_v11  ;;  %v81_v14 = vsel %vm67_vm0, %v79_v12, 0.0 }
  0xa3   :  { %82 = vadd.xlane.f32.xlu1 %v81_v14 }
  0xa4   :  { %v80_v15 = vmul.f32 %v78_v13, %v78_v13 }
  0xa6   :  { %v84_v16 = vsel %vm67_vm0, %v80_v15, 0.0 }
  0xa7   :  { %85 = vadd.xlane.f32.xlu1 %v84_v16 }
 0x130   :  { %v83_v22 = vpop.xlane.xlu1 %82 }
 0x131   :  { %v87_v23 = vmul.f32 0.03125, %v83_v22 }
 0x133   :  { %v89_v24 = vadd.f32 1e-05, %v87_v23 }
 0x134   :  { %v86_v25 = vpop.xlane.xlu1 %85 }
 0x135   :  { %1795 = vrsqrt.f32 %v89_v24  ;;  %v88_v26 = vmul.f32 0.03125, %v86_v25 }
 0x137   :  { %v90_v27 = vadd.f32 1e-05, %v88_v26 }
 0x139   :  { %1797 = vrsqrt.f32 %v90_v27 }
 0x13f   :  { %v1796_v28 = vpop.eup %1795 }
 0x140   :  { %v93_v29 = vmul.f32 %v1796_v28, %v77_v9 }
 0x142   :  { %v101_v33 = vmul.f32 %v1527_v30, %v93_v29 }
 0x143   :  { %v1798_v31 = vpop.eup %1797 }
 0x144   :  { %v94_v32 = vmul.f32 %v1798_v31, %v78_v13  ;;  %v109_v36 = vadd.f32 %v1528_v34, %v101_v33 }
 0x146   :  { %v102_v35 = vmul.f32 %v1527_v30, %v94_v32 }
 0x148   :  { %v110_v37 = vadd.f32 %v1528_v34, %v102_v35 }
 0x14a   :  { %v111_v39 = vpack.c.bf16 %v110_v37, %v109_v36 }
 0x14c   :  { %1630 = vmatmul.mubr.msk.bf16.vlgmr.msra.gmra.mrb[0].mxu0 %vm67_vm0, %v111_v39  ;;  %1638 = vmatmul.mubr.msk.bf16.vlgmr.msra.gmra.mrb[0].mxu1 %vm67_vm0, %v111_v39 }
 0x14d   :  { %1642 = vmatpush3.bf16.msra.mxu0 %v1785_v38  ;;  %1645 = vmatprep.mubr.msk.bf16.mxu0 %vm1840_vm1, %v1839_v18 }
 0x14e   :  { %1643 = vmatprep.subr.bf16.mxu0 %v1839_v18  ;;  %1651 = vmatprep.mubr.msk.bf16.mxu1 %vm1840_vm1, %v1839_v18 }
 0x151   :  { %1644 = vmatpush3.bf16.msra.mxu0 %v1786_v40 }
 0x152   :  { %1655 = vmatprep.subr.bf16.mxu0 %v1839_v18 }
 0x154   :  { %1646 = vmatmul.mubr.msk.bf16.vlgmr.msra.gmra.mrb[4].mxu0 %vm67_vm0, %v111_v39 }
 0x155   :  { %1657 = vmatprep.mubr.msk.bf16.mxu0 %vm1840_vm1, %v1839_v18 }
 0x21f   :  { %v172_v42 = vpop.f32.mrb[0].mxu0  ;;  %v236_v43 = vpop.f32.mrb[0].mxu1 }
 0x220   :  { %v237_v44 = vadd.f32 %v1533_v41, %v236_v43  ;;  %v1631_v45 = vpop.f32.mrb[1].mxu0  ;;  %v1639_v46 = vpop.f32.mrb[1].mxu1  ;;  %v173_v57 = vadd.f32 %v1529_v53, %v172_v42 }
 0x221   :  { %v175_v47 = vpop.f32.mrb[2].mxu0  ;;  %v239_v48 = vpop.f32.mrb[2].mxu1 }
 0x222   :  { %v2011_v49 = vpack.c.bf16 %v237_v44, %v237_v44  ;;  %v240_v50 = vadd.f32 %v1533_v41, %v239_v48  ;;  %v1632_v51 = vpop.f32.mrb[3].mxu0  ;;  %v1640_v52 = vpop.f32.mrb[3].mxu1  ;;  %v176_v60 = vadd.f32 %v1529_v53, %v175_v47  ;;  %v2027_v0 = vpack.c.bf16 %v173_v57, %v173_v57 }
 0x224   :  { %v2016_v54 = vpack.c.bf16 %v240_v50, %v240_v50  ;;  %v318_v55 = vsel %vm313_vm2, %v2011_v49, 0  ;;  %v2031_v6 = vpack.c.bf16 %v176_v60, %v176_v60 }
 0x225   :  { %1650 = vmatpush3.bf16.xpose.msra.mxu1 %v318_v55 }
 0x226   :  { %v364_v58 = vsel %vm313_vm2, %v2016_v54, 0  ;;  %1661 = vmatprep.subr.bf16.mxu1 %v1839_v18 }
 0x227   :  { %v300_v59 = vpop.f32.mrb[4].mxu0  ;;  %1656 = vmatpush3.bf16.xpose.msra.mxu0 %v364_v58 }
 0x228   :  { %v301_v61 = vadd.f32 %v1537_v56, %v300_v59  ;;  %v1647_v62 = vpop.f32.mrb[5].mxu0  ;;  %1667 = vmatprep.subr.bf16.mxu0 %v1839_v18 }
 0x229   :  { %v303_v63 = vpop.f32.mrb[6].mxu0 }
 0x22a   :  { %v2029_v1 = vpack.c.bf16 %v301_v61, %v301_v61  ;;  %v304_v2 = vadd.f32 %v1537_v56, %v303_v63  ;;  %v1648_v5 = vpop.f32.mrb[7].mxu0 }
 0x22c   :  { %v2033_v7 = vpack.c.bf16 %v304_v2, %v304_v2  ;;  %1652 = vmatmul.mubr.msk.bf16.vlgmr.msra.gmra.mrb[4].mxu1 %vm313_vm2, %v2027_v0  ;;  %v437_v8 = vsel %vm435_vm3, %v2029_v1, 0 }
 0x22d   :  { %1662 = vmatpush3.bf16.msra.mxu1 %v437_v8  ;;  %1663 = vmatprep.mubr.msk.bf16.mxu1 %vm1840_vm1, %v1839_v18 }
 0x22e   :  { %1658 = vmatmul.mubr.msk.bf16.vlgmr.msra.gmra.mrb[8].mxu0 %vm313_vm2, %v2031_v6  ;;  %v483_v9 = vsel %vm435_vm3, %v2033_v7, 0  ;;  %1673 = vmatprep.subr.bf16.mxu1 %v1839_v18 }
 0x22f   :  { %1668 = vmatpush3.bf16.msra.mxu0 %v483_v9  ;;  %1669 = vmatprep.mubr.msk.bf16.mxu0 %vm1840_vm1, %v1839_v18 }
 0x230   :  { %1679 = vmatprep.subr.bf16.mxu0 %v1839_v18 }
 0x2ff   :  { %v354_v10 = vpop.f32.mrb[4].mxu1 }
 0x300   :  { %v406_v11 = vmul.f32 0.35355338, %v354_v10  ;;  %v1653_v12 = vpop.f32.mrb[5].mxu1 }
 0x301   :  { %v357_v13 = vpop.f32.mrb[6].mxu1  ;;  %v400_v14 = vpop.f32.mrb[8].mxu0 }
 0x302   :  { %v407_v15 = vmul.f32 0.35355338, %v400_v14  ;;  %v1654_v16 = vpop.f32.mrb[7].mxu1  ;;  %v1659_v17 = vpop.f32.mrb[9].mxu0  ;;  %v408_v19 = vsel %vm313_vm2, %v406_v11, -inf }
 0x303   :  { %409 = vmax.xlane.f32.xlu0 %v408_v19  ;;  %v403_v20 = vpop.f32.mrb[10].mxu0 }
 0x304   :  { %v1660_v21 = vpop.f32.mrb[11].mxu0  ;;  %v411_v22 = vsel %vm313_vm2, %v407_v15, -inf }
 0x305   :  { %412 = vmax.xlane.f32.xlu1 %v411_v22 }
 0x316   :  { %583 = vrot.lane.b32.xlu1 %v2016_v54, %s1841_s5 }
 0x390   :  { %v410_v23 = vpop.xlane.xlu0 %409 }
 0x391   :  { %v414_v24 = vsub.f32 %v406_v11, %v410_v23 }
 0x392   :  { %v413_v25 = vpop.xlane.xlu1 %412 }
 0x393   :  { %v416_v26 = vmul.f32 1.442695, %v414_v24  ;;  %v415_v27 = vsub.f32 %v407_v15, %v413_v25 }
 0x395   :  { %1799 = vpow2.f32 %v416_v26  ;;  %v418_v28 = vmul.f32 1.442695, %v415_v27 }
 0x396   :  { %v584_v33 = vpop.permute.xlu1 %583 }
 0x397   :  { %1801 = vpow2.f32 %v418_v28  ;;  %v589_v44 = vsel %vm313_vm2, %v584_v33, 0 }
 0x39f   :  { %v1800_v29 = vpop.eup %1799 }
 0x3a0   :  { %v420_v30 = vsel %vm313_vm2, %v1800_v29, 0.0 }
 0x3a1   :  { %v1802_v31 = vpop.eup %1801  ;;  %421 = vadd.xlane.f32.xlu0 %v420_v30 }
 0x3a2   :  { %v423_v32 = vsel %vm313_vm2, %v1802_v31, 0.0 }
 0x3a3   :  { %424 = vadd.xlane.f32.xlu1 %v423_v32 }
 0x3b4   :  { %528 = vrot.lane.b32.xlu1 %v2027_v0, %s1841_s5 }
 0x3b7   :  { %531 = vrot.lane.b32.xlu0 %v2011_v49, %s1841_s5 }
 0x3b8   :  { %580 = vrot.lane.b32.xlu1 %v2031_v6, %s1841_s5 }
 0x42e   :  { %v422_v34 = vpop.xlane.xlu0 %421 }
 0x42f   :  { %1803 = vrcp.f32 %v422_v34 }
 0x430   :  { %v425_v35 = vpop.xlane.xlu1 %424 }
 0x431   :  { %1805 = vrcp.f32 %v425_v35 }
 0x432   :  { %v532_v39 = vpop.permute.xlu0 %531 }
 0x433   :  { %v537_v42 = vsel %vm313_vm2, %v532_v39, 0 }
 0x434   :  { %v529_v45 = vpop.permute.xlu1 %528 }
 0x438   :  { %v581_v46 = vpop.permute.xlu1 %580 }
 0x439   :  { %v1804_v36 = vpop.eup %1803 }
 0x43a   :  { %v428_v37 = vmul.f32 %v1804_v36, %v1800_v29 }
 0x43b   :  { %v1806_v38 = vpop.eup %1805 }
 0x43c   :  { %v429_v40 = vmul.f32 %v1806_v38, %v1802_v31  ;;  %v430_v41 = vpack.c.bf16 %v428_v37, %v428_v37 }
 0x43e   :  { %1664 = vmatmul.mubr.msk.bf16.vlgmr.msra.gmra.mrb[8].mxu1 %vm313_vm2, %v430_v41  ;;  %v431_v43 = vpack.c.bf16 %v429_v40, %v429_v40 }
 0x43f   :  { %1674 = vmatpush3.bf16.xpose.msra.mxu1 %v537_v42  ;;  %1675 = vmatprep.mubr.msk.bf16.mxu1 %vm1840_vm1, %v1839_v18 }
 0x440   :  { %1670 = vmatmul.mubr.msk.bf16.vlgmr.msra.gmra.mrb[12].mxu0 %vm313_vm2, %v431_v43  ;;  %1685 = vmatprep.subr.bf16.mxu1 %v1839_v18 }
 0x441   :  { %1680 = vmatpush3.bf16.xpose.msra.mxu0 %v589_v44  ;;  %1681 = vmatprep.mubr.msk.bf16.mxu0 %vm1840_vm1, %v1839_v18 }
 0x442   :  { %1691 = vmatprep.subr.bf16.mxu0 %v1839_v18 }
 0x446   :  { %1676 = vmatmul.mubr.msk.bf16.vlgmr.msra.gmra.mrb[12].mxu1 %vm313_vm2, %v529_v45 }
 0x447   :  { %1687 = vmatprep.mubr.msk.bf16.mxu1 %vm1840_vm1, %v1839_v18 }
 0x448   :  { %1682 = vmatmul.mubr.msk.bf16.vlgmr.msra.gmra.mrb[16].mxu0 %vm313_vm2, %v581_v46 }
 0x449   :  { %1693 = vmatprep.mubr.msk.bf16.mxu0 %vm1840_vm1, %v1839_v18 }
 0x511   :  { %v473_v47 = vpop.f32.mrb[8].mxu1 }
 0x512   :  { %525 = vst.msk [vmem:[#allocation2] sm:$0xff] %vm313_vm2, %v473_v47  ;;  %v1665_v48 = vpop.f32.mrb[9].mxu1 }
 0x513   :  { %v476_v50 = vpop.f32.mrb[10].mxu1  ;;  %v519_v51 = vpop.f32.mrb[12].mxu0 }
 0x514   :  { %526 = vst.msk [vmem:[#allocation2 + $0x8] sm:$0xff] %vm313_vm2, %v519_v51  ;;  %v1666_v52 = vpop.f32.mrb[11].mxu1  ;;  %v1671_v53 = vpop.f32.mrb[13].mxu0 }
 0x515   :  { %v522_v55 = vpop.f32.mrb[14].mxu0 }
 0x516   :  { %v1672_v56 = vpop.f32.mrb[15].mxu0 }
 0x519   :  { %v573_v57 = vpop.f32.mrb[12].mxu1 }
 0x51a   :  { %v631_v58 = vmul.f32 0.35355338, %v573_v57  ;;  %v1677_v59 = vpop.f32.mrb[13].mxu1 }
 0x51b   :  { %v576_v60 = vpop.f32.mrb[14].mxu1  ;;  %v625_v61 = vpop.f32.mrb[16].mxu0 }
 0x51c   :  { %v632_v62 = vmul.f32 0.35355338, %v625_v61  ;;  %v1678_v63 = vpop.f32.mrb[15].mxu1  ;;  %v1683_v2 = vpop.f32.mrb[17].mxu0  ;;  %v633_v5 = vsel %vm313_vm2, %v631_v58, -inf }
 0x51d   :  { %634 = vmax.xlane.f32.xlu0 %v633_v5  ;;  %v628_v8 = vpop.f32.mrb[18].mxu0 }
 0x51e   :  { %v1684_v9 = vpop.f32.mrb[19].mxu0  ;;  %v636_v10 = vsel %vm313_vm2, %v632_v62, -inf }
 0x51f   :  { %637 = vmax.xlane.f32.xlu1 %v636_v10 }
 0x530   :  { %707 = vrot.lane.b32.xlu1 %v2033_v7, %s1841_s5 }
 0x534   :  { %768 = vrot.lane.b32.xlu1 %v2011_v49, %s1842_s9 }
 0x538   :  { %818 = vrot.lane.b32.xlu1 %v2016_v54, %s1842_s9 }
 0x53c   :  { %816 = vrot.lane.b32.xlu1 %v2031_v6, %s1842_s9 }
 0x5aa   :  { %v635_v11 = vpop.xlane.xlu0 %634 }
 0x5ab   :  { %v639_v12 = vsub.f32 %v631_v58, %v635_v11 }
 0x5ac   :  { %v638_v13 = vpop.xlane.xlu1 %637 }
 0x5ad   :  { %v641_v14 = vmul.f32 1.442695, %v639_v12  ;;  %v640_v15 = vsub.f32 %v632_v62, %v638_v13 }
 0x5af   :  { %1807 = vpow2.f32 %v641_v14  ;;  %v643_v16 = vmul.f32 1.442695, %v640_v15 }
 0x5b0   :  { %v708_v17 = vpop.permute.xlu1 %707 }
 0x5b1   :  { %1809 = vpow2.f32 %v643_v16  ;;  %v713_v19 = vsel %vm435_vm3, %v708_v17, 0 }
 0x5b2   :  { %1692 = vmatpush3.bf16.msra.mxu0 %v713_v19 }
 0x5b3   :  { %1703 = vmatprep.subr.bf16.mxu0 %v1839_v18 }
 0x5b4   :  { %v769_v29 = vpop.permute.xlu1 %768 }
 0x5b5   :  { %v774_v35 = vsel %vm313_vm2, %v769_v29, 0 }
 0x5b8   :  { %v819_v34 = vpop.permute.xlu1 %818 }
 0x5b9   :  { %v1808_v20 = vpop.eup %1807  ;;  %v824_v37 = vsel %vm313_vm2, %v819_v34, 0 }
 0x5ba   :  { %v645_v21 = vsel %vm313_vm2, %v1808_v20, 0.0 }
 0x5bb   :  { %v1810_v22 = vpop.eup %1809  ;;  %646 = vadd.xlane.f32.xlu0 %v645_v21 }
 0x5bc   :  { %v648_v23 = vsel %vm313_vm2, %v1810_v22, 0.0  ;;  %v817_v39 = vpop.permute.xlu1 %816 }
 0x5bf   :  { %649 = vadd.xlane.f32.xlu0 %v648_v23 }
 0x5d5   :  { %658 = vrot.lane.b32.xlu0 %v2029_v1, %s1841_s5 }
 0x5d9   :  { %766 = vrot.lane.b32.xlu0 %v2027_v0, %s1842_s9 }
 0x648   :  { %v647_v24 = vpop.xlane.xlu0 %646 }
 0x649   :  { %1811 = vrcp.f32 %v647_v24 }
 0x64c   :  { %v650_v25 = vpop.xlane.xlu0 %649 }
 0x64d   :  { %1813 = vrcp.f32 %v650_v25 }
 0x650   :  { %v659_v26 = vpop.permute.xlu0 %658 }
 0x651   :  { %v664_v27 = vsel %vm435_vm3, %v659_v26, 0 }
 0x652   :  { %1686 = vmatpush3.bf16.msra.mxu1 %v664_v27 }
 0x653   :  { %v1812_v28 = vpop.eup %1811  ;;  %1697 = vmatprep.subr.bf16.mxu1 %v1839_v18 }
 0x654   :  { %v653_v30 = vmul.f32 %v1812_v28, %v1808_v20  ;;  %v767_v38 = vpop.permute.xlu0 %766 }
 0x656   :  { %v655_v31 = vpack.c.bf16 %v653_v30, %v653_v30 }
 0x657   :  { %v1814_v32 = vpop.eup %1813 }
 0x658   :  { %v654_v33 = vmul.f32 %v1814_v32, %v1810_v22  ;;  %1688 = vmatmul.mubr.msk.bf16.vlgmr.msra.gmra.mrb[16].mxu1 %vm313_vm2, %v655_v31 }
 0x659   :  { %1699 = vmatprep.mubr.msk.bf16.mxu1 %vm1840_vm1, %v1839_v18 }
 0x65a   :  { %v656_v36 = vpack.c.bf16 %v654_v33, %v654_v33 }
 0x65b   :  { %1698 = vmatpush3.bf16.xpose.msra.mxu1 %v774_v35 }
 0x65c   :  { %1694 = vmatmul.mubr.msk.bf16.vlgmr.msra.gmra.mrb[20].mxu0 %vm313_vm2, %v656_v36  ;;  %1709 = vmatprep.subr.bf16.mxu1 %v1839_v18 }
 0x65d   :  { %1704 = vmatpush3.bf16.xpose.msra.mxu0 %v824_v37  ;;  %1705 = vmatprep.mubr.msk.bf16.mxu0 %vm1840_vm1, %v1839_v18 }
 0x65e   :  { %1715 = vmatprep.subr.bf16.mxu0 %v1839_v18 }
 0x662   :  { %1700 = vmatmul.mubr.msk.bf16.vlgmr.msra.gmra.mrb[20].mxu1 %vm313_vm2, %v767_v38 }
 0x663   :  { %1711 = vmatprep.mubr.msk.bf16.mxu1 %vm1840_vm1, %v1839_v18 }
 0x664   :  { %1706 = vmatmul.mubr.msk.bf16.vlgmr.msra.gmra.mrb[24].mxu0 %vm313_vm2, %v817_v39 }
 0x665   :  { %1717 = vmatprep.mubr.msk.bf16.mxu0 %vm1840_vm1, %v1839_v18 }
 0x72b   :  { %v2115_v40 = vpop.f32.mrb[16].mxu1 }
 0x72c   :  { %v1689_v41 = vpop.f32.mrb[17].mxu1 }
 0x72d   :  { %v703_v42 = vpop.f32.mrb[18].mxu1 }
 0x72e   :  { %v1690_v43 = vpop.f32.mrb[19].mxu1 }
 0x72f   :  { %v2117_v44 = vpop.f32.mrb[20].mxu0 }
 0x730   :  { %v1695_v45 = vpop.f32.mrb[21].mxu0 }
 0x731   :  { %v752_v46 = vpop.f32.mrb[22].mxu0 }
 0x732   :  { %v1696_v47 = vpop.f32.mrb[23].mxu0 }
 0x735   :  { %v810_v48 = vpop.f32.mrb[20].mxu1 }
 0x736   :  { %v866_v50 = vmul.f32 0.35355338, %v810_v48  ;;  %v1701_v51 = vpop.f32.mrb[21].mxu1 }
 0x737   :  { %v813_v52 = vpop.f32.mrb[22].mxu1  ;;  %v860_v53 = vpop.f32.mrb[24].mxu0 }
 0x738   :  { %v867_v55 = vmul.f32 0.35355338, %v860_v53  ;;  %v1702_v56 = vpop.f32.mrb[23].mxu1  ;;  %v1707_v57 = vpop.f32.mrb[25].mxu0  ;;  %v868_v58 = vsel %vm313_vm2, %v866_v50, -inf }
 0x739   :  { %869 = vmax.xlane.f32.xlu0 %v868_v58  ;;  %v863_v59 = vpop.f32.mrb[26].mxu0 }
 0x73a   :  { %v1708_v60 = vpop.f32.mrb[27].mxu0  ;;  %v871_v61 = vsel %vm313_vm2, %v867_v55, -inf }
 0x73b   :  { %872 = vmax.xlane.f32.xlu1 %v871_v61 }
 0x74c   :  { %940 = vrot.lane.b32.xlu1 %v2033_v7, %s1842_s9 }
 0x750   :  { %1001 = vrot.lane.b32.xlu1 %v2011_v49, %s1843_s21 }
 0x754   :  { %1051 = vrot.lane.b32.xlu1 %v2016_v54, %s1843_s21 }
 0x758   :  { %1049 = vrot.lane.b32.xlu1 %v2031_v6, %s1843_s21 }
 0x7c6   :  { %v870_v62 = vpop.xlane.xlu0 %869 }
 0x7c7   :  { %v874_v63 = vsub.f32 %v866_v50, %v870_v62 }
 0x7c8   :  { %v873_v2 = vpop.xlane.xlu1 %872 }
 0x7c9   :  { %v876_v5 = vmul.f32 1.442695, %v874_v63  ;;  %v875_v8 = vsub.f32 %v867_v55, %v873_v2 }
 0x7cb   :  { %1815 = vpow2.f32 %v876_v5  ;;  %v878_v9 = vmul.f32 1.442695, %v875_v8 }
 0x7cc   :  { %v941_v10 = vpop.permute.xlu1 %940 }
 0x7cd   :  { %1817 = vpow2.f32 %v878_v9  ;;  %v946_v11 = vsel %vm435_vm3, %v941_v10, 0 }
 0x7ce   :  { %1716 = vmatpush3.bf16.msra.mxu0 %v946_v11 }
 0x7cf   :  { %1727 = vmatprep.subr.bf16.mxu0 %v1839_v18 }
 0x7d0   :  { %v1002_v19 = vpop.permute.xlu1 %1001 }
 0x7d4   :  { %v1052_v24 = vpop.permute.xlu1 %1051 }
 0x7d5   :  { %v1816_v49 = vpop.eup %1815  ;;  %v1057_v26 = vsel %vm313_vm2, %v1052_v24, 0 }
 0x7d6   :  { %v880_v54 = vsel %vm313_vm2, %v1816_v49, 0.0 }
 0x7d7   :  { %v1818_v12 = vpop.eup %1817  ;;  %881 = vadd.xlane.f32.xlu0 %v880_v54 }
 0x7d8   :  { %v883_v6 = vsel %vm313_vm2, %v1818_v12, 0.0  ;;  %v1050_v28 = vpop.permute.xlu1 %1049 }
 0x7db   :  { %884 = vadd.xlane.f32.xlu0 %v883_v6 }
 0x7f1   :  { %892 = vrot.lane.b32.xlu0 %v2029_v1, %s1842_s9 }
 0x7f5   :  { %999 = vrot.lane.b32.xlu0 %v2027_v0, %s1843_s21  ;;  %v1007_v0 = vsel %vm313_vm2, %v1002_v19, 0 }
 0x864   :  { %v882_v13 = vpop.xlane.xlu0 %881 }
 0x865   :  { %1819 = vrcp.f32 %v882_v13 }
 0x868   :  { %v885_v14 = vpop.xlane.xlu0 %884 }
 0x869   :  { %1821 = vrcp.f32 %v885_v14  ;;  %v1787_v14 = vld [vmem:[%s2260_s10] sm:$0xff]  }
 0x86c   :  { %v893_v15 = vpop.permute.xlu0 %892 }
 0x86d   :  { %v898_v16 = vsel %vm435_vm3, %v893_v15, 0  ;;  %v1788_v15 = vld [vmem:[%s2260_s10 + $0x8] sm:$0xff]  }
 0x86e   :  { %1710 = vmatpush3.bf16.msra.mxu1 %v898_v16 }
 0x86f   :  { %v1820_v17 = vpop.eup %1819  ;;  %1721 = vmatprep.subr.bf16.mxu1 %v1839_v18 }
 0x870   :  { %v888_v20 = vmul.f32 %v1820_v17, %v1816_v49  ;;  %v1000_v27 = vpop.permute.xlu0 %999 }
 0x872   :  { %v890_v21 = vpack.c.bf16 %v888_v20, %v888_v20 }
 0x873   :  { %v1822_v22 = vpop.eup %1821 }
 0x874   :  { %v889_v23 = vmul.f32 %v1822_v22, %v1818_v12  ;;  %1712 = vmatmul.mubr.msk.bf16.vlgmr.msra.gmra.mrb[24].mxu1 %vm313_vm2, %v890_v21 }
 0x875   :  { %1723 = vmatprep.mubr.msk.bf16.mxu1 %vm1840_vm1, %v1839_v18 }
 0x876   :  { %v891_v25 = vpack.c.bf16 %v889_v23, %v889_v23 }
 0x877   :  { %1722 = vmatpush3.bf16.xpose.msra.mxu1 %v1007_v0 }
 0x878   :  { %1718 = vmatmul.mubr.msk.bf16.vlgmr.msra.gmra.mrb[28].mxu0 %vm313_vm2, %v891_v25  ;;  %1733 = vmatprep.subr.bf16.mxu1 %v1839_v18 }
 0x879   :  { %1728 = vmatpush3.bf16.xpose.msra.mxu0 %v1057_v26  ;;  %1729 = vmatprep.mubr.msk.bf16.mxu0 %vm1840_vm1, %v1839_v18 }
 0x87a   :  { %1739 = vmatprep.subr.bf16.mxu0 %v1839_v18 }
 0x87e   :  { %1724 = vmatmul.mubr.msk.bf16.vlgmr.msra.gmra.mrb[28].mxu1 %vm313_vm2, %v1000_v27 }
 0x87f   :  { %1735 = vmatprep.mubr.msk.bf16.mxu1 %vm1840_vm1, %v1839_v18 }
 0x880   :  { %1730 = vmatmul.mubr.msk.bf16.vlgmr.msra.gmra.mrb[32].mxu0 %vm313_vm2, %v1050_v28 }
 0x881   :  { %1741 = vmatprep.mubr.msk.bf16.mxu0 %vm1840_vm1, %v1839_v18 }
 0x947   :  { %v934_v29 = vpop.f32.mrb[24].mxu1 }
 0x948   :  { %v1713_v30 = vpop.f32.mrb[25].mxu1 }
 0x949   :  { %v937_v31 = vpop.f32.mrb[26].mxu1 }
 0x94a   :  { %v1714_v32 = vpop.f32.mrb[27].mxu1 }
 0x94b   :  { %v982_v33 = vpop.f32.mrb[28].mxu0 }
 0x94c   :  { %v1719_v34 = vpop.f32.mrb[29].mxu0 }
 0x94d   :  { %v985_v35 = vpop.f32.mrb[30].mxu0 }
 0x94e   :  { %v1720_v36 = vpop.f32.mrb[31].mxu0 }
 0x951   :  { %v1043_v37 = vpop.f32.mrb[28].mxu1 }
 0x952   :  { %v1099_v38 = vmul.f32 0.35355338, %v1043_v37  ;;  %v1725_v39 = vpop.f32.mrb[29].mxu1 }
 0x953   :  { %v1046_v41 = vpop.f32.mrb[30].mxu1  ;;  %v1093_v42 = vpop.f32.mrb[32].mxu0 }
 0x954   :  { %v1100_v43 = vmul.f32 0.35355338, %v1093_v42  ;;  %v1726_v45 = vpop.f32.mrb[31].mxu1  ;;  %v1731_v46 = vpop.f32.mrb[33].mxu0  ;;  %v1101_v47 = vsel %vm313_vm2, %v1099_v38, -inf }
 0x955   :  { %1102 = vmax.xlane.f32.xlu0 %v1101_v47  ;;  %v1096_v48 = vpop.f32.mrb[34].mxu0 }
 0x956   :  { %v1732_v50 = vpop.f32.mrb[35].mxu0  ;;  %v1104_v51 = vsel %vm313_vm2, %v1100_v43, -inf }
 0x957   :  { %1105 = vmax.xlane.f32.xlu1 %v1104_v51  ;;  %v1789_v51 = vld [vmem:[%s2262_s14] sm:$0xff]  }
 0x968   :  { %1173 = vrot.lane.b32.xlu1 %v2033_v7, %s1843_s21 }
 0x96c   :  { %757 = vrot.lane.b32.xlu1 %v2115_v40, %s1844_s22 }
 0x970   :  { %759 = vrot.lane.b32.xlu1 %v2117_v44, %s1844_s22 }
 0x974   :  { %992 = vrot.lane.b32.xlu1 %v982_v33, %s1845_s4 }
 0x9e2   :  { %v1103_v52 = vpop.xlane.xlu0 %1102 }
 0x9e3   :  { %v1107_v53 = vsub.f32 %v1099_v38, %v1103_v52  ;;  %v1790_v52 = vld [vmem:[%s2262_s14 + $0x8] sm:$0xff]  }
 0x9e4   :  { %v1106_v55 = vpop.xlane.xlu1 %1105 }
 0x9e5   :  { %v1109_v56 = vmul.f32 1.442695, %v1107_v53  ;;  %v1108_v57 = vsub.f32 %v1100_v43, %v1106_v55 }
 0x9e7   :  { %1823 = vpow2.f32 %v1109_v56  ;;  %v1111_v58 = vmul.f32 1.442695, %v1108_v57 }
 0x9e8   :  { %v1174_v59 = vpop.permute.xlu1 %1173 }
 0x9e9   :  { %1825 = vpow2.f32 %v1111_v58  ;;  %v1179_v60 = vsel %vm435_vm3, %v1174_v59, 0 }
 0x9ea   :  { %1740 = vmatpush3.bf16.msra.mxu0 %v1179_v60 }
 0x9eb   :  { %1753 = vmatprep.subr.bf16.mxu0 %v1839_v18 }
 0x9ec   :  { %v758_v7 = vpop.permute.xlu1 %757 }
 0x9ed   :  { %764 = vst.msk [vmem:[#allocation2] sm:$0xff] %vm763_vm4, %v758_v7 }
 0x9f0   :  { %v760_v40 = vpop.permute.xlu1 %759 }
 0x9f1   :  { %v1824_v44 = vpop.eup %1823  ;;  %765 = vst.msk [vmem:[#allocation2 + $0x8] sm:$0xff] %vm763_vm4, %v760_v40  ;;  %v1561_v40 = vld [vmem:[%s2278_s19] ss:$0 sm:$0xff] }
 0x9f2   :  { %v1113_v61 = vsel %vm313_vm2, %v1824_v44, 0.0 }
 0x9f3   :  { %v1826_v62 = vpop.eup %1825  ;;  %1114 = vadd.xlane.f32.xlu0 %v1113_v61 }
 0x9f4   :  { %v993_v63 = vpop.permute.xlu1 %992  ;;  %v1116_v2 = vsel %vm313_vm2, %v1826_v62, 0.0 }
 0x9f5   :  { %998 = vst.msk [vmem:[#allocation2 + $0x8] sm:$0xff] %vm996_vm5, %v993_v63  ;;  %v1562_v63 = vld [vmem:[%s2264_s13] ss:$0 sm:$0xff] }
 0x9f7   :  { %1117 = vadd.xlane.f32.xlu0 %v1116_v2 }
 0xa0d   :  { %1125 = vrot.lane.b32.xlu0 %v2029_v1, %s1843_s21 }
 0xa11   :  { %990 = vrot.lane.b32.xlu0 %v934_v29, %s1845_s4  ;;  %v1557_v29 = vld [vmem:[%s2261_s11] ss:$0 sm:$0xff] }
 0xa80   :  { %v1115_v5 = vpop.xlane.xlu0 %1114 }
 0xa81   :  { %1827 = vrcp.f32 %v1115_v5 }
 0xa84   :  { %v1118_v8 = vpop.xlane.xlu0 %1117 }
 0xa85   :  { %1829 = vrcp.f32 %v1118_v8 }
 0xa88   :  { %v1126_v9 = vpop.permute.xlu0 %1125 }
 0xa89   :  { %v1131_v10 = vsel %vm435_vm3, %v1126_v9, 0 }
 0xa8a   :  { %1734 = vmatpush3.bf16.msra.mxu1 %v1131_v10  ;;  %v1791_v10 = vld [vmem:[%s2265_s16] sm:$0xff]  }
 0xa8b   :  { %v1828_v11 = vpop.eup %1827  ;;  %1745 = vmatprep.subr.bf16.mxu1 %v1839_v18 }
 0xa8c   :  { %v1121_v49 = vmul.f32 %v1828_v11, %v1824_v44  ;;  %v991_v54 = vpop.permute.xlu0 %990  ;;  %v1792_v11 = vld [vmem:[%s2265_s16 + $0x8] sm:$0xff]  }
 0xa8d   :  { %997 = vst.msk [vmem:[#allocation2] sm:$0xff] %vm996_vm5, %v991_v54  ;;  %v1794_v54 = vld [vmem:[%s2265_s16 + $0x18] sm:$0xff]  }
 0xa8e   :  { %v1123_v12 = vpack.c.bf16 %v1121_v49, %v1121_v49  ;;  %v1793_v49 = vld [vmem:[%s2265_s16 + $0x10] sm:$0xff]  }
 0xa8f   :  { %v1830_v6 = vpop.eup %1829 }
 0xa90   :  { %v1122_v13 = vmul.f32 %v1830_v6, %v1826_v62  ;;  %1736 = vmatmul.mubr.msk.bf16.vlgmr.msra.gmra.mrb[32].mxu1 %vm313_vm2, %v1123_v12  ;;  %v1563_v12 = vld [vmem:[%s2266_s15] ss:$0 sm:$0xff] }
 0xa91   :  { %1749 = vmatprep.mubr.msk.bf16.mxu1 %vm1840_vm1, %v1839_v18  ;;  %1746 = vmatpush3.bf16.msra.mxu1 %v1787_v14 }
 0xa92   :  { %v1124_v1 = vpack.c.bf16 %v1122_v13, %v1122_v13  ;;  %1747 = vmatprep.subr.bf16.mxu1 %v1839_v18 }
 0xa94   :  { %1742 = vmatmul.mubr.msk.bf16.vlgmr.msra.gmra.mrb[36].mxu0 %vm313_vm2, %v1124_v1 }
 0xa95   :  { %1757 = vmatprep.mubr.msk.bf16.mxu0 %vm1840_vm1, %v1839_v18  ;;  %1748 = vmatpush3.bf16.msra.mxu1 %v1788_v15 }
 0xa96   :  { %1761 = vmatprep.subr.bf16.mxu1 %v1839_v18  ;;  %1754 = vmatpush3.bf16.msra.mxu0 %v1789_v51 }
 0xa97   :  { %1755 = vmatprep.subr.bf16.mxu0 %v1839_v18 }
 0xa9a   :  { %1756 = vmatpush3.bf16.msra.mxu0 %v1790_v52 }
 0xb63   :  { %v1167_v16 = vpop.f32.mrb[32].mxu1 }
 0xb64   :  { %1223 = vrot.lane.b32.xlu0 %v1167_v16, %s1846_s6  ;;  %v1737_v17 = vpop.f32.mrb[33].mxu1 }
 0xb65   :  { %v1170_v19 = vpop.f32.mrb[34].mxu1 }
 0xb66   :  { %v1738_v20 = vpop.f32.mrb[35].mxu1 }
 0xb67   :  { %v1215_v21 = vpop.f32.mrb[36].mxu0 }
 0xb68   :  { %1225 = vrot.lane.b32.xlu1 %v1215_v21, %s1846_s6  ;;  %v1743_v22 = vpop.f32.mrb[37].mxu0 }
 0xb69   :  { %v1218_v23 = vpop.f32.mrb[38].mxu0 }
 0xb6a   :  { %v1744_v24 = vpop.f32.mrb[39].mxu0 }
 0xbd6   :  { %v1224_v0 = vpop.permute.xlu0 %1223 }
 0xbd7   :  { %1230 = vst.msk [vmem:[#allocation2] sm:$0xff] %vm1229_vm6, %v1224_v0 }
 0xbda   :  { %v1226_v25 = vpop.permute.xlu1 %1225 }
 0xbdb   :  { %1231 = vst.msk [vmem:[#allocation2 + $0x8] sm:$0xff] %vm1229_vm6, %v1226_v25 }
 0xbde   :  { %v1232_v26 = vld [vmem:[#allocation2] sm:$0xff] }
 0xbe2   :  { %v1233_v27 = vld [vmem:[#allocation2 + $0x8] sm:$0xff] }
 0xbe3   :  { %v1234_v28 = vpack.c.bf16 %v1233_v27, %v1232_v26 }
 0xbe5   :  { %1750 = vmatmul.mubr.msk.bf16.vlgmr.msra.gmra.mrb[36].mxu1 %vm67_vm0, %v1234_v28 }
 0xbe6   :  { %1769 = vmatprep.mubr.msk.bf16.mxu1 %vm1840_vm1, %v1839_v18  ;;  %1762 = vmatpush3.bf16.msra.mxu1 %v1791_v10 }
 0xbe7   :  { %1763 = vmatprep.subr.bf16.mxu1 %v1839_v18 }
 0xbea   :  { %1764 = vmatpush3.bf16.msra.mxu1 %v1792_v11 }
 0xbeb   :  { %1765 = vmatprep.subr.bf16.mxu1 %v1839_v18 }
 0xbee   :  { %1766 = vmatpush3.bf16.msra.mxu1 %v1793_v49 }
 0xbef   :  { %1767 = vmatprep.subr.bf16.mxu1 %v1839_v18 }
 0xbf2   :  { %1768 = vmatpush3.bf16.msra.mxu1 %v1794_v54 }
 0xcb8   :  { %v1295_v30 = vpop.f32.mrb[36].mxu1 }
 0xcb9   :  { %v1296_v31 = vadd.f32 %v1557_v29, %v1295_v30  ;;  %v1751_v32 = vpop.f32.mrb[37].mxu1 }
 0xcba   :  { %v1298_v33 = vpop.f32.mrb[38].mxu1 }
 0xcbb   :  { %v2192_v34 = vadd.f32 %v1296_v31, %v1951_v3  ;;  %v1299_v35 = vadd.f32 %v1557_v29, %v1298_v33  ;;  %v1752_v36 = vpop.f32.mrb[39].mxu1 }
 0xcbc   :  { %v1567_v36 = vld [vmem:[%s2267_s17] ss:$0 sm:$0xff] }
 0xcbd   :  { %v2195_v37 = vadd.f32 %v1299_v35, %v1953_v4  ;;  %v1306_v38 = vsel %vm67_vm0, %v2192_v34, 0.0 }
 0xcbe   :  { %1307 = vadd.xlane.f32.xlu0 %v1306_v38 }
 0xcbf   :  { %v1309_v39 = vsel %vm67_vm0, %v2195_v37, 0.0 }
 0xcc0   :  { %1310 = vadd.xlane.f32.xlu1 %v1309_v39 }
 0xd4b   :  { %v1308_v41 = vpop.xlane.xlu0 %1307 }
 0xd4c   :  { %v1312_v42 = vmul.f32 0.03125, %v1308_v41 }
 0xd4d   :  { %v1311_v43 = vpop.xlane.xlu1 %1310 }
 0xd4e   :  { %v1314_v45 = vsub.f32 %v2192_v34, %v1312_v42  ;;  %v1313_v3 = vmul.f32 0.03125, %v1311_v43 }
 0xd50   :  { %v1315_v46 = vsub.f32 %v2195_v37, %v1313_v3  ;;  %v1316_v47 = vmul.f32 %v1314_v45, %v1314_v45 }
 0xd52   :  { %v1318_v4 = vsel %vm67_vm0, %v1316_v47, 0.0  ;;  %v1317_v48 = vmul.f32 %v1315_v46, %v1315_v46 }
 0xd53   :  { %1319 = vadd.xlane.f32.xlu0 %v1318_v4 }
 0xd54   :  { %v1321_v50 = vsel %vm67_vm0, %v1317_v48, 0.0 }
 0xd57   :  { %1322 = vadd.xlane.f32.xlu0 %v1321_v50 }
 0xde0   :  { %v1320_v53 = vpop.xlane.xlu0 %1319 }
 0xde1   :  { %v1324_v55 = vmul.f32 0.03125, %v1320_v53 }
 0xde3   :  { %v1326_v56 = vadd.f32 1e-05, %v1324_v55 }
 0xde4   :  { %v1323_v57 = vpop.xlane.xlu0 %1322 }
 0xde5   :  { %1831 = vrsqrt.f32 %v1326_v56  ;;  %v1325_v58 = vmul.f32 0.03125, %v1323_v57 }
 0xde7   :  { %v1327_v59 = vadd.f32 1e-05, %v1325_v58 }
 0xde9   :  { %1833 = vrsqrt.f32 %v1327_v59 }
 0xdef   :  { %v1832_v60 = vpop.eup %1831 }
 0xdf0   :  { %v1330_v7 = vmul.f32 %v1832_v60, %v1314_v45 }
 0xdf2   :  { %v1338_v61 = vmul.f32 %v1561_v40, %v1330_v7 }
 0xdf3   :  { %v1834_v44 = vpop.eup %1833 }
 0xdf4   :  { %v1331_v62 = vmul.f32 %v1834_v44, %v1315_v46  ;;  %v1346_v5 = vadd.f32 %v1562_v63, %v1338_v61 }
 0xdf6   :  { %v1339_v2 = vmul.f32 %v1561_v40, %v1331_v62 }
 0xdf8   :  { %v1347_v8 = vadd.f32 %v1562_v63, %v1339_v2 }
 0xdfa   :  { %v1348_v9 = vpack.c.bf16 %v1347_v8, %v1346_v5 }
 0xdfc   :  { %1758 = vmatmul.mubr.msk.bf16.vlgmr.msra.gmra.mrb[40].mxu0 %vm67_vm0, %v1348_v9 }
 0xecf   :  { %v1409_v6 = vpop.f32.mrb[40].mxu0 }
 0xed0   :  { %v1410_v13 = vadd.f32 %v1563_v12, %v1409_v6  ;;  %v1759_v1 = vpop.f32.mrb[41].mxu0 }
 0xed1   :  { %v1412_v14 = vpop.f32.mrb[42].mxu0 }
 0xed2   :  { %v1418_v15 = vmul.f32 0.044715, %v1410_v13  ;;  %v1413_v16 = vadd.f32 %v1563_v12, %v1412_v14  ;;  %v1760_v17 = vpop.f32.mrb[43].mxu0  ;;  %v1416_v29 = vmul.f32 0.5, %v1410_v13 }
 0xed4   :  { %v1420_v19 = vmul.f32 %v1418_v15, %v1410_v13  ;;  %v1419_v20 = vmul.f32 0.044715, %v1413_v16  ;;  %v1417_v30 = vmul.f32 0.5, %v1413_v16 }
 0xed6   :  { %v1422_v21 = vmul.f32 %v1420_v19, %v1410_v13  ;;  %v1421_v22 = vmul.f32 %v1419_v20, %v1413_v16 }
 0xed8   :  { %v1424_v23 = vadd.f32 %v1422_v21, %v1410_v13  ;;  %v1423_v24 = vmul.f32 %v1421_v22, %v1413_v16 }
 0xeda   :  { %v1426_v0 = vmul.f32 0.7978846, %v1424_v23  ;;  %v1425_v18 = vadd.f32 %v1423_v24, %v1413_v16 }
 0xedc   :  { %1835 = vtanh.f32 %v1426_v0  ;;  %v1427_v25 = vmul.f32 0.7978846, %v1425_v18 }
 0xede   :  { %1837 = vtanh.f32 %v1427_v25 }
 0xee6   :  { %v1836_v26 = vpop.eup %1835 }
 0xee7   :  { %v1430_v27 = vadd.f32 1.0, %v1836_v26 }
 0xee8   :  { %v1838_v28 = vpop.eup %1837 }
 0xee9   :  { %v1431_v31 = vadd.f32 1.0, %v1838_v28  ;;  %v1432_v32 = vmul.f32 %v1430_v27, %v1416_v29 }
 0xeeb   :  { %v1433_v33 = vmul.f32 %v1431_v31, %v1417_v30 }
 0xeed   :  { %v1434_v35 = vpack.c.bf16 %v1433_v33, %v1432_v32 }
 0xeef   :  { %1770 = vmatmul.mubr.msk.bf16.vlgmr.msra.gmra.mrb[40].mxu1 %vm1474_vm7, %v1434_v35 }
 0xfc2   :  { %v1512_v38 = vpop.f32.mrb[40].mxu1 }
 0xfc3   :  { %v1513_v39 = vadd.f32 %v1567_v36, %v1512_v38  ;;  %v1771_v41 = vpop.f32.mrb[41].mxu1 }
 0xfc4   :  { %v1515_v42 = vpop.f32.mrb[42].mxu1 }
 0xfc5   :  { %v1519_v43 = vadd.f32 %v1513_v39, %v2192_v34  ;;  %v1516_v45 = vadd.f32 %v1567_v36, %v1515_v42  ;;  %v1772_v3 = vpop.f32.mrb[43].mxu1 }
 0xfc7   :  { %1521 = vst.msk [vmem:[%s2268_s18] sm:$0xff] %vm67_vm0, %v1519_v43  ;;  %v1520_v46 = vadd.f32 %v1516_v45, %v2195_v37 }
 0xfc9   :  { %1522 = vst.msk [vmem:[%s2268_s18 + $0x8] sm:$0xff] %vm67_vm0, %v1520_v46 }

</bundles_post_ra>
